<compile_context>
chip_gen: v5e
topology: v5e:2x2
jax: 0.10.0
libtpu: 0.0.40
codegen_flags: <defaults>
</compile_context>

<pallas_src>
import jax
import jax.numpy as jnp
from jax import lax
from jax.experimental import pallas as pl
from jax.experimental.pallas import tpu as pltpu

HI = jax.lax.Precision.HIGHEST

B = 2            # batch
L = 120          # sequence length (fixed by cnn_output_size = 960 = 64 * 15)
NUM_CLASSES = 5
EPS = 1e-5


# ---------------------------------------------------------------------------
# fused kernel: CNN + MLP head, whole batch in one step
# ---------------------------------------------------------------------------
def fused_kernel(x_ref,
                 w1_ref, s1_ref, o1_ref,
                 w2_ref, s2_ref, o2_ref,
                 w3_ref, s3_ref, o3_ref,
                 vf1_ref, vl1_ref, vf2_ref, vl2_ref, vf3_ref, vl3_ref,
                 sel1_ref, sel2_ref, sel3_ref,
                 rselT_ref, fb1_ref, fw2_ref, fb2_ref,
                 wbigT_hbm, keepT_hbm, cselT_hbm,
                 out_ref,
                 wbigT_vmem, keepT_vmem, cselT_vmem, dma_sem):
    # ---- kick off the FC-constant DMAs; they overlap the conv stack ----
    cp_w = pltpu.make_async_copy(wbigT_hbm, wbigT_vmem, dma_sem.at[0])
    cp_k = pltpu.make_async_copy(keepT_hbm, keepT_vmem, dma_sem.at[1])
    cp_c = pltpu.make_async_copy(cselT_hbm, cselT_vmem, dma_sem.at[2])
    cp_w.start()
    cp_k.start()
    cp_c.start()

    def shifted(a, vfirst, vlast):
        """a[:, s-1] and a[:, s+1] with segment-boundary zeroing (conv 'same' pad)."""
        n = a.shape[-1]
        am = pltpu.roll(a, 1, axis=1) * vfirst        # a[:, s-1]
        ap = pltpu.roll(a, n - 1, axis=1) * vlast     # a[:, s+1]
        return am, ap

    def pool2(y, sel_ref):
        """MaxPool1d(k=2,s=2) on the packed lane axis: (C, n) -> (C, n//2)."""
        n = y.shape[-1]
        nxt = pltpu.roll(y, n - 1, axis=1)            # nxt[:, s] = y[:, s+1 (mod n)]
        maxed = jnp.maximum(y, nxt).astype(jnp.bfloat16)   # wrap only hits odd (dropped) cols
        return jnp.dot(maxed, sel_ref[...], preferred_element_type=jnp.float32)

    # -------- layer 1: Cin = 1, conv taps are broadcast multiplies --------
    x = x_ref[...]                                    # (1, B*120)
    xm, xp = shifted(x, vf1_ref[...], vl1_ref[...])
    y = w1_ref[1] * x + w1_ref[0] * xm + w1_ref[2] * xp        # (16, B*120)
    y = jnp.maximum(y * s1_ref[...] + o1_ref[...], 0.0)        # folded BN + ReLU
    a = pool2(y, sel1_ref)                                     # (16, B*60)

    # -------- layer 2 --------
    am, ap = shifted(a, vf2_ref[...], vl2_ref[...])
    y = (jnp.dot(w2_ref[1], a, preferred_element_type=jnp.float32)
         + jnp.dot(w2_ref[0], am, preferred_element_type=jnp.float32)
         + jnp.dot(w2_ref[2], ap, preferred_element_type=jnp.float32))
    y = jnp.maximum(y * s2_ref[...] + o2_ref[...], 0.0)
    a = pool2(y, sel2_ref)                                     # (32, B*30)

    # -------- layer 3 --------
    am, ap = shifted(a, vf3_ref[...], vl3_ref[...])
    y = (jnp.dot(w3_ref[1], a, preferred_element_type=jnp.float32)
         + jnp.dot(w3_ref[0], am, preferred_element_type=jnp.float32)
         + jnp.dot(w3_ref[2], ap, preferred_element_type=jnp.float32))
    y = jnp.maximum(y * s3_ref[...] + o3_ref[...], 0.0)
    feat = pool2(y, sel3_ref)                                  # (64, B*15)

    # -------- fused FC head (no flatten, no in-kernel transpose) --------
    # gT[t*64+j, b*15+t'] = sum_c fw1[j, c*15+t] * feat[c, b*15+t']
    feat_b = feat.astype(jnp.bfloat16)
    cp_w.wait()
    gT = jnp.dot(wbigT_vmem[...], feat_b, preferred_element_type=jnp.float32)  # (960, B*15)
    cp_k.wait()
    gm = gT.astype(jnp.bfloat16) * keepT_vmem[...]             # keep only t == t'
    cp_c.wait()
    q = jnp.dot(cselT_vmem[...], gm, preferred_element_type=jnp.float32)       # (64, B*15)
    hT = jnp.dot(q, rselT_ref[...], preferred_element_type=jnp.float32)        # (64, B)
    hT = jnp.maximum(hT + fb1_ref[...], 0.0)                   # Linear(960,64) + ReLU
    out_ref[...] = (jnp.dot(fw2_ref[...], hT, preferred_element_type=jnp.float32)
                    + fb2_ref[...])                            # (NC, B)


# ---------------------------------------------------------------------------
# host-side one-time parameter / constant preparation
# ---------------------------------------------------------------------------
def prepare_kernel_params(params, batch):
    (w1, s1, o1), (w2, s2, o2), (w3, s3, o3), (fw1, fb1, fw2, fb2) = params
    assert L % 8 == 0
    T = L // 8                                  # 15
    J = fw1.shape[0]                            # 64
    C3 = fw1.shape[1] // T                      # 64
    assert fw1.shape[1] == C3 * T

    def taps(w):                                # (Cout, Cin, 3) -> (3, Cout, Cin)
        return jnp.transpose(w, (2, 0, 1))

    def boundary(n, seg):
        s = jnp.arange(n)
        vf = (s % seg != 0).astype(jnp.float32).reshape(1, n)           # valid left read
        vl = (s % seg != seg - 1).astype(jnp.float32).reshape(1, n)     # valid right read
        return vf, vl

    def pool_sel(n):
        assert n % 2 == 0                       # wrap contamination stays on dropped cols
        return (jnp.arange(n)[:, None] == 2 * jnp.arange(n // 2)[None, :]
                ).astype(jnp.bfloat16)

    n1, n2, n3 = batch * L, batch * (L // 2), batch * (L // 4)
    vf1, vl1 = boundary(n1, L)
    vf2, vl2 = boundary(n2, L // 2)
    vf3, vl3 = boundary(n3, L // 4)

    # FC constants (big ones in bf16, DMA'd asynchronously inside the kernel).
    # WbigT[t*J + j, c] = fw1[j, c*T + t]
    wbigT = jnp.transpose(fw1.reshape(J, C3, T), (2, 0, 1)).reshape(T * J, C3)
    wbigT = wbigT.astype(jnp.bfloat16)
    rows_t = jnp.arange(T * J) // J
    cols_t = jnp.arange(batch * T) % T
    keepT = (rows_t[:, None] == cols_t[None, :]).astype(jnp.bfloat16)   # (960, B*T)
    cselT = (jnp.arange(J)[:, None] == (jnp.arange(T * J) % J)[None, :]
             ).astype(jnp.bfloat16)                                     # (64, 960)
    rselT = ((jnp.arange(batch * T)[:, None] // T) ==
             jnp.arange(batch)[None, :]).astype(jnp.float32)            # (B*T, B)

    vmem_params = (taps(w1), s1, o1,
                   taps(w2), s2, o2,
                   taps(w3), s3, o3,
                   vf1, vl1, vf2, vl2, vf3, vl3,
                   pool_sel(n1), pool_sel(n2), pool_sel(n3),
                   rselT, fb1.reshape(-1, 1), fw2, fb2.reshape(-1, 1))
    hbm_params = (wbigT, keepT, cselT)
    return vmem_params, hbm_params


@jax.jit
def ir_cnn_forward(x, vmem_params, hbm_params):
    """x: (B, 120) float32 -> (B, NUM_CLASSES) float32."""
    b = x.shape[0]
    x_packed = x.reshape(1, b * x.shape[1])     # lane-packed: column = b*L + t
    T, J, C3 = L // 8, 64, 64
    vmem = pltpu.MemorySpace.VMEM
    out_t = pl.pallas_call(
        fused_kernel,
        out_shape=jax.ShapeDtypeStruct((NUM_CLASSES, b), jnp.float32),
        in_specs=([pl.BlockSpec(memory_space=vmem)] * (1 + len(vmem_params))
                  + [pl.BlockSpec(memory_space=pl.ANY)] * len(hbm_params)),
        out_specs=pl.BlockSpec(memory_space=vmem),
        scratch_shapes=[
            pltpu.VMEM((T * J, C3), jnp.bfloat16),      # wbigT landing buffer
            pltpu.VMEM((T * J, b * T), jnp.bfloat16),   # keepT landing buffer
            pltpu.VMEM((J, T * J), jnp.bfloat16),       # cselT landing buffer
            pltpu.SemaphoreType.DMA((3,)),
        ],
    )(x_packed, *vmem_params, *hbm_params)
    return out_t.T                              # (NC, B) -> (B, NC), free in XLA


# ---------------------------------------------------------------------------
# deterministic parameter init + pure-JAX reference
# ---------------------------------------------------------------------------
def _init_conv_bn(key, cout, cin):
    kw, kb, kg, kbe, km, kv = jax.random.split(key, 6)
    w = 0.1 * jax.random.normal(kw, (cout, cin, 3), jnp.float32)
    bias = 0.05 * jax.random.normal(kb, (cout,), jnp.float32)
    gamma = 1.0 + 0.1 * jax.random.normal(kg, (cout,), jnp.float32)
    beta = 0.1 * jax.random.normal(kbe, (cout,), jnp.float32)
    mean = 0.1 * jax.random.normal(km, (cout,), jnp.float32)
    var = 1.0 + 0.1 * jnp.abs(jax.random.normal(kv, (cout,), jnp.float32))
    s_bn = gamma / jnp.sqrt(var + EPS)
    scale = s_bn.reshape(cout, 1)
    offset = ((bias - mean) * s_bn + beta).reshape(cout, 1)
    return w, scale, offset


def init_params(key):
    k1, k2, k3, k4, k5, k6, k7 = jax.random.split(key, 7)
    c1 = _init_conv_bn(k1, 16, 1)
    c2 = _init_conv_bn(k2, 32, 16)
    c3 = _init_conv_bn(k3, 64, 32)
    fw1 = 0.05 * jax.random.normal(k4, (64, 64 * (L // 8)), jnp.float32)
    fb1 = 0.05 * jax.random.normal(k5, (64,), jnp.float32)
    fw2 = 0.1 * jax.random.normal(k6, (NUM_CLASSES, 64), jnp.float32)
    fb2 = 0.05 * jax.random.normal(k7, (NUM_CLASSES,), jnp.float32)
    return c1, c2, c3, (fw1, fb1, fw2, fb2)


def reference_forward(x, params):
    (w1, s1, o1), (w2, s2, o2), (w3, s3, o3), (fw1, fb1, fw2, fb2) = params
    a = x[:, None, :]
    for w, s, o in ((w1, s1, o1), (w2, s2, o2), (w3, s3, o3)):
        a = lax.conv_general_dilated(a, w, window_strides=(1,), padding=((1, 1),),
                                     dimension_numbers=("NCH", "OIH", "NCH"),
                                     precision=HI)
        a = jnp.maximum(a * s[None] + o[None], 0.0)
        bb, cc, ll = a.shape
        a = a.reshape(bb, cc, ll // 2, 2).max(-1)
    flat = a.reshape(a.shape[0], -1)
    h = jnp.maximum(jnp.dot(flat, fw1.T, precision=HI) + fb1, 0.0)
    return jnp.dot(h, fw2.T, precision=HI) + fb2


if __name__ == "__main__":
    key = jax.random.PRNGKey(0)
    kx, kp = jax.random.split(key)
    x = jax.random.normal(kx, (B, L), jnp.float32)
    params = init_params(kp)
    vmem_params, hbm_params = prepare_kernel_params(params, B)   # one-time host prep

    out = jax.block_until_ready(ir_cnn_forward(x, vmem_params, hbm_params))
    assert out.shape == (B, NUM_CLASSES), out.shape

    ref = reference_forward(x, params)
    # kernel runs the MXU at bf16-pass precision -> 1e-2 tolerance
    assert jnp.allclose(out, ref, rtol=1e-2, atol=1e-2), (out, ref)

    print("KERNEL_OK")
</pallas_src>

<mosaic_0001>
module attributes {stable_mosaic.version = 11 : i64} {
  func.func @fused_kernel(%arg0: memref<1x240xf32, #tpu.memory_space<vmem>>, %arg1: memref<3x16x1xf32, #tpu.memory_space<vmem>>, %arg2: memref<16x1xf32, #tpu.memory_space<vmem>>, %arg3: memref<16x1xf32, #tpu.memory_space<vmem>>, %arg4: memref<3x32x16xf32, #tpu.memory_space<vmem>>, %arg5: memref<32x1xf32, #tpu.memory_space<vmem>>, %arg6: memref<32x1xf32, #tpu.memory_space<vmem>>, %arg7: memref<3x64x32xf32, #tpu.memory_space<vmem>>, %arg8: memref<64x1xf32, #tpu.memory_space<vmem>>, %arg9: memref<64x1xf32, #tpu.memory_space<vmem>>, %arg10: memref<1x240xf32, #tpu.memory_space<vmem>>, %arg11: memref<1x240xf32, #tpu.memory_space<vmem>>, %arg12: memref<1x120xf32, #tpu.memory_space<vmem>>, %arg13: memref<1x120xf32, #tpu.memory_space<vmem>>, %arg14: memref<1x60xf32, #tpu.memory_space<vmem>>, %arg15: memref<1x60xf32, #tpu.memory_space<vmem>>, %arg16: memref<240x120xbf16, #tpu.memory_space<vmem>>, %arg17: memref<120x60xbf16, #tpu.memory_space<vmem>>, %arg18: memref<60x30xbf16, #tpu.memory_space<vmem>>, %arg19: memref<30x2xf32, #tpu.memory_space<vmem>>, %arg20: memref<64x1xf32, #tpu.memory_space<vmem>>, %arg21: memref<5x64xf32, #tpu.memory_space<vmem>>, %arg22: memref<5x1xf32, #tpu.memory_space<vmem>>, %arg23: memref<960x64xbf16, #tpu.memory_space<any>>, %arg24: memref<960x30xbf16, #tpu.memory_space<any>>, %arg25: memref<64x960xbf16, #tpu.memory_space<any>>, %arg26: memref<5x2xf32, #tpu.memory_space<vmem>>, %arg27: memref<960x64xbf16, #tpu.memory_space<vmem>>, %arg28: memref<960x30xbf16, #tpu.memory_space<vmem>>, %arg29: memref<64x960xbf16, #tpu.memory_space<vmem>>, %arg30: memref<3x!tpu.dma_semaphore, #tpu.memory_space<semaphore_mem>>) attributes {dimension_semantics = [], scalar_prefetch = 0 : i64, scratch_operands = 4 : i64, tpu.core_type = #tpu.core_type<tc>} {
    %c0_i32 = arith.constant 0 : i32
    %0 = tpu.memref_slice %arg30[%c0_i32] : memref<3x!tpu.dma_semaphore, #tpu.memory_space<semaphore_mem>> -> memref<1x!tpu.dma_semaphore, #tpu.memory_space<semaphore_mem>>
    %1 = tpu.memref_squeeze %0 : memref<1x!tpu.dma_semaphore, #tpu.memory_space<semaphore_mem>> -> memref<!tpu.dma_semaphore, #tpu.memory_space<semaphore_mem>>
    tpu.enqueue_dma source(%arg23 : memref<960x64xbf16, #tpu.memory_space<any>>) target(%arg27 : memref<960x64xbf16, #tpu.memory_space<vmem>>) target_semaphore(%1 : memref<!tpu.dma_semaphore, #tpu.memory_space<semaphore_mem>>)
    %c1_i32 = arith.constant 1 : i32
    %2 = tpu.memref_slice %arg30[%c1_i32] : memref<3x!tpu.dma_semaphore, #tpu.memory_space<semaphore_mem>> -> memref<1x!tpu.dma_semaphore, #tpu.memory_space<semaphore_mem>>
    %3 = tpu.memref_squeeze %2 : memref<1x!tpu.dma_semaphore, #tpu.memory_space<semaphore_mem>> -> memref<!tpu.dma_semaphore, #tpu.memory_space<semaphore_mem>>
    tpu.enqueue_dma source(%arg24 : memref<960x30xbf16, #tpu.memory_space<any>>) target(%arg28 : memref<960x30xbf16, #tpu.memory_space<vmem>>) target_semaphore(%3 : memref<!tpu.dma_semaphore, #tpu.memory_space<semaphore_mem>>)
    %c2_i32 = arith.constant 2 : i32
    %4 = tpu.memref_slice %arg30[%c2_i32] : memref<3x!tpu.dma_semaphore, #tpu.memory_space<semaphore_mem>> -> memref<1x!tpu.dma_semaphore, #tpu.memory_space<semaphore_mem>>
    %5 = tpu.memref_squeeze %4 : memref<1x!tpu.dma_semaphore, #tpu.memory_space<semaphore_mem>> -> memref<!tpu.dma_semaphore, #tpu.memory_space<semaphore_mem>>
    tpu.enqueue_dma source(%arg25 : memref<64x960xbf16, #tpu.memory_space<any>>) target(%arg29 : memref<64x960xbf16, #tpu.memory_space<vmem>>) target_semaphore(%5 : memref<!tpu.dma_semaphore, #tpu.memory_space<semaphore_mem>>)
    %c0 = arith.constant 0 : index
    %c0_0 = arith.constant 0 : index
    %6 = vector.load %arg0[%c0, %c0_0] : memref<1x240xf32, #tpu.memory_space<vmem>>, vector<1x240xf32>
    %c0_1 = arith.constant 0 : index
    %c0_2 = arith.constant 0 : index
    %7 = vector.load %arg10[%c0_1, %c0_2] : memref<1x240xf32, #tpu.memory_space<vmem>>, vector<1x240xf32>
    %c0_3 = arith.constant 0 : index
    %c0_4 = arith.constant 0 : index
    %8 = vector.load %arg11[%c0_3, %c0_4] : memref<1x240xf32, #tpu.memory_space<vmem>>, vector<1x240xf32>
    %c1_i32_5 = arith.constant 1 : i32
    %9 = tpu.dynamic_rotate %6 by %c1_i32_5 dim 1 : vector<1x240xf32>, i32 -> vector<1x240xf32>
    %10 = arith.mulf %9, %7 : vector<1x240xf32>
    %c239_i32 = arith.constant 239 : i32
    %11 = tpu.dynamic_rotate %6 by %c239_i32 dim 1 : vector<1x240xf32>, i32 -> vector<1x240xf32>
    %12 = arith.mulf %11, %8 : vector<1x240xf32>
    %c1 = arith.constant 1 : index
    %c0_6 = arith.constant 0 : index
    %c0_7 = arith.constant 0 : index
    %13 = vector.load %arg1[%c1, %c0_6, %c0_7] : memref<3x16x1xf32, #tpu.memory_space<vmem>>, vector<1x16x1xf32>
    %14 = vector.shape_cast %13 : vector<1x16x1xf32> to vector<16x1xf32>
    %15 = vector.broadcast %14 : vector<16x1xf32> to vector<16x240xf32>
    %16 = vector.broadcast %6 : vector<1x240xf32> to vector<16x240xf32>
    %17 = arith.mulf %15, %16 : vector<16x240xf32>
    %c0_8 = arith.constant 0 : index
    %c0_9 = arith.constant 0 : index
    %c0_10 = arith.constant 0 : index
    %18 = vector.load %arg1[%c0_8, %c0_9, %c0_10] : memref<3x16x1xf32, #tpu.memory_space<vmem>>, vector<1x16x1xf32>
    %19 = vector.shape_cast %18 : vector<1x16x1xf32> to vector<16x1xf32>
    %20 = vector.broadcast %19 : vector<16x1xf32> to vector<16x240xf32>
    %21 = vector.broadcast %10 : vector<1x240xf32> to vector<16x240xf32>
    %22 = arith.mulf %20, %21 : vector<16x240xf32>
    %23 = arith.addf %17, %22 : vector<16x240xf32>
    %c2 = arith.constant 2 : index
    %c0_11 = arith.constant 0 : index
    %c0_12 = arith.constant 0 : index
    %24 = vector.load %arg1[%c2, %c0_11, %c0_12] : memref<3x16x1xf32, #tpu.memory_space<vmem>>, vector<1x16x1xf32>
    %25 = vector.shape_cast %24 : vector<1x16x1xf32> to vector<16x1xf32>
    %26 = vector.broadcast %25 : vector<16x1xf32> to vector<16x240xf32>
    %27 = vector.broadcast %12 : vector<1x240xf32> to vector<16x240xf32>
    %28 = arith.mulf %26, %27 : vector<16x240xf32>
    %29 = arith.addf %23, %28 : vector<16x240xf32>
    %c0_13 = arith.constant 0 : index
    %c0_14 = arith.constant 0 : index
    %30 = vector.load %arg2[%c0_13, %c0_14] : memref<16x1xf32, #tpu.memory_space<vmem>>, vector<16x1xf32>
    %31 = vector.broadcast %30 : vector<16x1xf32> to vector<16x240xf32>
    %32 = arith.mulf %29, %31 : vector<16x240xf32>
    %c0_15 = arith.constant 0 : index
    %c0_16 = arith.constant 0 : index
    %33 = vector.load %arg3[%c0_15, %c0_16] : memref<16x1xf32, #tpu.memory_space<vmem>>, vector<16x1xf32>
    %34 = vector.broadcast %33 : vector<16x1xf32> to vector<16x240xf32>
    %35 = arith.addf %32, %34 : vector<16x240xf32>
    %cst = arith.constant 0.000000e+00 : f32
    %36 = vector.broadcast %cst : f32 to vector<16x240xf32>
    %37 = arith.maximumf %35, %36 : vector<16x240xf32>
    %c239_i32_17 = arith.constant 239 : i32
    %38 = tpu.dynamic_rotate %37 by %c239_i32_17 dim 1 : vector<16x240xf32>, i32 -> vector<16x240xf32>
    %39 = arith.maximumf %37, %38 : vector<16x240xf32>
    %40 = arith.truncf %39 : vector<16x240xf32> to vector<16x240xbf16>
    %c0_18 = arith.constant 0 : index
    %c0_19 = arith.constant 0 : index
    %41 = vector.load %arg16[%c0_18, %c0_19] : memref<240x120xbf16, #tpu.memory_space<vmem>>, vector<240x120xbf16>
    %cst_20 = arith.constant dense<0.000000e+00> : vector<16x120xf32>
    %42 = tpu.matmul %40, %41, %cst_20 {dimension_numbers = #tpu.dot_dimension_numbers<[1], [0], [0], [1], [0, 0, 1, 1], [], []>} : vector<16x240xbf16>, vector<240x120xbf16>, vector<16x120xf32> -> vector<16x120xf32>
    %c0_21 = arith.constant 0 : index
    %c0_22 = arith.constant 0 : index
    %43 = vector.load %arg12[%c0_21, %c0_22] : memref<1x120xf32, #tpu.memory_space<vmem>>, vector<1x120xf32>
    %c0_23 = arith.constant 0 : index
    %c0_24 = arith.constant 0 : index
    %44 = vector.load %arg13[%c0_23, %c0_24] : memref<1x120xf32, #tpu.memory_space<vmem>>, vector<1x120xf32>
    %c1_i32_25 = arith.constant 1 : i32
    %45 = tpu.dynamic_rotate %42 by %c1_i32_25 dim 1 : vector<16x120xf32>, i32 -> vector<16x120xf32>
    %46 = vector.broadcast %43 : vector<1x120xf32> to vector<16x120xf32>
    %47 = arith.mulf %45, %46 : vector<16x120xf32>
    %c119_i32 = arith.constant 119 : i32
    %48 = tpu.dynamic_rotate %42 by %c119_i32 dim 1 : vector<16x120xf32>, i32 -> vector<16x120xf32>
    %49 = vector.broadcast %44 : vector<1x120xf32> to vector<16x120xf32>
    %50 = arith.mulf %48, %49 : vector<16x120xf32>
    %c1_26 = arith.constant 1 : index
    %c0_27 = arith.constant 0 : index
    %c0_28 = arith.constant 0 : index
    %51 = vector.load %arg4[%c1_26, %c0_27, %c0_28] : memref<3x32x16xf32, #tpu.memory_space<vmem>>, vector<1x32x16xf32>
    %52 = vector.shape_cast %51 : vector<1x32x16xf32> to vector<32x16xf32>
    %cst_29 = arith.constant dense<0.000000e+00> : vector<32x120xf32>
    %53 = tpu.matmul %52, %42, %cst_29 {dimension_numbers = #tpu.dot_dimension_numbers<[1], [0], [0], [1], [0, 0, 1, 1], [], []>} : vector<32x16xf32>, vector<16x120xf32>, vector<32x120xf32> -> vector<32x120xf32>
    %c0_30 = arith.constant 0 : index
    %c0_31 = arith.constant 0 : index
    %c0_32 = arith.constant 0 : index
    %54 = vector.load %arg4[%c0_30, %c0_31, %c0_32] : memref<3x32x16xf32, #tpu.memory_space<vmem>>, vector<1x32x16xf32>
    %55 = vector.shape_cast %54 : vector<1x32x16xf32> to vector<32x16xf32>
    %cst_33 = arith.constant dense<0.000000e+00> : vector<32x120xf32>
    %56 = tpu.matmul %55, %47, %cst_33 {dimension_numbers = #tpu.dot_dimension_numbers<[1], [0], [0], [1], [0, 0, 1, 1], [], []>} : vector<32x16xf32>, vector<16x120xf32>, vector<32x120xf32> -> vector<32x120xf32>
    %57 = arith.addf %53, %56 : vector<32x120xf32>
    %c2_34 = arith.constant 2 : index
    %c0_35 = arith.constant 0 : index
    %c0_36 = arith.constant 0 : index
    %58 = vector.load %arg4[%c2_34, %c0_35, %c0_36] : memref<3x32x16xf32, #tpu.memory_space<vmem>>, vector<1x32x16xf32>
    %59 = vector.shape_cast %58 : vector<1x32x16xf32> to vector<32x16xf32>
    %cst_37 = arith.constant dense<0.000000e+00> : vector<32x120xf32>
    %60 = tpu.matmul %59, %50, %cst_37 {dimension_numbers = #tpu.dot_dimension_numbers<[1], [0], [0], [1], [0, 0, 1, 1], [], []>} : vector<32x16xf32>, vector<16x120xf32>, vector<32x120xf32> -> vector<32x120xf32>
    %61 = arith.addf %57, %60 : vector<32x120xf32>
    %c0_38 = arith.constant 0 : index
    %c0_39 = arith.constant 0 : index
    %62 = vector.load %arg5[%c0_38, %c0_39] : memref<32x1xf32, #tpu.memory_space<vmem>>, vector<32x1xf32>
    %63 = vector.broadcast %62 : vector<32x1xf32> to vector<32x120xf32>
    %64 = arith.mulf %61, %63 : vector<32x120xf32>
    %c0_40 = arith.constant 0 : index
    %c0_41 = arith.constant 0 : index
    %65 = vector.load %arg6[%c0_40, %c0_41] : memref<32x1xf32, #tpu.memory_space<vmem>>, vector<32x1xf32>
    %66 = vector.broadcast %65 : vector<32x1xf32> to vector<32x120xf32>
    %67 = arith.addf %64, %66 : vector<32x120xf32>
    %cst_42 = arith.constant 0.000000e+00 : f32
    %68 = vector.broadcast %cst_42 : f32 to vector<32x120xf32>
    %69 = arith.maximumf %67, %68 : vector<32x120xf32>
    %c119_i32_43 = arith.constant 119 : i32
    %70 = tpu.dynamic_rotate %69 by %c119_i32_43 dim 1 : vector<32x120xf32>, i32 -> vector<32x120xf32>
    %71 = arith.maximumf %69, %70 : vector<32x120xf32>
    %72 = arith.truncf %71 : vector<32x120xf32> to vector<32x120xbf16>
    %c0_44 = arith.constant 0 : index
    %c0_45 = arith.constant 0 : index
    %73 = vector.load %arg17[%c0_44, %c0_45] : memref<120x60xbf16, #tpu.memory_space<vmem>>, vector<120x60xbf16>
    %cst_46 = arith.constant dense<0.000000e+00> : vector<32x60xf32>
    %74 = tpu.matmul %72, %73, %cst_46 {dimension_numbers = #tpu.dot_dimension_numbers<[1], [0], [0], [1], [0, 0, 1, 1], [], []>} : vector<32x120xbf16>, vector<120x60xbf16>, vector<32x60xf32> -> vector<32x60xf32>
    %c0_47 = arith.constant 0 : index
    %c0_48 = arith.constant 0 : index
    %75 = vector.load %arg14[%c0_47, %c0_48] : memref<1x60xf32, #tpu.memory_space<vmem>>, vector<1x60xf32>
    %c0_49 = arith.constant 0 : index
    %c0_50 = arith.constant 0 : index
    %76 = vector.load %arg15[%c0_49, %c0_50] : memref<1x60xf32, #tpu.memory_space<vmem>>, vector<1x60xf32>
    %c1_i32_51 = arith.constant 1 : i32
    %77 = tpu.dynamic_rotate %74 by %c1_i32_51 dim 1 : vector<32x60xf32>, i32 -> vector<32x60xf32>
    %78 = vector.broadcast %75 : vector<1x60xf32> to vector<32x60xf32>
    %79 = arith.mulf %77, %78 : vector<32x60xf32>
    %c59_i32 = arith.constant 59 : i32
    %80 = tpu.dynamic_rotate %74 by %c59_i32 dim 1 : vector<32x60xf32>, i32 -> vector<32x60xf32>
    %81 = vector.broadcast %76 : vector<1x60xf32> to vector<32x60xf32>
    %82 = arith.mulf %80, %81 : vector<32x60xf32>
    %c1_52 = arith.constant 1 : index
    %c0_53 = arith.constant 0 : index
    %c0_54 = arith.constant 0 : index
    %83 = vector.load %arg7[%c1_52, %c0_53, %c0_54] : memref<3x64x32xf32, #tpu.memory_space<vmem>>, vector<1x64x32xf32>
    %84 = vector.shape_cast %83 : vector<1x64x32xf32> to vector<64x32xf32>
    %cst_55 = arith.constant dense<0.000000e+00> : vector<64x60xf32>
    %85 = tpu.matmul %84, %74, %cst_55 {dimension_numbers = #tpu.dot_dimension_numbers<[1], [0], [0], [1], [0, 0, 1, 1], [], []>} : vector<64x32xf32>, vector<32x60xf32>, vector<64x60xf32> -> vector<64x60xf32>
    %c0_56 = arith.constant 0 : index
    %c0_57 = arith.constant 0 : index
    %c0_58 = arith.constant 0 : index
    %86 = vector.load %arg7[%c0_56, %c0_57, %c0_58] : memref<3x64x32xf32, #tpu.memory_space<vmem>>, vector<1x64x32xf32>
    %87 = vector.shape_cast %86 : vector<1x64x32xf32> to vector<64x32xf32>
    %cst_59 = arith.constant dense<0.000000e+00> : vector<64x60xf32>
    %88 = tpu.matmul %87, %79, %cst_59 {dimension_numbers = #tpu.dot_dimension_numbers<[1], [0], [0], [1], [0, 0, 1, 1], [], []>} : vector<64x32xf32>, vector<32x60xf32>, vector<64x60xf32> -> vector<64x60xf32>
    %89 = arith.addf %85, %88 : vector<64x60xf32>
    %c2_60 = arith.constant 2 : index
    %c0_61 = arith.constant 0 : index
    %c0_62 = arith.constant 0 : index
    %90 = vector.load %arg7[%c2_60, %c0_61, %c0_62] : memref<3x64x32xf32, #tpu.memory_space<vmem>>, vector<1x64x32xf32>
    %91 = vector.shape_cast %90 : vector<1x64x32xf32> to vector<64x32xf32>
    %cst_63 = arith.constant dense<0.000000e+00> : vector<64x60xf32>
    %92 = tpu.matmul %91, %82, %cst_63 {dimension_numbers = #tpu.dot_dimension_numbers<[1], [0], [0], [1], [0, 0, 1, 1], [], []>} : vector<64x32xf32>, vector<32x60xf32>, vector<64x60xf32> -> vector<64x60xf32>
    %93 = arith.addf %89, %92 : vector<64x60xf32>
    %c0_64 = arith.constant 0 : index
    %c0_65 = arith.constant 0 : index
    %94 = vector.load %arg8[%c0_64, %c0_65] : memref<64x1xf32, #tpu.memory_space<vmem>>, vector<64x1xf32>
    %95 = vector.broadcast %94 : vector<64x1xf32> to vector<64x60xf32>
    %96 = arith.mulf %93, %95 : vector<64x60xf32>
    %c0_66 = arith.constant 0 : index
    %c0_67 = arith.constant 0 : index
    %97 = vector.load %arg9[%c0_66, %c0_67] : memref<64x1xf32, #tpu.memory_space<vmem>>, vector<64x1xf32>
    %98 = vector.broadcast %97 : vector<64x1xf32> to vector<64x60xf32>
    %99 = arith.addf %96, %98 : vector<64x60xf32>
    %cst_68 = arith.constant 0.000000e+00 : f32
    %100 = vector.broadcast %cst_68 : f32 to vector<64x60xf32>
    %101 = arith.maximumf %99, %100 : vector<64x60xf32>
    %c59_i32_69 = arith.constant 59 : i32
    %102 = tpu.dynamic_rotate %101 by %c59_i32_69 dim 1 : vector<64x60xf32>, i32 -> vector<64x60xf32>
    %103 = arith.maximumf %101, %102 : vector<64x60xf32>
    %104 = arith.truncf %103 : vector<64x60xf32> to vector<64x60xbf16>
    %c0_70 = arith.constant 0 : index
    %c0_71 = arith.constant 0 : index
    %105 = vector.load %arg18[%c0_70, %c0_71] : memref<60x30xbf16, #tpu.memory_space<vmem>>, vector<60x30xbf16>
    %cst_72 = arith.constant dense<0.000000e+00> : vector<64x30xf32>
    %106 = tpu.matmul %104, %105, %cst_72 {dimension_numbers = #tpu.dot_dimension_numbers<[1], [0], [0], [1], [0, 0, 1, 1], [], []>} : vector<64x60xbf16>, vector<60x30xbf16>, vector<64x30xf32> -> vector<64x30xf32>
    %107 = arith.truncf %106 : vector<64x30xf32> to vector<64x30xbf16>
    %c0_i32_73 = arith.constant 0 : i32
    %108 = tpu.memref_slice %arg30[%c0_i32_73] : memref<3x!tpu.dma_semaphore, #tpu.memory_space<semaphore_mem>> -> memref<1x!tpu.dma_semaphore, #tpu.memory_space<semaphore_mem>>
    %109 = tpu.memref_squeeze %108 : memref<1x!tpu.dma_semaphore, #tpu.memory_space<semaphore_mem>> -> memref<!tpu.dma_semaphore, #tpu.memory_space<semaphore_mem>>
    tpu.wait_dma2 semaphore(%109 : memref<!tpu.dma_semaphore, #tpu.memory_space<semaphore_mem>>) src(%arg23 : memref<960x64xbf16, #tpu.memory_space<any>>) dst(%arg27 : memref<960x64xbf16, #tpu.memory_space<vmem>>)
    %c0_74 = arith.constant 0 : index
    %c0_75 = arith.constant 0 : index
    %110 = vector.load %arg27[%c0_74, %c0_75] : memref<960x64xbf16, #tpu.memory_space<vmem>>, vector<960x64xbf16>
    %cst_76 = arith.constant dense<0.000000e+00> : vector<960x30xf32>
    %111 = tpu.matmul %110, %107, %cst_76 {dimension_numbers = #tpu.dot_dimension_numbers<[1], [0], [0], [1], [0, 0, 1, 1], [], []>} : vector<960x64xbf16>, vector<64x30xbf16>, vector<960x30xf32> -> vector<960x30xf32>
    %c1_i32_77 = arith.constant 1 : i32
    %112 = tpu.memref_slice %arg30[%c1_i32_77] : memref<3x!tpu.dma_semaphore, #tpu.memory_space<semaphore_mem>> -> memref<1x!tpu.dma_semaphore, #tpu.memory_space<semaphore_mem>>
    %113 = tpu.memref_squeeze %112 : memref<1x!tpu.dma_semaphore, #tpu.memory_space<semaphore_mem>> -> memref<!tpu.dma_semaphore, #tpu.memory_space<semaphore_mem>>
    tpu.wait_dma2 semaphore(%113 : memref<!tpu.dma_semaphore, #tpu.memory_space<semaphore_mem>>) src(%arg24 : memref<960x30xbf16, #tpu.memory_space<any>>) dst(%arg28 : memref<960x30xbf16, #tpu.memory_space<vmem>>)
    %114 = arith.truncf %111 : vector<960x30xf32> to vector<960x30xbf16>
    %c0_78 = arith.constant 0 : index
    %c0_79 = arith.constant 0 : index
    %115 = vector.load %arg28[%c0_78, %c0_79] : memref<960x30xbf16, #tpu.memory_space<vmem>>, vector<960x30xbf16>
    %116 = arith.mulf %114, %115 : vector<960x30xbf16>
    %c2_i32_80 = arith.constant 2 : i32
    %117 = tpu.memref_slice %arg30[%c2_i32_80] : memref<3x!tpu.dma_semaphore, #tpu.memory_space<semaphore_mem>> -> memref<1x!tpu.dma_semaphore, #tpu.memory_space<semaphore_mem>>
    %118 = tpu.memref_squeeze %117 : memref<1x!tpu.dma_semaphore, #tpu.memory_space<semaphore_mem>> -> memref<!tpu.dma_semaphore, #tpu.memory_space<semaphore_mem>>
    tpu.wait_dma2 semaphore(%118 : memref<!tpu.dma_semaphore, #tpu.memory_space<semaphore_mem>>) src(%arg25 : memref<64x960xbf16, #tpu.memory_space<any>>) dst(%arg29 : memref<64x960xbf16, #tpu.memory_space<vmem>>)
    %c0_81 = arith.constant 0 : index
    %c0_82 = arith.constant 0 : index
    %119 = vector.load %arg29[%c0_81, %c0_82] : memref<64x960xbf16, #tpu.memory_space<vmem>>, vector<64x960xbf16>
    %cst_83 = arith.constant dense<0.000000e+00> : vector<64x30xf32>
    %120 = tpu.matmul %119, %116, %cst_83 {dimension_numbers = #tpu.dot_dimension_numbers<[1], [0], [0], [1], [0, 0, 1, 1], [], []>} : vector<64x960xbf16>, vector<960x30xbf16>, vector<64x30xf32> -> vector<64x30xf32>
    %c0_84 = arith.constant 0 : index
    %c0_85 = arith.constant 0 : index
    %121 = vector.load %arg19[%c0_84, %c0_85] : memref<30x2xf32, #tpu.memory_space<vmem>>, vector<30x2xf32>
    %cst_86 = arith.constant dense<0.000000e+00> : vector<64x2xf32>
    %122 = tpu.matmul %120, %121, %cst_86 {dimension_numbers = #tpu.dot_dimension_numbers<[1], [0], [0], [1], [0, 0, 1, 1], [], []>} : vector<64x30xf32>, vector<30x2xf32>, vector<64x2xf32> -> vector<64x2xf32>
    %c0_87 = arith.constant 0 : index
    %c0_88 = arith.constant 0 : index
    %123 = vector.load %arg20[%c0_87, %c0_88] : memref<64x1xf32, #tpu.memory_space<vmem>>, vector<64x1xf32>
    %124 = vector.broadcast %123 : vector<64x1xf32> to vector<64x2xf32>
    %125 = arith.addf %122, %124 : vector<64x2xf32>
    %cst_89 = arith.constant 0.000000e+00 : f32
    %126 = vector.broadcast %cst_89 : f32 to vector<64x2xf32>
    %127 = arith.maximumf %125, %126 : vector<64x2xf32>
    %c0_90 = arith.constant 0 : index
    %c0_91 = arith.constant 0 : index
    %128 = vector.load %arg21[%c0_90, %c0_91] : memref<5x64xf32, #tpu.memory_space<vmem>>, vector<5x64xf32>
    %cst_92 = arith.constant dense<0.000000e+00> : vector<5x2xf32>
    %129 = tpu.matmul %128, %127, %cst_92 {dimension_numbers = #tpu.dot_dimension_numbers<[1], [0], [0], [1], [0, 0, 1, 1], [], []>} : vector<5x64xf32>, vector<64x2xf32>, vector<5x2xf32> -> vector<5x2xf32>
    %c0_93 = arith.constant 0 : index
    %c0_94 = arith.constant 0 : index
    %130 = vector.load %arg22[%c0_93, %c0_94] : memref<5x1xf32, #tpu.memory_space<vmem>>, vector<5x1xf32>
    %131 = vector.broadcast %130 : vector<5x1xf32> to vector<5x2xf32>
    %132 = arith.addf %129, %131 : vector<5x2xf32>
    %c0_95 = arith.constant 0 : index
    %c0_96 = arith.constant 0 : index
    %133 = vector.load %arg26[%c0_95, %c0_96] : memref<5x2xf32, #tpu.memory_space<vmem>>, vector<5x2xf32>
    tpu.vector_store %arg26[%c0_95, %c0_96], %132 {strides = array<i32>} : memref<5x2xf32, #tpu.memory_space<vmem>>, vector<5x2xf32>,
    return
  }
}

</mosaic_0001>

<bundles_post_ra>
// kernel: ir_cnn_forward.1
= control target key start
LH: loop header
LB: loop body
LE: loop exit
PB: predicated region body
PF: predicated region fallthrough
CT: control target
= control target key end

     0   :  { %s8753_s0 = inlined_call_operand.vmem [shape: f32[1,240], index: 0, kind: input, shape index: {}]   ;;  %s8754_s1 = inlined_call_operand.vmem [shape: f32[3,16,1], index: 1, kind: input, shape index: {}]   ;;  %s8755_s2 = inlined_call_operand.vmem [shape: f32[16,1], index: 2, kind: input, shape index: {}]   ;;  %s8756_s3 = inlined_call_operand.vmem [shape: f32[16,1], index: 3, kind: input, shape index: {}]   ;;  %s8757_s4 = inlined_call_operand.vmem [shape: f32[3,32,16], index: 4, kind: input, shape index: {}]   ;;  %s8758_s5 = inlined_call_operand.vmem [shape: f32[32,1], index: 5, kind: input, shape index: {}]   ;;  %s8759_s6 = inlined_call_operand.vmem [shape: f32[32,1], index: 6, kind: input, shape index: {}]   ;;  %s8760_s7 = inlined_call_operand.vmem [shape: f32[3,64,32], index: 7, kind: input, shape index: {}]   ;;  %s8761_s8 = inlined_call_operand.vmem [shape: f32[64,1], index: 8, kind: input, shape index: {}]   ;;  %s8762_s9 = inlined_call_operand.vmem [shape: f32[64,1], index: 9, kind: input, shape index: {}]   ;;  %s8763_s10 = inlined_call_operand.vmem [shape: f32[1,240], index: 10, kind: input, shape index: {}]   ;;  %s8764_s11 = inlined_call_operand.vmem [shape: f32[1,240], index: 11, kind: input, shape index: {}]   ;;  %s8765_s12 = inlined_call_operand.vmem [shape: f32[1,120], index: 12, kind: input, shape index: {}]   ;;  %s8766_s13 = inlined_call_operand.vmem [shape: f32[1,120], index: 13, kind: input, shape index: {}]   ;;  %s8767_s14 = inlined_call_operand.vmem [shape: f32[1,60], index: 14, kind: input, shape index: {}]   ;;  %s8768_s15 = inlined_call_operand.vmem [shape: f32[1,60], index: 15, kind: input, shape index: {}]   ;;  %s8769_s16 = inlined_call_operand.vmem [shape: bf16[240,120], index: 16, kind: input, shape index: {}]   ;;  %s8770_s17 = inlined_call_operand.vmem [shape: bf16[120,60], index: 17, kind: input, shape index: {}]   ;;  %s8771_s18 = inlined_call_operand.vmem [shape: bf16[60,30], index: 18, kind: input, shape index: {}]   ;;  %s8772_s19 = inlined_call_operand.vmem [shape: f32[30,2], index: 19, kind: input, shape index: {}]   ;;  %s8773_s20 = inlined_call_operand.vmem [shape: f32[64,1], index: 20, kind: input, shape index: {}]   ;;  %s8774_s21 = inlined_call_operand.vmem [shape: f32[5,64], index: 21, kind: input, shape index: {}]   ;;  %s8775_s22 = inlined_call_operand.vmem [shape: f32[5,1], index: 22, kind: input, shape index: {}]   ;;  %s8776_s23 = inlined_call_operand.vmem [shape: bf16[960,64], index: 23, kind: input, shape index: {}]   ;;  %s8777_s24 = inlined_call_operand.vmem [shape: bf16[960,30], index: 24, kind: input, shape index: {}]   ;;  %s8778_s25 = inlined_call_operand.vmem [shape: bf16[64,960], index: 25, kind: input, shape index: {}]   ;;  %s8779_s26 = inlined_call_operand.vmem [shape: f32[5,2], index: 26, kind: output, shape index: {}]  }
   0x1   :  { %9059 = sst [smem:[#allocation146_spill]] %s8753_s0  ;;  %v88_v0 = vld [vmem:[%s8776_s23] sm:$0xff]  ;;  %v90_v1 = vld [vmem:[%s8776_s23 + $0x8] sm:$0xff]  ;;  %v92_v2 = vld [vmem:[%s8776_s23 + $0x10] sm:$0xff] }
   0x2   :  { %9060 = sst [smem:[#allocation147_spill]] %s8754_s1  ;;  %89 = vst [vmem:[#allocation2 + $0xb0] sm:$0xff] %v88_v0  ;;  %v94_v3 = vld [vmem:[%s8776_s23 + $0x18] sm:$0xff]  ;;  %v96_v4 = vld [vmem:[%s8776_s23 + $0x20] sm:$0xff]  ;;  %v98_v5 = vld [vmem:[%s8776_s23 + $0x28] sm:$0xff] }
   0x3   :  { %9061 = sst [smem:[#allocation148_spill]] %s8755_s2  ;;  %91 = vst [vmem:[#allocation2 + $0x1b0] sm:$0xff] %v90_v1  ;;  %v100_v6 = vld [vmem:[%s8776_s23 + $0x30] sm:$0xff]  ;;  %v102_v7 = vld [vmem:[%s8776_s23 + $0x38] sm:$0xff]  ;;  %v104_v8 = vld [vmem:[%s8776_s23 + $0x40] sm:$0xff] }
   0x4   :  { %9062 = sst [smem:[#allocation149_spill]] %s8756_s3  ;;  %93 = vst [vmem:[#allocation2 + $0xd8] sm:$0xff] %v92_v2  ;;  %v106_v9 = vld [vmem:[%s8776_s23 + $0x48] sm:$0xff]  ;;  %v108_v10 = vld [vmem:[%s8776_s23 + $0x50] sm:$0xff]  ;;  %v110_v11 = vld [vmem:[%s8776_s23 + $0x58] sm:$0xff] }
   0x5   :  { %9063 = sst [smem:[#allocation150_spill]] %s8757_s4  ;;  %95 = vst [vmem:[#allocation2 + $0x18] sm:$0xff] %v94_v3  ;;  %v112_v12 = vld [vmem:[%s8776_s23 + $0x60] sm:$0xff]  ;;  %v114_v13 = vld [vmem:[%s8776_s23 + $0x68] sm:$0xff]  ;;  %v116_v14 = vld [vmem:[%s8776_s23 + $0x70] sm:$0xff] }
   0x6   :  { %9064 = sst [smem:[#allocation151_spill]] %s8758_s5  ;;  %97 = vst [vmem:[#allocation2 + $0x50] sm:$0xff] %v96_v4  ;;  %v118_v15 = vld [vmem:[%s8776_s23 + $0x78] sm:$0xff]  ;;  %v120_v16 = vld [vmem:[%s8776_s23 + $0x80] sm:$0xff]  ;;  %v122_v17 = vld [vmem:[%s8776_s23 + $0x88] sm:$0xff] }
   0x7   :  { %9065 = sst [smem:[#allocation152_spill]] %s8759_s6  ;;  %99 = vst [vmem:[#allocation2 + $0x168] sm:$0xff] %v98_v5  ;;  %v124_v18 = vld [vmem:[%s8776_s23 + $0x90] sm:$0xff]  ;;  %v126_v19 = vld [vmem:[%s8776_s23 + $0x98] sm:$0xff]  ;;  %v128_v20 = vld [vmem:[%s8776_s23 + $0xa0] sm:$0xff] }
   0x8   :  { %9066 = sst [smem:[#allocation153_spill]] %s8760_s7  ;;  %101 = vst [vmem:[#allocation2 + $0x130] sm:$0xff] %v100_v6  ;;  %v130_v21 = vld [vmem:[%s8776_s23 + $0xa8] sm:$0xff]  ;;  %v132_v22 = vld [vmem:[%s8776_s23 + $0xb0] sm:$0xff]  ;;  %v134_v23 = vld [vmem:[%s8776_s23 + $0xb8] sm:$0xff] }
   0x9   :  { %9067 = sst [smem:[#allocation154_spill]] %s8761_s8  ;;  %103 = vst [vmem:[#allocation2 + $0x48] sm:$0xff] %v102_v7  ;;  %v136_v24 = vld [vmem:[%s8776_s23 + $0xc0] sm:$0xff]  ;;  %v138_v25 = vld [vmem:[%s8776_s23 + $0xc8] sm:$0xff]  ;;  %v140_v26 = vld [vmem:[%s8776_s23 + $0xd0] sm:$0xff] }
   0xa   :  { %9068 = sst [smem:[#allocation155_spill]] %s8762_s9  ;;  %105 = vst [vmem:[#allocation2 + $0x180] sm:$0xff] %v104_v8  ;;  %v142_v27 = vld [vmem:[%s8776_s23 + $0xd8] sm:$0xff]  ;;  %v144_v28 = vld [vmem:[%s8776_s23 + $0xe0] sm:$0xff]  ;;  %v146_v29 = vld [vmem:[%s8776_s23 + $0xe8] sm:$0xff] }
   0xb   :  { %9069 = sst [smem:[#allocation156_spill]] %s8763_s10  ;;  %107 = vst [vmem:[#allocation2 + $0x110] sm:$0xff] %v106_v9  ;;  %v148_v30 = vld [vmem:[%s8776_s23 + $0xf0] sm:$0xff]  ;;  %v150_v31 = vld [vmem:[%s8776_s23 + $0xf8] sm:$0xff]  ;;  %v152_v32 = vld [vmem:[%s8776_s23 + $0x100] sm:$0xff] }
   0xc   :  { %109 = vst [vmem:[#allocation2 + $0x118] sm:$0xff] %v108_v10  ;;  %v154_v33 = vld [vmem:[%s8776_s23 + $0x108] sm:$0xff]  ;;  %v156_v34 = vld [vmem:[%s8776_s23 + $0x110] sm:$0xff]  ;;  %v158_v35 = vld [vmem:[%s8776_s23 + $0x118] sm:$0xff] }
   0xd   :  { %111 = vst [vmem:[#allocation2 + $0x98] sm:$0xff] %v110_v11  ;;  %v160_v36 = vld [vmem:[%s8776_s23 + $0x120] sm:$0xff]  ;;  %v162_v37 = vld [vmem:[%s8776_s23 + $0x128] sm:$0xff]  ;;  %v164_v38 = vld [vmem:[%s8776_s23 + $0x130] sm:$0xff] }
   0xe   :  { %113 = vst [vmem:[#allocation2 + $0x120] sm:$0xff] %v112_v12  ;;  %v166_v39 = vld [vmem:[%s8776_s23 + $0x138] sm:$0xff]  ;;  %v168_v40 = vld [vmem:[%s8776_s23 + $0x140] sm:$0xff]  ;;  %v170_v41 = vld [vmem:[%s8776_s23 + $0x148] sm:$0xff] }
   0xf   :  { %115 = vst [vmem:[#allocation2 + $0x150] sm:$0xff] %v114_v13  ;;  %v172_v42 = vld [vmem:[%s8776_s23 + $0x150] sm:$0xff]  ;;  %v174_v43 = vld [vmem:[%s8776_s23 + $0x158] sm:$0xff]  ;;  %v176_v44 = vld [vmem:[%s8776_s23 + $0x160] sm:$0xff] }
  0x10   :  { %117 = vst [vmem:[#allocation2 + $0x108] sm:$0xff] %v116_v14  ;;  %v178_v45 = vld [vmem:[%s8776_s23 + $0x168] sm:$0xff]  ;;  %v180_v46 = vld [vmem:[%s8776_s23 + $0x170] sm:$0xff]  ;;  %v182_v47 = vld [vmem:[%s8776_s23 + $0x178] sm:$0xff] }
  0x11   :  { %119 = vst [vmem:[#allocation2 + $0x60] sm:$0xff] %v118_v15  ;;  %v184_v48 = vld [vmem:[%s8776_s23 + $0x180] sm:$0xff]  ;;  %v186_v49 = vld [vmem:[%s8776_s23 + $0x188] sm:$0xff]  ;;  %v188_v50 = vld [vmem:[%s8776_s23 + $0x190] sm:$0xff] }
  0x12   :  { %121 = vst [vmem:[#allocation2 + $0xe0] sm:$0xff] %v120_v16  ;;  %v190_v51 = vld [vmem:[%s8776_s23 + $0x198] sm:$0xff]  ;;  %v192_v52 = vld [vmem:[%s8776_s23 + $0x1a0] sm:$0xff]  ;;  %v194_v53 = vld [vmem:[%s8776_s23 + $0x1a8] sm:$0xff] }
  0x13   :  { %123 = vst [vmem:[#allocation2 + $0x188] sm:$0xff] %v122_v17  ;;  %v196_v54 = vld [vmem:[%s8776_s23 + $0x1b0] sm:$0xff]  ;;  %v198_v55 = vld [vmem:[%s8776_s23 + $0x1b8] sm:$0xff]  ;;  %v200_v56 = vld [vmem:[%s8776_s23 + $0x1c0] sm:$0xff] }
  0x14   :  { %125 = vst [vmem:[#allocation2 + $0x138] sm:$0xff] %v124_v18  ;;  %v202_v57 = vld [vmem:[%s8776_s23 + $0x1c8] sm:$0xff]  ;;  %v204_v58 = vld [vmem:[%s8776_s23 + $0x1d0] sm:$0xff]  ;;  %v206_v59 = vld [vmem:[%s8776_s23 + $0x1d8] sm:$0xff] }
  0x15   :  { %127 = vst [vmem:[#allocation2 + $0x140] sm:$0xff] %v126_v19 }
  0x16   :  { %129 = vst [vmem:[#allocation2 + $0x80] sm:$0xff] %v128_v20 }
  0x17   :  { %131 = vst [vmem:[#allocation2 + $0x1a8] sm:$0xff] %v130_v21 }
  0x18   :  { %133 = vst [vmem:[#allocation2 + $0x1b8] sm:$0xff] %v132_v22 }
  0x19   :  { %135 = vst [vmem:[#allocation2 + $0x28] sm:$0xff] %v134_v23 }
  0x1a   :  { %137 = vst [vmem:[#allocation2 + $0xf0] sm:$0xff] %v136_v24 }
  0x1b   :  { %139 = vst [vmem:[#allocation2 + $0x158] sm:$0xff] %v138_v25 }
  0x1c   :  { %141 = vst [vmem:[#allocation2 + $0x128] sm:$0xff] %v140_v26 }
  0x1d   :  { %143 = vst [vmem:[#allocation2 + $0x1d8] sm:$0xff] %v142_v27 }
  0x1e   :  { %145 = vst [vmem:[#allocation2 + $0x8] sm:$0xff] %v144_v28 }
  0x1f   :  { %147 = vst [vmem:[#allocation2 + $0x170] sm:$0xff] %v146_v29 }
  0x20   :  { %149 = vst [vmem:[#allocation2 + $0xc0] sm:$0xff] %v148_v30 }
  0x21   :  { %151 = vst [vmem:[#allocation2 + $0xa0] sm:$0xff] %v150_v31 }
  0x22   :  { %153 = vst [vmem:[#allocation2 + $0x148] sm:$0xff] %v152_v32 }
  0x23   :  { %155 = vst [vmem:[#allocation2 + $0x1d0] sm:$0xff] %v154_v33 }
  0x24   :  { %157 = vst [vmem:[#allocation2 + $0x100] sm:$0xff] %v156_v34 }
  0x25   :  { %159 = vst [vmem:[#allocation2 + $0xf8] sm:$0xff] %v158_v35 }
  0x26   :  { %161 = vst [vmem:[#allocation2 + $0x40] sm:$0xff] %v160_v36 }
  0x27   :  { %163 = vst [vmem:[#allocation2 + $0xa8] sm:$0xff] %v162_v37 }
  0x28   :  { %165 = vst [vmem:[#allocation2 + $0x190] sm:$0xff] %v164_v38 }
  0x29   :  { %167 = vst [vmem:[#allocation2 + $0x1a0] sm:$0xff] %v166_v39 }
  0x2a   :  { %169 = vst [vmem:[#allocation2 + $0xb8] sm:$0xff] %v168_v40 }
  0x2b   :  { %171 = vst [vmem:[#allocation2] sm:$0xff] %v170_v41 }
  0x2c   :  { %173 = vst [vmem:[#allocation2 + $0x38] sm:$0xff] %v172_v42 }
  0x2d   :  { %175 = vst [vmem:[#allocation2 + $0x20] sm:$0xff] %v174_v43 }
  0x2e   :  { %177 = vst [vmem:[#allocation2 + $0x10] sm:$0xff] %v176_v44 }
  0x2f   :  { %179 = vst [vmem:[#allocation2 + $0x58] sm:$0xff] %v178_v45 }
  0x30   :  { %181 = vst [vmem:[#allocation2 + $0x88] sm:$0xff] %v180_v46 }
  0x31   :  { %183 = vst [vmem:[#allocation2 + $0xd0] sm:$0xff] %v182_v47 }
  0x32   :  { %185 = vst [vmem:[#allocation2 + $0x68] sm:$0xff] %v184_v48 }
  0x33   :  { %187 = vst [vmem:[#allocation2 + $0xc8] sm:$0xff] %v186_v49 }
  0x34   :  { %189 = vst [vmem:[#allocation2 + $0x198] sm:$0xff] %v188_v50 }
  0x35   :  { %191 = vst [vmem:[#allocation2 + $0xe8] sm:$0xff] %v190_v51 }
  0x36   :  { %193 = vst [vmem:[#allocation2 + $0x178] sm:$0xff] %v192_v52 }
  0x37   :  { %195 = vst [vmem:[#allocation2 + $0x70] sm:$0xff] %v194_v53 }
  0x38   :  { %197 = vst [vmem:[#allocation2 + $0x1c8] sm:$0xff] %v196_v54 }
  0x39   :  { %199 = vst [vmem:[#allocation2 + $0x90] sm:$0xff] %v198_v55 }
  0x3a   :  { %201 = vst [vmem:[#allocation2 + $0x160] sm:$0xff] %v200_v56 }
  0x3b   :  { %203 = vst [vmem:[#allocation2 + $0x30] sm:$0xff] %v202_v57 }
  0x3c   :  { %205 = vst [vmem:[#allocation2 + $0x78] sm:$0xff] %v204_v58 }
  0x3d   :  { %207 = vst [vmem:[#allocation2 + $0x1c0] sm:$0xff] %v206_v59 }
  0x3e   :  { %213 = vsyncadd [#allocation5], 7680  ;;  %v5556_v60 = vld [vmem:[%s8777_s24] sm:$0xff]  ;;  %v5561_v61 = vld [vmem:[%s8777_s24 + $0x8] sm:$0xff] }
  0x3f   :  { %9070 = vst [vmem:[#allocation12_spill] sm:$0xff] %v5556_v60  ;;  %v5566_v62 = vld [vmem:[%s8777_s24 + $0x10] sm:$0xff]  ;;  %v5571_v63 = vld [vmem:[%s8777_s24 + $0x18] sm:$0xff]  ;;  %v5576_v0 = vld [vmem:[%s8777_s24 + $0x20] sm:$0xff] }
  0x40   :  { %9071 = vst [vmem:[#allocation13_spill] sm:$0xff] %v5561_v61  ;;  %v5581_v1 = vld [vmem:[%s8777_s24 + $0x28] sm:$0xff]  ;;  %v5586_v2 = vld [vmem:[%s8777_s24 + $0x30] sm:$0xff]  ;;  %v5591_v3 = vld [vmem:[%s8777_s24 + $0x38] sm:$0xff] }
  0x41   :  { %9072 = vst [vmem:[#allocation14_spill] sm:$0xff] %v5566_v62  ;;  %v5596_v4 = vld [vmem:[%s8777_s24 + $0x40] sm:$0xff]  ;;  %v5601_v5 = vld [vmem:[%s8777_s24 + $0x48] sm:$0xff]  ;;  %v5606_v6 = vld [vmem:[%s8777_s24 + $0x50] sm:$0xff] }
  0x42   :  { %9073 = vst [vmem:[#allocation15_spill] sm:$0xff] %v5571_v63  ;;  %v5611_v7 = vld [vmem:[%s8777_s24 + $0x58] sm:$0xff]  ;;  %v5616_v8 = vld [vmem:[%s8777_s24 + $0x60] sm:$0xff]  ;;  %v5621_v9 = vld [vmem:[%s8777_s24 + $0x68] sm:$0xff] }
  0x43   :  { %9074 = vst [vmem:[#allocation16_spill] sm:$0xff] %v5576_v0  ;;  %v5626_v10 = vld [vmem:[%s8777_s24 + $0x70] sm:$0xff]  ;;  %v5631_v11 = vld [vmem:[%s8777_s24 + $0x78] sm:$0xff]  ;;  %v5636_v12 = vld [vmem:[%s8777_s24 + $0x80] sm:$0xff] }
  0x44   :  { %9075 = vst [vmem:[#allocation17_spill] sm:$0xff] %v5581_v1  ;;  %v5641_v13 = vld [vmem:[%s8777_s24 + $0x88] sm:$0xff]  ;;  %v5646_v14 = vld [vmem:[%s8777_s24 + $0x90] sm:$0xff]  ;;  %v5651_v15 = vld [vmem:[%s8777_s24 + $0x98] sm:$0xff] }
  0x45   :  { %9076 = vst [vmem:[#allocation18_spill] sm:$0xff] %v5586_v2  ;;  %v5656_v16 = vld [vmem:[%s8777_s24 + $0xa0] sm:$0xff]  ;;  %v5661_v17 = vld [vmem:[%s8777_s24 + $0xa8] sm:$0xff]  ;;  %v5666_v18 = vld [vmem:[%s8777_s24 + $0xb0] sm:$0xff] }
  0x46   :  { %9077 = vst [vmem:[#allocation19_spill] sm:$0xff] %v5591_v3  ;;  %v5671_v19 = vld [vmem:[%s8777_s24 + $0xb8] sm:$0xff]  ;;  %v5676_v20 = vld [vmem:[%s8777_s24 + $0xc0] sm:$0xff]  ;;  %v5681_v21 = vld [vmem:[%s8777_s24 + $0xc8] sm:$0xff] }
  0x47   :  { %9078 = vst [vmem:[#allocation20_spill] sm:$0xff] %v5596_v4  ;;  %v5686_v22 = vld [vmem:[%s8777_s24 + $0xd0] sm:$0xff]  ;;  %v5691_v23 = vld [vmem:[%s8777_s24 + $0xd8] sm:$0xff]  ;;  %v5696_v24 = vld [vmem:[%s8777_s24 + $0xe0] sm:$0xff] }
  0x48   :  { %9079 = vst [vmem:[#allocation21_spill] sm:$0xff] %v5601_v5  ;;  %v5701_v25 = vld [vmem:[%s8777_s24 + $0xe8] sm:$0xff]  ;;  %v5706_v26 = vld [vmem:[%s8777_s24 + $0xf0] sm:$0xff]  ;;  %v5711_v27 = vld [vmem:[%s8777_s24 + $0xf8] sm:$0xff] }
  0x49   :  { %9080 = vst [vmem:[#allocation22_spill] sm:$0xff] %v5606_v6  ;;  %v5716_v28 = vld [vmem:[%s8777_s24 + $0x100] sm:$0xff]  ;;  %v5721_v29 = vld [vmem:[%s8777_s24 + $0x108] sm:$0xff]  ;;  %v5726_v30 = vld [vmem:[%s8777_s24 + $0x110] sm:$0xff] }
  0x4a   :  { %9081 = vst [vmem:[#allocation23_spill] sm:$0xff] %v5611_v7  ;;  %v5731_v31 = vld [vmem:[%s8777_s24 + $0x118] sm:$0xff]  ;;  %v5736_v32 = vld [vmem:[%s8777_s24 + $0x120] sm:$0xff]  ;;  %v5741_v33 = vld [vmem:[%s8777_s24 + $0x128] sm:$0xff] }
  0x4b   :  { %9082 = vst [vmem:[#allocation24_spill] sm:$0xff] %v5616_v8  ;;  %v5746_v34 = vld [vmem:[%s8777_s24 + $0x130] sm:$0xff]  ;;  %v5751_v35 = vld [vmem:[%s8777_s24 + $0x138] sm:$0xff]  ;;  %v5756_v36 = vld [vmem:[%s8777_s24 + $0x140] sm:$0xff] }
  0x4c   :  { %9083 = vst [vmem:[#allocation25_spill] sm:$0xff] %v5621_v9  ;;  %v5761_v37 = vld [vmem:[%s8777_s24 + $0x148] sm:$0xff]  ;;  %v5766_v38 = vld [vmem:[%s8777_s24 + $0x150] sm:$0xff]  ;;  %v5771_v39 = vld [vmem:[%s8777_s24 + $0x158] sm:$0xff] }
  0x4d   :  { %9084 = vst [vmem:[#allocation26_spill] sm:$0xff] %v5626_v10  ;;  %v5776_v40 = vld [vmem:[%s8777_s24 + $0x160] sm:$0xff]  ;;  %v5781_v41 = vld [vmem:[%s8777_s24 + $0x168] sm:$0xff]  ;;  %v5786_v42 = vld [vmem:[%s8777_s24 + $0x170] sm:$0xff] }
  0x4e   :  { %9085 = vst [vmem:[#allocation27_spill] sm:$0xff] %v5631_v11  ;;  %v5791_v43 = vld [vmem:[%s8777_s24 + $0x178] sm:$0xff]  ;;  %v5796_v44 = vld [vmem:[%s8777_s24 + $0x180] sm:$0xff]  ;;  %v5801_v45 = vld [vmem:[%s8777_s24 + $0x188] sm:$0xff] }
  0x4f   :  { %9086 = vst [vmem:[#allocation28_spill] sm:$0xff] %v5636_v12  ;;  %v5806_v46 = vld [vmem:[%s8777_s24 + $0x190] sm:$0xff]  ;;  %v5811_v47 = vld [vmem:[%s8777_s24 + $0x198] sm:$0xff]  ;;  %v5816_v48 = vld [vmem:[%s8777_s24 + $0x1a0] sm:$0xff] }
  0x50   :  { %9087 = vst [vmem:[#allocation29_spill] sm:$0xff] %v5641_v13  ;;  %v5821_v49 = vld [vmem:[%s8777_s24 + $0x1a8] sm:$0xff]  ;;  %v5826_v50 = vld [vmem:[%s8777_s24 + $0x1b0] sm:$0xff]  ;;  %v5831_v51 = vld [vmem:[%s8777_s24 + $0x1b8] sm:$0xff] }
  0x51   :  { %9088 = vst [vmem:[#allocation30_spill] sm:$0xff] %v5646_v14  ;;  %v5836_v52 = vld [vmem:[%s8777_s24 + $0x1c0] sm:$0xff]  ;;  %v5841_v53 = vld [vmem:[%s8777_s24 + $0x1c8] sm:$0xff]  ;;  %v5846_v54 = vld [vmem:[%s8777_s24 + $0x1d0] sm:$0xff] }
  0x52   :  { %9089 = vst [vmem:[#allocation31_spill] sm:$0xff] %v5651_v15  ;;  %v5851_v55 = vld [vmem:[%s8777_s24 + $0x1d8] sm:$0xff] }
  0x53   :  { %9090 = vst [vmem:[#allocation32_spill] sm:$0xff] %v5656_v16 }
  0x54   :  { %9091 = vst [vmem:[#allocation33_spill] sm:$0xff] %v5661_v17 }
  0x55   :  { %9092 = vst [vmem:[#allocation34_spill] sm:$0xff] %v5666_v18 }
  0x56   :  { %9093 = vst [vmem:[#allocation35_spill] sm:$0xff] %v5671_v19 }
  0x57   :  { %9094 = vst [vmem:[#allocation36_spill] sm:$0xff] %v5676_v20 }
  0x58   :  { %9095 = vst [vmem:[#allocation37_spill] sm:$0xff] %v5681_v21 }
  0x59   :  { %9096 = vst [vmem:[#allocation38_spill] sm:$0xff] %v5686_v22 }
  0x5a   :  { %9097 = vst [vmem:[#allocation39_spill] sm:$0xff] %v5691_v23 }
  0x5b   :  { %9098 = vst [vmem:[#allocation40_spill] sm:$0xff] %v5696_v24 }
  0x5c   :  { %9099 = vst [vmem:[#allocation41_spill] sm:$0xff] %v5701_v25 }
  0x5d   :  { %9100 = vst [vmem:[#allocation42_spill] sm:$0xff] %v5706_v26 }
  0x5e   :  { %9101 = vst [vmem:[#allocation43_spill] sm:$0xff] %v5711_v27 }
  0x5f   :  { %9102 = vst [vmem:[#allocation44_spill] sm:$0xff] %v5716_v28 }
  0x60   :  { %9103 = vst [vmem:[#allocation45_spill] sm:$0xff] %v5721_v29 }
  0x61   :  { %9104 = vst [vmem:[#allocation46_spill] sm:$0xff] %v5726_v30 }
  0x62   :  { %9105 = vst [vmem:[#allocation47_spill] sm:$0xff] %v5731_v31 }
  0x63   :  { %9106 = vst [vmem:[#allocation48_spill] sm:$0xff] %v5736_v32 }
  0x64   :  { %9107 = vst [vmem:[#allocation49_spill] sm:$0xff] %v5741_v33 }
  0x65   :  { %9108 = vst [vmem:[#allocation50_spill] sm:$0xff] %v5746_v34 }
  0x66   :  { %9109 = vst [vmem:[#allocation51_spill] sm:$0xff] %v5751_v35 }
  0x67   :  { %9110 = vst [vmem:[#allocation52_spill] sm:$0xff] %v5756_v36 }
  0x68   :  { %9111 = vst [vmem:[#allocation53_spill] sm:$0xff] %v5761_v37 }
  0x69   :  { %9112 = vst [vmem:[#allocation54_spill] sm:$0xff] %v5766_v38 }
  0x6a   :  { %9113 = vst [vmem:[#allocation55_spill] sm:$0xff] %v5771_v39 }
  0x6b   :  { %9114 = vst [vmem:[#allocation56_spill] sm:$0xff] %v5776_v40 }
  0x6c   :  { %9115 = vst [vmem:[#allocation57_spill] sm:$0xff] %v5781_v41 }
  0x6d   :  { %9116 = vst [vmem:[#allocation58_spill] sm:$0xff] %v5786_v42 }
  0x6e   :  { %9117 = vst [vmem:[#allocation59_spill] sm:$0xff] %v5791_v43 }
  0x6f   :  { %9118 = vst [vmem:[#allocation60_spill] sm:$0xff] %v5796_v44 }
  0x70   :  { %9119 = vst [vmem:[#allocation61_spill] sm:$0xff] %v5801_v45 }
  0x71   :  { %9120 = vst [vmem:[#allocation62_spill] sm:$0xff] %v5806_v46 }
  0x72   :  { %9121 = vst [vmem:[#allocation63_spill] sm:$0xff] %v5811_v47 }
  0x73   :  { %9122 = vst [vmem:[#allocation64_spill] sm:$0xff] %v5816_v48 }
  0x74   :  { %9123 = vst [vmem:[#allocation65_spill] sm:$0xff] %v5821_v49 }
  0x75   :  { %9124 = vst [vmem:[#allocation66_spill] sm:$0xff] %v5826_v50 }
  0x76   :  { %9125 = vst [vmem:[#allocation67_spill] sm:$0xff] %v5831_v51 }
  0x77   :  { %9126 = vst [vmem:[#allocation68_spill] sm:$0xff] %v5836_v52 }
  0x78   :  { %9127 = vst [vmem:[#allocation69_spill] sm:$0xff] %v5841_v53 }
  0x79   :  { %9128 = vst [vmem:[#allocation70_spill] sm:$0xff] %v5846_v54 }
  0x7a   :  { %9129 = vst [vmem:[#allocation71_spill] sm:$0xff] %v5851_v55 }
  0x7b   :  { %350 = vsyncadd [#allocation5 + $0x1], 7680  ;;  %v362_v56 = vld [vmem:[%s8778_s25] sm:$0xff]  ;;  %v364_v57 = vld [vmem:[%s8778_s25 + $0x8] sm:$0xff]  ;;  %s9130_s23 = sld [smem:[#allocation156_spill]]  ;;  %s5227_s5 = smov 112  }
  0x7c   :  { %363 = vst [vmem:[#allocation4] sm:$0xff] %v362_v56  ;;  %v366_v58 = vld [vmem:[%s8778_s25 + $0x10] sm:$0xff]  ;;  %v368_v59 = vld [vmem:[%s8778_s25 + $0x18] sm:$0xff]  ;;  %v370_v55 = vld [vmem:[%s8778_s25 + $0x20] sm:$0xff]  ;;  %s9131_s9 = sld [smem:[#allocation146_spill]] }
  0x7d   :  { %365 = vst [vmem:[#allocation4 + $0x8] sm:$0xff] %v364_v57  ;;  %v372_v54 = vld [vmem:[%s8778_s25 + $0x28] sm:$0xff]  ;;  %v374_v56 = vld [vmem:[%s8778_s25 + $0x30] sm:$0xff]  ;;  %v376_v53 = vld [vmem:[%s8778_s25 + $0x38] sm:$0xff] }
  0x7e   :  { %367 = vst [vmem:[#allocation4 + $0x10] sm:$0xff] %v366_v58  ;;  %v378_v57 = vld [vmem:[%s8778_s25 + $0x40] sm:$0xff]  ;;  %v380_v58 = vld [vmem:[%s8778_s25 + $0x48] sm:$0xff] }
  0x7f   :  { %369 = vst [vmem:[#allocation4 + $0x18] sm:$0xff] %v368_v59  ;;  %v382_v59 = vld [vmem:[%s8778_s25 + $0x50] sm:$0xff] }
  0x80   :  { %371 = vst [vmem:[#allocation4 + $0x20] sm:$0xff] %v370_v55  ;;  %v384_v55 = vld [vmem:[%s8778_s25 + $0x58] sm:$0xff] }
  0x81   :  { %373 = vst [vmem:[#allocation4 + $0x28] sm:$0xff] %v372_v54  ;;  %v386_v54 = vld [vmem:[%s8778_s25 + $0x60] sm:$0xff] }
  0x82   :  { %375 = vst [vmem:[#allocation4 + $0x30] sm:$0xff] %v374_v56  ;;  %v388_v56 = vld [vmem:[%s8778_s25 + $0x68] sm:$0xff] }
  0x83   :  { %377 = vst [vmem:[#allocation4 + $0x38] sm:$0xff] %v376_v53  ;;  %v390_v53 = vld [vmem:[%s8778_s25 + $0x70] sm:$0xff] }
  0x84   :  { %379 = vst [vmem:[#allocation4 + $0x40] sm:$0xff] %v378_v57  ;;  %v392_v57 = vld [vmem:[%s8778_s25 + $0x78] sm:$0xff] }
  0x85   :  { %381 = vst [vmem:[#allocation4 + $0x48] sm:$0xff] %v380_v58  ;;  %v394_v58 = vld [vmem:[%s8778_s25 + $0x80] sm:$0xff] }
  0x86   :  { %383 = vst [vmem:[#allocation4 + $0x50] sm:$0xff] %v382_v59  ;;  %v396_v59 = vld [vmem:[%s8778_s25 + $0x88] sm:$0xff] }
  0x87   :  { %385 = vst [vmem:[#allocation4 + $0x58] sm:$0xff] %v384_v55  ;;  %v398_v55 = vld [vmem:[%s8778_s25 + $0x90] sm:$0xff] }
  0x88   :  { %387 = vst [vmem:[#allocation4 + $0x60] sm:$0xff] %v386_v54  ;;  %v400_v54 = vld [vmem:[%s8778_s25 + $0x98] sm:$0xff] }
  0x89   :  { %389 = vst [vmem:[#allocation4 + $0x68] sm:$0xff] %v388_v56  ;;  %v402_v56 = vld [vmem:[%s8778_s25 + $0xa0] sm:$0xff] }
  0x8a   :  { %391 = vst [vmem:[#allocation4 + $0x70] sm:$0xff] %v390_v53  ;;  %v404_v53 = vld [vmem:[%s8778_s25 + $0xa8] sm:$0xff] }
  0x8b   :  { %393 = vst [vmem:[#allocation4 + $0x78] sm:$0xff] %v392_v57  ;;  %v406_v57 = vld [vmem:[%s8778_s25 + $0xb0] sm:$0xff] }
  0x8c   :  { %395 = vst [vmem:[#allocation4 + $0x80] sm:$0xff] %v394_v58  ;;  %v408_v58 = vld [vmem:[%s8778_s25 + $0xb8] sm:$0xff] }
  0x8d   :  { %397 = vst [vmem:[#allocation4 + $0x88] sm:$0xff] %v396_v59  ;;  %v410_v59 = vld [vmem:[%s8778_s25 + $0xc0] sm:$0xff] }
  0x8e   :  { %399 = vst [vmem:[#allocation4 + $0x90] sm:$0xff] %v398_v55  ;;  %v412_v55 = vld [vmem:[%s8778_s25 + $0xc8] sm:$0xff] }
  0x8f   :  { %401 = vst [vmem:[#allocation4 + $0x98] sm:$0xff] %v400_v54  ;;  %v414_v54 = vld [vmem:[%s8778_s25 + $0xd0] sm:$0xff] }
  0x90   :  { %403 = vst [vmem:[#allocation4 + $0xa0] sm:$0xff] %v402_v56  ;;  %v416_v56 = vld [vmem:[%s8778_s25 + $0xd8] sm:$0xff] }
  0x91   :  { %405 = vst [vmem:[#allocation4 + $0xa8] sm:$0xff] %v404_v53  ;;  %v418_v53 = vld [vmem:[%s8778_s25 + $0xe0] sm:$0xff] }
  0x92   :  { %407 = vst [vmem:[#allocation4 + $0xb0] sm:$0xff] %v406_v57  ;;  %v420_v57 = vld [vmem:[%s8778_s25 + $0xe8] sm:$0xff] }
  0x93   :  { %409 = vst [vmem:[#allocation4 + $0xb8] sm:$0xff] %v408_v58  ;;  %v422_v58 = vld [vmem:[%s8778_s25 + $0xf0] sm:$0xff] }
  0x94   :  { %411 = vst [vmem:[#allocation4 + $0xc0] sm:$0xff] %v410_v59  ;;  %v424_v59 = vld [vmem:[%s8778_s25 + $0xf8] sm:$0xff]  ;;  %s5226_s25 = smov 111  }
  0x95   :  { %413 = vst [vmem:[#allocation4 + $0xc8] sm:$0xff] %v412_v55  ;;  %v433_v55 = vld [vmem:[%s9130_s23] sm:$0x3] }
  0x96   :  { %415 = vst [vmem:[#allocation4 + $0xd0] sm:$0xff] %v414_v54  ;;  %v432_v54 = vld [vmem:[%s9131_s9] sm:$0x3] }
  0x97   :  { %417 = vst [vmem:[#allocation4 + $0xd8] sm:$0xff] %v416_v56  ;;  %v448_v56 = vperm.slane %v433_v55, 0  ;;  %v5955_v52 = vperm.slane %v432_v54, 0 }
  0x98   :  { %419 = vst [vmem:[#allocation4 + $0xe0] sm:$0xff] %v418_v53  ;;  %v434_v53 = vld [vmem:[%s8764_s11] sm:$0x3] }
  0x99   :  { %421 = vst [vmem:[#allocation4 + $0xe8] sm:$0xff] %v420_v57  ;;  %v463_v51 = vperm.slane %v434_v53, 0  ;;  %450 = vrot.lane.b32.xlu1 %v448_v56, %s5226_s25  ;;  %441 = vrot.lane.b32.xlu0 %v5955_v52, %s5227_s5 }
  0x9a   :  { %423 = vst [vmem:[#allocation4 + $0xf0] sm:$0xff] %v422_v58 }
  0x9b   :  { %425 = vst [vmem:[#allocation4 + $0xf8] sm:$0xff] %v424_v59 }
  0x9c   :  { %431 = vsyncadd [#allocation5 + $0x2], 4096  ;;  %s5228_s10 = smov 1   ;;  %v8795_v57 = vmov 0   ;;  %v449_v58 = vperm.slane %v433_v55, 1  ;;  %v464_v59 = vperm.slane %v434_v53, 1 }
  0x9d   :  { %465 = vrot.lane.b32.xlu2 %v463_v51, %s5228_s10  ;;  %5071 = vset.pattern.permute.xlu1 %v8795_v57  ;;  %s9132_s1 = sld [smem:[#allocation147_spill]]  ;;  %s5230_s4 = smov 127   ;;  %vm440_vm0 = vcmask 1048448   ;;  %vm469_vm1 = vcmask 7168   ;;  %vm454_vm2 = vcmask 908288   ;;  %vm531_vm3 = vcmask 138240  }
  0x9e   :  { %5072 = vset.pattern.permute.xlu2 %v8795_v57  ;;  %5070 = vset.pattern.permute.xlu0 %v8795_v57  ;;  %s5231_s11 = smov 17   ;;  %s9134_s24 = sld [smem:[#allocation149_spill]]  ;;  %vm575_vm4 = vcmask 1039360   ;;  %vm772_vm5 = vcmask 916480   ;;  %vm806_vm6 = vcmask 1048512   ;;  %vm856_vm7 = vcmask 72704  }
  0x9f   :  { %s5233_s7 = smov 119   ;;  %s9135_s29 = sld [smem:[#allocation151_spill]]  ;;  %vm861_vm8 = vcmask 130048   ;;  %vm1175_vm9 = vcmask 1043456   ;;  %vm1168_vm10 = vcmask 982016   ;;  %vm1200_vm11 = vcmask 1048032  }
  0xa0   :  { %s9136_s9 = sld [smem:[#allocation152_spill]]  ;;  %vm1276_vm12 = vcmask 261120   ;;  %vm1761_vm13 = vcmask 1045504   ;;  %vm1748_vm14 = vcmask 490496  }
  0xa1   :  { %452 = vrot.lane.b32.xlu1 %v449_v58, %s5226_s25  ;;  %s9133_s25 = sld [smem:[#allocation148_spill]] }
  0xa2   :  { %s9137_s23 = sld [smem:[#allocation150_spill]] }
  0xa3   :  { %v493_v56 = vld [vmem:[%s9132_s1 + $0x8] sm:$0xff]  ;;  %v4009_v51 = vld [vmem:[%s9132_s1 + $0x20] sm:$0xff]  ;;  %v4007_v53 = vld [vmem:[%s9132_s1 + $0x10] sm:$0xff]  ;;  %s9138_s30 = sld [smem:[#allocation154_spill]] }
  0xa4   :  { %v4010_v50 = vld [vmem:[%s9132_s1 + $0x28] sm:$0xff]  ;;  %s9140_s28 = sld [smem:[#allocation153_spill]] }
  0xa5   :  { %467 = vrot.lane.b32.xlu2 %v464_v59, %s5228_s10 }
  0xa7   :  { %v586_v43 = vld [vmem:[%s9133_s25] sm:$0xff] }
  0xa9   :  { %501 = vperm.xlu1 %5071, %v493_v56   ;;  %v5981_v56 = vperm.slane %v432_v54, 1 }
  0xad   :  { %549 = vperm.xlu2 %5072, %v4009_v51  }
  0xb1   :  { %554 = vperm.xlu1 %5071, %v4010_v50  }
  0xb5   :  { %480 = vperm.xlu2 %5072, %v4007_v53   ;;  %v492_v53 = vld [vmem:[%s9132_s1] sm:$0xff] }
  0xf7   :  { %v466_v55 = vpop.permute.xlu2 %465 }
  0xf8   :  { %v473_v59 = vmul.f32 %v466_v55, %v5955_v52 }
  0xfa   :  { %v557_v57 = vperm.slane %v473_v59, 0 }
  0xff   :  { %v468_v58 = vpop.permute.xlu2 %467 }
 0x100   :  { %v470_v54 = vsel %vm469_vm1, %v466_v55, %v468_v58 }
 0x107   :  { %v550_v49 = vpop.permute.xlu2 %549 }
 0x108   :  { %v559_v48 = vmul.f32 %v557_v57, %v550_v49 }
 0x10a   :  { %567 = vrot.lane.b32.xlu2 %v559_v48, %s5230_s4  ;;  %v4008_v48 = vld [vmem:[%s9132_s1 + $0x18] sm:$0xff] }
 0x10b   :  { %v451_v51 = vpop.permute.xlu1 %450  ;;  %v442_v50 = vpop.permute.xlu0 %441 }
 0x10c   :  { %v443_v47 = vsel %vm440_vm0, %v442_v50, %v5981_v56 }
 0x10d   :  { %444 = vrot.lane.b32.xlu0 %v443_v47, %s5227_s5  ;;  %v474_v45 = vmul.f32 %v470_v54, %v443_v47  ;;  %v459_v39 = vmul.f32 %v451_v51, %v443_v47 }
 0x10f   :  { %v558_v44 = vperm.slane %v474_v45, 0  ;;  %v603_v45 = vld [vmem:[%s9134_s24 + $0x8] sm:$0xff] }
 0x111   :  { %v560_v55 = vmul.f32 %v558_v44, %v550_v49 }
 0x113   :  { %v453_v59 = vpop.permute.xlu1 %452 }
 0x114   :  { %v455_v47 = vsel %vm454_vm2, %v451_v51, %v453_v59  ;;  %v587_v51 = vld [vmem:[%s9133_s25 + $0x8] sm:$0xff] }
 0x115   :  { %496 = vperm.xlu0 %5070, %v492_v53   ;;  %v504_v53 = vperm.slane %v459_v39, 0 }
 0x11b   :  { %v502_v46 = vpop.permute.xlu1 %501 }
 0x11c   :  { %v510_v38 = vmul.f32 %v504_v53, %v502_v46 }
 0x11d   :  { %485 = vperm.xlu0 %5070, %v4008_v48  }
 0x123   :  { %v555_v42 = vpop.permute.xlu1 %554 }
 0x124   :  { %v561_v41 = vmul.f32 %v557_v57, %v555_v42  ;;  %v562_v40 = vmul.f32 %v558_v44, %v555_v42 }
 0x125   :  { %590 = vperm.xlu0 %5070, %v586_v43  }
 0x126   :  { %571 = vrot.lane.b32.xlu1 %v561_v41, %s5230_s4  ;;  %573 = vrot.lane.b32.xlu2 %v562_v40, %s5230_s4 }
 0x12d   :  { %525 = vrot.lane.b32.xlu0 %v510_v38, %s5231_s11  ;;  %v602_v38 = vld [vmem:[%s9134_s24] sm:$0xff] }
 0x135   :  { %569 = vrot.lane.b32.xlu0 %v560_v55, %s5230_s4 }
 0x13d   :  { %611 = vperm.xlu0 %5070, %v603_v45  }
 0x17f   :  { %v445_v42 = vpop.permute.xlu0 %444 }
 0x180   :  { %v446_v43 = vsel %vm440_vm0, %v445_v42, %v442_v50  ;;  %v461_v44 = vmul.f32 %v453_v59, %v445_v42 }
 0x181   :  { %v460_v41 = vmul.f32 %v455_v47, %v446_v43 }
 0x182   :  { %v506_v48 = vperm.slane %v461_v44, 0 }
 0x183   :  { %v505_v57 = vperm.slane %v460_v41, 0 }
 0x184   :  { %v512_v50 = vmul.f32 %v506_v48, %v502_v46 }
 0x185   :  { %v511_v49 = vmul.f32 %v505_v57, %v502_v46 }
 0x187   :  { %v497_v40 = vpop.permute.xlu0 %496 }
 0x188   :  { %v507_v39 = vmul.f32 %v504_v53, %v497_v40  ;;  %v508_v58 = vmul.f32 %v505_v57, %v497_v40  ;;  %v509_v54 = vmul.f32 %v506_v48, %v497_v40  ;;  %v481_v53 = vpop.permute.xlu2 %480 }
 0x18a   :  { %519 = vrot.lane.b32.xlu1 %v507_v39, %s5231_s11  ;;  %521 = vrot.lane.b32.xlu2 %v508_v58, %s5231_s11 }
 0x18f   :  { %v486_v45 = vpop.permute.xlu0 %485 }
 0x190   :  { %v568_v55 = vpop.permute.xlu2 %567  ;;  %v491_v40 = vmul.f32 %v486_v45, %v5981_v56 }
 0x192   :  { %527 = vrot.lane.b32.xlu1 %v511_v49, %s5231_s11  ;;  %606 = vperm.xlu2 %5072, %v602_v38   ;;  %v488_v38 = vmul.f32 %v481_v53, %v5955_v52 }
 0x197   :  { %v591_v47 = vpop.permute.xlu0 %590 }
 0x198   :  { %v574_v43 = vpop.permute.xlu2 %573  ;;  %v572_v59 = vpop.permute.xlu1 %571 }
 0x199   :  { %v577_v33 = vsel %vm575_vm4, %v572_v59, %v574_v43 }
 0x19a   :  { %595 = vperm.xlu1 %5071, %v587_v51   ;;  %529 = vrot.lane.b32.xlu2 %v512_v50, %s5231_s11  ;;  %v490_v50 = vmul.f32 %v486_v45, %v5955_v52 }
 0x19f   :  { %v526_v42 = vpop.permute.xlu0 %525 }
 0x1a2   :  { %523 = vrot.lane.b32.xlu1 %v509_v54, %s5231_s11  ;;  %s9139_s11 = sld [smem:[#allocation155_spill]] }
 0x1a7   :  { %v570_v46 = vpop.permute.xlu0 %569 }
 0x1a8   :  { %v576_v49 = vsel %vm575_vm4, %v568_v55, %v570_v46 }
 0x1af   :  { %v612_v29 = vpop.permute.xlu0 %611 }
 0x1e4   :  { %v522_v41 = vpop.permute.xlu2 %521 }
 0x1ec   :  { %v607_v57 = vpop.permute.xlu2 %606 }
 0x1f4   :  { %v530_v48 = vpop.permute.xlu2 %529 }
 0x1fc   :  { %v520_v39 = vpop.permute.xlu1 %519 }
 0x1fd   :  { %v532_v58 = vsel %vm531_vm3, %v520_v39, %v522_v41 }
 0x1fe   :  { %v540_v44 = vadd.f32 %v532_v58, %v488_v38 }
 0x200   :  { %v582_v54 = vadd.f32 %v576_v49, %v540_v44 }
 0x202   :  { %v598_v34 = vmul.f32 %v591_v47, %v582_v54  ;;  %v4630_v54 = vld [vmem:[%s8769_s16 + $0x18] sm:$0xff] }
 0x204   :  { %v528_v51 = vpop.permute.xlu1 %527  ;;  %v614_v31 = vadd.f32 %v607_v57, %v598_v34 }
 0x205   :  { %v534_v37 = vsel %vm531_vm3, %v526_v42, %v528_v51  ;;  %v535_v36 = vsel %vm531_vm3, %v528_v51, %v530_v48  ;;  %v4639_v48 = vld [vmem:[%s8769_s16 + $0x60] sm:$0xff] }
 0x206   :  { %v543_v35 = vadd.f32 %v535_v36, %v491_v40  ;;  %v542_v39 = vadd.f32 %v534_v37, %v490_v50  ;;  %v6018_v52 = vmax.f32 %v614_v31, 0.0  ;;  %v489_v36 = vmul.f32 %v481_v53, %v5981_v56  ;;  %v4631_v51 = vld [vmem:[%s8769_s16 + $0x20] sm:$0xff]  ;;  %v4638_v50 = vld [vmem:[%s8769_s16 + $0x58] sm:$0xff] }
 0x208   :  { %v584_v58 = vadd.f32 %v577_v33, %v542_v39  ;;  %v585_v38 = vadd.f32 %v574_v43, %v543_v35  ;;  %v4637_v39 = vld [vmem:[%s8769_s16 + $0x50] sm:$0xff] }
 0x20c   :  { %v596_v32 = vpop.permute.xlu1 %595 }
 0x20d   :  { %v600_v30 = vmul.f32 %v596_v32, %v584_v58  ;;  %v601_v55 = vmul.f32 %v596_v32, %v585_v38  ;;  %v4629_v58 = vld [vmem:[%s8769_s16 + $0x10] sm:$0xff]  ;;  %v4636_v38 = vld [vmem:[%s8769_s16 + $0x48] sm:$0xff] }
 0x20f   :  { %v616_v28 = vadd.f32 %v612_v29, %v600_v30  ;;  %v617_v43 = vadd.f32 %v612_v29, %v601_v55  ;;  %v4634_v29 = vld [vmem:[%s8769_s16 + $0x38] sm:$0xff]  ;;  %v4628_v55 = vld [vmem:[%s8769_s16 + $0x8] sm:$0xff] }
 0x210   :  { %776 = vmatpush.bf16.msra.mxu0 %v4634_v29 }
 0x211   :  { %v6016_v27 = vmax.f32 %v616_v28, 0.0  ;;  %v621_v28 = vmax.f32 %v617_v43, 0.0 }
 0x213   :  { %v5073_v45 = vpack.i.bf16 %v6016_v27, %v6018_v52 }
 0x214   :  { %v524_v37 = vpop.permute.xlu1 %523 }
 0x215   :  { %v533_v59 = vsel %vm531_vm3, %v522_v41, %v524_v37  ;;  %5074 = vrot.lane.b32.xlu0 %v5073_v45, %s5227_s5  ;;  %v4633_v41 = vld [vmem:[%s8769_s16 + $0x30] sm:$0xff]  ;;  %v4635_v45 = vld [vmem:[%s8769_s16 + $0x40] sm:$0xff] }
 0x216   :  { %v541_v33 = vadd.f32 %v533_v59, %v489_v36  ;;  %777 = vmatpush.bf16.msra.mxu0 %v4633_v41  ;;  %v4627_v36 = vld [vmem:[%s8769_s16] sm:$0xff] }
 0x218   :  { %v583_v34 = vadd.f32 %v570_v46, %v541_v33  ;;  %v4632_v46 = vld [vmem:[%s8769_s16 + $0x28] sm:$0xff] }
 0x21a   :  { %v599_v35 = vmul.f32 %v591_v47, %v583_v34  ;;  %v4641_v47 = vld [vmem:[%s8769_s16 + $0x70] sm:$0xff]  ;;  %778 = vmatpush.bf16.msra.mxu0 %v4632_v46 }
 0x21b   :  { %791 = vmatpush.bf16.msra.mxu1 %v4641_v47 }
 0x21c   :  { %v615_v32 = vadd.f32 %v607_v57, %v599_v35  ;;  %v4640_v57 = vld [vmem:[%s8769_s16 + $0x68] sm:$0xff]  ;;  %s5232_s16 = smov 120  }
 0x21e   :  { %v619_v42 = vmax.f32 %v615_v32, 0.0  ;;  %779 = vmatpush.bf16.msra.mxu0 %v4631_v51 }
 0x21f   :  { %792 = vmatpush.bf16.msra.mxu1 %v4640_v57 }
 0x222   :  { %780 = vmatpush.bf16.msra.mxu0 %v4630_v54 }
 0x223   :  { %793 = vmatpush.bf16.msra.mxu1 %v4639_v48 }
 0x226   :  { %781 = vmatpush.bf16.msra.mxu0 %v4629_v58 }
 0x227   :  { %794 = vmatpush.bf16.msra.mxu1 %v4638_v50  ;;  %v5214_v50 = vld [vmem:[%s8766_s13] ss:$0 sm:$0xff] }
 0x22a   :  { %782 = vmatpush.bf16.msra.mxu0 %v4628_v55 }
 0x22b   :  { %795 = vmatpush.bf16.msra.mxu1 %v4637_v39 }
 0x22e   :  { %783 = vmatpush.bf16.msra.mxu0 %v4627_v36  ;;  %v1002_v36 = vld [vmem:[%s9135_s29] sm:$0xff] }
 0x22f   :  { %796 = vmatpush.bf16.msra.mxu1 %v4636_v38 }
 0x233   :  { %797 = vmatpush.bf16.msra.mxu1 %v4635_v45 }
 0x287   :  { %v5075_v30 = vpop.permute.xlu0 %5074 }
 0x288   :  { %v5077_v31 = vunpack.i.h.bf16 %v5075_v30  ;;  %v5076_v44 = vunpack.i.l.bf16 %v5075_v30 }
 0x28a   :  { %v626_v40 = vsel %vm440_vm0, %v5076_v44, %v619_v42  ;;  %v627_v49 = vsel %vm440_vm0, %v5077_v31, %v621_v28 }
 0x28b   :  { %v5078_v56 = vpack.i.bf16 %v626_v40, %v6018_v52  ;;  %v5083_v53 = vpack.i.bf16 %v627_v49, %v6016_v27 }
 0x28d   :  { %5079 = vrot.lane.b32.xlu1 %v5078_v56, %s5230_s4  ;;  %5084 = vrot.lane.b32.xlu2 %v5083_v53, %s5230_s4 }
 0x2e7   :  { %v5085_v37 = vpop.permute.xlu2 %5084 }
 0x2e8   :  { %v5087_v59 = vunpack.i.h.bf16 %v5085_v37  ;;  %v5086_v33 = vunpack.i.l.bf16 %v5085_v37 }
 0x2ea   :  { %v641_v43 = vsel %vm575_vm4, %v5086_v33, %v5087_v59  ;;  %v649_v30 = vmax.f32 %v621_v28, %v5087_v59 }
 0x2eb   :  { %v648_v49 = vmax.f32 %v6016_v27, %v641_v43  ;;  %v5213_v27 = vld [vmem:[%s8765_s12] ss:$0 sm:$0xff]  ;;  %s5234_s12 = smov 9  }
 0x2ff   :  { %v5080_v34 = vpop.permute.xlu1 %5079 }
 0x300   :  { %v5082_v35 = vunpack.i.h.bf16 %v5080_v34  ;;  %v5081_v32 = vunpack.i.l.bf16 %v5080_v34 }
 0x302   :  { %v647_v31 = vmax.f32 %v619_v42, %v5082_v35  ;;  %v640_v44 = vsel %vm575_vm4, %v5081_v32, %v5082_v35 }
 0x303   :  { %v646_v40 = vmax.f32 %v6018_v52, %v640_v44 }
 0x304   :  { %v651_v56 = vpack.c.bf16 %v649_v30, %v647_v31  ;;  %v1031_v30 = vld [vmem:[%s9136_s9 + $0x8] sm:$0xff] }
 0x305   :  { %v650_v53 = vpack.c.bf16 %v648_v49, %v646_v40  ;;  %v1030_v40 = vld [vmem:[%s9136_s9] sm:$0xff]  ;;  %v1032_v49 = vld [vmem:[%s9136_s9 + $0x10] sm:$0xff] }
 0x306   :  { %4071 = vmatmul.msk.bf16.vlgmr.msra.gmra.mxu1 %vm772_vm5, %v651_v56  ;;  %v1003_v56 = vld [vmem:[%s9135_s29 + $0x8] sm:$0xff] }
 0x307   :  { %784 = vmatmul.bf16.vlgmr.msra.gmra.mxu0 %v650_v53  ;;  %v1005_v53 = vld [vmem:[%s9135_s29 + $0x18] sm:$0xff] }
 0x383   :  { %v799_v29 = vpop.f32.mrf.mxu1 }
 0x384   :  { %v785_v47 = vpop.f32.mrf.mxu0 }
 0x385   :  { %v6080_v41 = vadd.f32 %v799_v29, %v785_v47  ;;  %v1004_v29 = vld [vmem:[%s9135_s29 + $0x10] sm:$0xff]  ;;  %v1033_v47 = vld [vmem:[%s9136_s9 + $0x18] sm:$0xff] }
 0x387   :  { %807 = vrot.lane.b32.xlu1 %v6080_v41, %s5232_s16 }
 0x38b   :  { %v801_v28 = vpop.f32.mrf.mxu1 }
 0x38c   :  { %v787_v42 = vpop.f32.mrf.mxu0 }
 0x38d   :  { %v6084_v57 = vadd.f32 %v801_v28, %v787_v42 }
 0x38f   :  { %810 = vrot.lane.b32.xlu0 %v6084_v57, %s5232_s16 }
 0x397   :  { %821 = vrot.lane.b32.xlu0 %v5213_v27, %s5233_s7 }
 0x3f9   :  { %v808_v52 = vpop.permute.xlu1 %807 }
 0x3fa   :  { %v809_v46 = vsel %vm806_vm6, %v808_v52, %v6080_v41 }
 0x3fb   :  { %813 = vrot.lane.b32.xlu1 %v809_v46, %s5232_s16 }
 0x401   :  { %v811_v48 = vpop.permute.xlu0 %810 }
 0x402   :  { %v812_v51 = vsel %vm806_vm6, %v811_v48, %v6084_v57 }
 0x403   :  { %815 = vrot.lane.b32.xlu2 %v812_v51, %s5232_s16 }
 0x409   :  { %v822_v54 = vpop.permute.xlu0 %821 }
 0x40b   :  { %830 = vrot.lane.b32.xlu2 %v5214_v50, %s5228_s10 }
 0x45d   :  { %v816_v39 = vpop.permute.xlu2 %815 }
 0x45e   :  { %v818_v58 = vsel %vm806_vm6, %v816_v39, %v6084_v57  ;;  %v827_v38 = vmul.f32 %v822_v54, %v816_v39  ;;  %v843_v39 = vld [vmem:[%s9137_s23 + $0x18] sm:$0xff] }
 0x45f   :  { %v826_v55 = vmul.f32 %v822_v54, %v818_v58 }
 0x461   :  { %v5088_v45 = vpack.i.bf16 %v827_v38, %v826_v55 }
 0x463   :  { %5089 = vrot.lane.b32.xlu0 %v5088_v45, %s5234_s12  ;;  %v841_v45 = vld [vmem:[%s9137_s23 + $0x8] sm:$0xff] }
 0x465   :  { %v831_v37 = vpop.permute.xlu2 %830 }
 0x466   :  { %v834_v35 = vmul.f32 %v831_v37, %v818_v58 }
 0x46b   :  { %1008 = vperm.xlu0 %5070, %v1002_v36   ;;  %v4072_v36 = vld [vmem:[%s9137_s23 + $0x20] sm:$0xff] }
 0x46d   :  { %v814_v59 = vpop.permute.xlu1 %813 }
 0x46e   :  { %v817_v33 = vsel %vm806_vm6, %v814_v59, %v6080_v41  ;;  %v825_v34 = vmul.f32 %v822_v54, %v814_v59  ;;  %v4084_v59 = vld [vmem:[%s9137_s23 + $0x40] sm:$0xff] }
 0x46f   :  { %v824_v32 = vmul.f32 %v822_v54, %v817_v33  ;;  %v833_v43 = vmul.f32 %v831_v37, %v817_v33  ;;  %v840_v54 = vld [vmem:[%s9137_s23] sm:$0xff]  ;;  %v4074_v37 = vld [vmem:[%s9137_s23 + $0x30] sm:$0xff]  ;;  %v4075_v33 = vld [vmem:[%s9137_s23 + $0x38] sm:$0xff] }
 0x471   :  { %v5093_v31 = vpack.i.bf16 %v825_v34, %v824_v32  ;;  %v5098_v44 = vpack.i.bf16 %v833_v43, %v834_v35  ;;  %v4085_v34 = vld [vmem:[%s9137_s23 + $0x48] sm:$0xff]  ;;  %v4086_v35 = vld [vmem:[%s9137_s23 + $0x50] sm:$0xff]  ;;  %v4087_v32 = vld [vmem:[%s9137_s23 + $0x58] sm:$0xff] }
 0x473   :  { %5099 = vrot.lane.b32.xlu2 %v5098_v44, %s5230_s4  ;;  %1041 = vperm.xlu0 %5070, %v1031_v30  }
 0x474   :  { %5094 = vrot.lane.b32.xlu1 %v5093_v31, %s5234_s12 }
 0x47b   :  { %1036 = vperm.xlu2 %5072, %v1030_v40   ;;  %1046 = vperm.xlu0 %5070, %v1032_v49  }
 0x47c   :  { %1013 = vperm.xlu1 %5071, %v1003_v56  }
 0x483   :  { %1023 = vperm.xlu2 %5072, %v1005_v53  }
 0x484   :  { %1018 = vperm.xlu1 %5071, %v1004_v29  }
 0x48c   :  { %1051 = vperm.xlu1 %5071, %v1033_v47  }
 0x4cd   :  { %v5100_v48 = vpop.permute.xlu2 %5099 }
 0x4ce   :  { %v5101_v38 = vunpack.i.l.bf16 %v5100_v48  ;;  %v5102_v55 = vunpack.i.h.bf16 %v5100_v48 }
 0x4d5   :  { %v5090_v28 = vpop.permute.xlu0 %5089  ;;  %v1037_v48 = vpop.permute.xlu2 %1036 }
 0x4d6   :  { %v5092_v42 = vunpack.i.h.bf16 %v5090_v28  ;;  %v5091_v27 = vunpack.i.l.bf16 %v5090_v28 }
 0x4d8   :  { %v858_v52 = vsel %vm856_vm7, %v5091_v27, %v5092_v42 }
 0x4d9   :  { %888 = vmatpush.msra.mxu2 %v858_v52  ;;  %5044 = vmatpush.msra.mxu3 %v858_v52 }
 0x4dd   :  { %v1009_v29 = vpop.permute.xlu0 %1008 }
 0x4e6   :  { %v5095_v46 = vpop.permute.xlu1 %5094 }
 0x4e7   :  { %v5097_v51 = vunpack.i.h.bf16 %v5095_v46  ;;  %v5096_v50 = vunpack.i.l.bf16 %v5095_v46 }
 0x4e9   :  { %v857_v58 = vsel %vm856_vm7, %v5096_v50, %v5097_v51 }
 0x4ea   :  { %889 = vmatpush.msra.mxu2 %v857_v58  ;;  %5045 = vmatpush.msra.mxu3 %v857_v58 }
 0x4eb   :  { %4076 = vmatmul.msk.f32.vlgmr.msra.gmra.mxu2 %vm861_vm8, %v840_v54  ;;  %4079 = vmatmul.msk.f32.vlgmr.msra.gmra.mxu3 %vm861_vm8, %v843_v39  ;;  %v1042_v39 = vpop.permute.xlu0 %1041 }
 0x4ec   :  { %929 = vmatpush.msrb.mxu3 %v6084_v57  ;;  %983 = vmatpush.msrb.mxu2 %v5101_v38  ;;  %v842_v57 = vld [vmem:[%s9137_s23 + $0x10] sm:$0xff] }
 0x4ee   :  { %930 = vmatpush.msrb.mxu3 %v6080_v41  ;;  %984 = vmatpush.msrb.mxu2 %v5102_v55  ;;  %v4073_v41 = vld [vmem:[%s9137_s23 + $0x28] sm:$0xff]  ;;  %v1014_v27 = vpop.permute.xlu1 %1013  ;;  %s5236_s23 = smov 59  }
 0x4f3   :  { %4077 = vmatmul.msk.f32.gmra.mxu2 %vm861_vm8, %v841_v45  ;;  %4080 = vmatmul.msk.f32.vlgmr.msrb.gmra.mxu3 %vm861_vm8, %v4072_v36 }
 0x4fb   :  { %4078 = vmatmul.msk.f32.gmra.mxu2 %vm861_vm8, %v842_v57  ;;  %4081 = vmatmul.msk.f32.gmra.mxu3 %vm861_vm8, %v4073_v41  ;;  %v1019_v41 = vpop.permute.xlu1 %1018 }
 0x503   :  { %4082 = vmatmul.msk.f32.gmra.mxu3 %vm861_vm8, %v4074_v37  ;;  %4088 = vmatmul.msk.f32.vlgmr.msrb.gmra.mxu2 %vm861_vm8, %v4084_v59 }
 0x50b   :  { %4083 = vmatmul.msk.f32.gmra.mxu3 %vm861_vm8, %v4075_v33  ;;  %4089 = vmatmul.msk.f32.gmra.mxu2 %vm861_vm8, %v4085_v34 }
 0x513   :  { %4090 = vmatmul.msk.f32.gmra.mxu2 %vm861_vm8, %v4086_v35 }
 0x51b   :  { %4091 = vmatmul.msk.f32.gmra.mxu2 %vm861_vm8, %v4087_v32 }
 0x56e   :  { %v891_v43 = vpop.f32.mrf.mxu2  ;;  %v900_v30 = vpop.f32.mrf.mxu3 }
 0x576   :  { %v894_v31 = vpop.f32.mrf.mxu2  ;;  %v932_v44 = vpop.f32.mrf.mxu3 }
 0x577   :  { %v933_v53 = vadd.f32 %v932_v44, %v891_v43  ;;  %v1024_v43 = vpop.permute.xlu2 %1023 }
 0x57e   :  { %v897_v40 = vpop.f32.mrf.mxu2  ;;  %v935_v49 = vpop.f32.mrf.mxu3 }
 0x57f   :  { %v936_v28 = vadd.f32 %v935_v49, %v894_v31  ;;  %v1047_v31 = vpop.permute.xlu0 %1046 }
 0x586   :  { %v986_v56 = vpop.f32.mrf.mxu2  ;;  %v938_v51 = vpop.f32.mrf.mxu3 }
 0x587   :  { %v998_v47 = vadd.f32 %v986_v56, %v933_v53  ;;  %v939_v36 = vadd.f32 %v938_v51, %v897_v40  ;;  %v1052_v56 = vpop.permute.xlu1 %1051 }
 0x589   :  { %v1026_v42 = vmul.f32 %v1009_v29, %v998_v47 }
 0x58b   :  { %v1054_v50 = vadd.f32 %v1037_v48, %v1026_v42 }
 0x58d   :  { %v6180_v38 = vmax.f32 %v1054_v50, 0.0 }
 0x58e   :  { %v989_v52 = vpop.f32.mrf.mxu2  ;;  %v941_v59 = vpop.f32.mrf.mxu3 }
 0x58f   :  { %v999_v46 = vadd.f32 %v989_v52, %v936_v28  ;;  %v942_v33 = vadd.f32 %v941_v59, %v900_v30 }
 0x591   :  { %v1027_v54 = vmul.f32 %v1014_v27, %v999_v46 }
 0x593   :  { %v1055_v58 = vadd.f32 %v1042_v39, %v1027_v54 }
 0x595   :  { %v6182_v55 = vmax.f32 %v1055_v58, 0.0 }
 0x596   :  { %v992_v45 = vpop.f32.mrf.mxu2 }
 0x597   :  { %v5103_v57 = vpack.i.bf16 %v6182_v55, %v6180_v38  ;;  %v1000_v37 = vadd.f32 %v992_v45, %v939_v36  ;;  %v1122_v45 = vld [vmem:[%s8770_s17 + $0x38] sm:$0xf] }
 0x598   :  { %v1152_v36 = vunpack.c.l.b16 %v1122_v45 }
 0x599   :  { %5104 = vrot.lane.b32.xlu2 %v5103_v57, %s5232_s16  ;;  %v1028_v34 = vmul.f32 %v1019_v41, %v1000_v37  ;;  %v4648_v37 = vld [vmem:[%s8770_s17 + $0x30] sm:$0xff] }
 0x59a   :  { %v1160_v57 = vpack.c.b16 %v1152_v36, %v1152_v36 }
 0x59b   :  { %v1056_v44 = vadd.f32 %v1047_v31, %v1028_v34 }
 0x59c   :  { %v1177_v41 = vsel %vm1175_vm9, %v1160_v57, 0 }
 0x59d   :  { %v6187_v29 = vmax.f32 %v1056_v44, 0.0  ;;  %1179 = vmatpush.bf16.msra.mxu3 %v1177_v41  ;;  %v4646_v44 = vld [vmem:[%s8770_s17 + $0x20] sm:$0xff] }
 0x59e   :  { %v995_v35 = vpop.f32.mrf.mxu2 }
 0x59f   :  { %v1001_v32 = vadd.f32 %v995_v35, %v942_v33  ;;  %v4647_v33 = vld [vmem:[%s8770_s17 + $0x28] sm:$0xff] }
 0x5a1   :  { %v1029_v49 = vmul.f32 %v1024_v43, %v1001_v32  ;;  %1180 = vmatpush.bf16.msra.mxu3 %v4648_v37 }
 0x5a3   :  { %v1057_v53 = vadd.f32 %v1052_v56, %v1029_v49  ;;  %v4645_v49 = vld [vmem:[%s8770_s17 + $0x18] sm:$0xff]  ;;  %v4644_v56 = vld [vmem:[%s8770_s17 + $0x10] sm:$0xff] }
 0x5a5   :  { %v1061_v40 = vmax.f32 %v1057_v53, 0.0  ;;  %1181 = vmatpush.bf16.msra.mxu3 %v4647_v33 }
 0x5a7   :  { %v5108_v47 = vpack.i.bf16 %v1061_v40, %v6187_v29 }
 0x5a9   :  { %5109 = vrot.lane.b32.xlu0 %v5108_v47, %s5232_s16  ;;  %1182 = vmatpush.bf16.msra.mxu3 %v4646_v44  ;;  %v4643_v47 = vld [vmem:[%s8770_s17 + $0x8] sm:$0xff] }
 0x5ad   :  { %1183 = vmatpush.bf16.msra.mxu3 %v4645_v49 }
 0x5b1   :  { %1184 = vmatpush.bf16.msra.mxu3 %v4644_v56 }
 0x5b5   :  { %1185 = vmatpush.bf16.msra.mxu3 %v4643_v47 }
 0x5f3   :  { %v5105_v28 = vpop.permute.xlu2 %5104 }
 0x5f4   :  { %v5107_v42 = vunpack.i.h.bf16 %v5105_v28  ;;  %v5106_v27 = vunpack.i.l.bf16 %v5105_v28 }
 0x5f6   :  { %v1064_v30 = vsel %vm806_vm6, %v5106_v27, %v6180_v38  ;;  %v1067_v52 = vsel %vm806_vm6, %v5107_v42, %v6182_v55 }
 0x5f7   :  { %v5113_v46 = vpack.i.bf16 %v1067_v52, %v1064_v30 }
 0x5f9   :  { %5114 = vrot.lane.b32.xlu1 %v5113_v46, %s5232_s16  ;;  %v4642_v46 = vld [vmem:[%s8770_s17] sm:$0xff]  ;;  %s5235_s17 = smov 60  }
 0x5fa   :  { %1186 = vmatpush.bf16.msra.mxu3 %v4642_v46 }
 0x61b   :  { %v5110_v48 = vpop.permute.xlu0 %5109 }
 0x61c   :  { %v5112_v51 = vunpack.i.h.bf16 %v5110_v48  ;;  %v5111_v50 = vunpack.i.l.bf16 %v5110_v48 }
 0x61e   :  { %v1070_v54 = vsel %vm806_vm6, %v5111_v50, %v6187_v29  ;;  %v1073_v39 = vsel %vm806_vm6, %v5112_v51, %v1061_v40 }
 0x61f   :  { %v5118_v58 = vpack.i.bf16 %v1073_v39, %v1070_v54 }
 0x621   :  { %5119 = vrot.lane.b32.xlu2 %v5118_v58, %s5232_s16 }
 0x66b   :  { %v5115_v59 = vpop.permute.xlu1 %5114 }
 0x66c   :  { %v5117_v34 = vunpack.i.h.bf16 %v5115_v59  ;;  %v5116_v35 = vunpack.i.l.bf16 %v5115_v59 }
 0x66e   :  { %v1082_v32 = vsel %vm806_vm6, %v5116_v35, %v6180_v38  ;;  %v1083_v43 = vsel %vm806_vm6, %v5117_v34, %v6182_v55 }
 0x66f   :  { %v5123_v31 = vpack.i.bf16 %v1083_v43, %v1082_v32 }
 0x671   :  { %5124 = vrot.lane.b32.xlu0 %v5123_v31, %s5230_s4 }
 0x67b   :  { %v5120_v53 = vpop.permute.xlu2 %5119 }
 0x67c   :  { %v5122_v28 = vunpack.i.h.bf16 %v5120_v53  ;;  %v5121_v42 = vunpack.i.l.bf16 %v5120_v53 }
 0x67e   :  { %v1084_v27 = vsel %vm806_vm6, %v5121_v42, %v6187_v29  ;;  %v1085_v30 = vsel %vm806_vm6, %v5122_v28, %v1061_v40 }
 0x67f   :  { %v5128_v52 = vpack.i.bf16 %v1085_v30, %v1084_v27 }
 0x681   :  { %5129 = vrot.lane.b32.xlu1 %v5128_v52, %s5230_s4 }
 0x6e3   :  { %v5125_v48 = vpop.permute.xlu0 %5124 }
 0x6e4   :  { %v5127_v51 = vunpack.i.h.bf16 %v5125_v48  ;;  %v5126_v50 = vunpack.i.l.bf16 %v5125_v48 }
 0x6e6   :  { %v1103_v54 = vmax.f32 %v6182_v55, %v5127_v51  ;;  %v1102_v39 = vmax.f32 %v6180_v38, %v5126_v50  ;;  %v5215_v38 = vld [vmem:[%s8768_s15] ss:$0 sm:$0xff] }
 0x6e8   :  { %v1106_v58 = vpack.c.bf16 %v1103_v54, %v1102_v39 }
 0x6ea   :  { %4120 = vmatmul.msk.bf16.vlgmr.msra.gmra.mxu3 %vm1168_vm10, %v1106_v58 }
 0x6f3   :  { %v5130_v45 = vpop.permute.xlu1 %5129 }
 0x6f4   :  { %v5132_v36 = vunpack.i.h.bf16 %v5130_v45  ;;  %v5131_v57 = vunpack.i.l.bf16 %v5130_v45 }
 0x6f6   :  { %v1105_v41 = vmax.f32 %v1061_v40, %v5132_v36  ;;  %v1104_v37 = vmax.f32 %v6187_v29, %v5131_v57  ;;  %v5216_v29 = vld [vmem:[%s8767_s14] ss:$0 sm:$0xff]  ;;  %s5237_s14 = smov 69  }
 0x6f8   :  { %v1107_v59 = vpack.c.bf16 %v1105_v41, %v1104_v37 }
 0x6fa   :  { %4121 = vmatmul.msk.bf16.gmra.mxu3 %vm1168_vm10, %v1107_v59 }
 0x76d   :  { %v1188_v33 = vpop.f32.mrf.mxu3 }
 0x775   :  { %v1190_v34 = vpop.f32.mrf.mxu3 }
 0x776   :  { %1204 = vrot.lane.b32.xlu1 %v1190_v34, %s5235_s17 }
 0x77d   :  { %v1193_v55 = vpop.f32.mrf.mxu3 }
 0x77e   :  { %1207 = vrot.lane.b32.xlu0 %v1193_v55, %s5235_s17  ;;  %1236 = vrot.lane.b32.xlu1 %v5215_v38, %s5228_s10 }
 0x785   :  { %v1195_v40 = vpop.f32.mrf.mxu3 }
 0x786   :  { %1210 = vrot.lane.b32.xlu2 %v1195_v40, %s5235_s17  ;;  %1378 = vmatpush.msrb.mxu0 %v1195_v40 }
 0x787   :  { %1227 = vrot.lane.b32.xlu1 %v5216_v29, %s5236_s23 }
 0x788   :  { %1379 = vmatpush.msrb.mxu0 %v1193_v55 }
 0x78a   :  { %1380 = vmatpush.msrb.mxu0 %v1190_v34 }
 0x78c   :  { %1381 = vmatpush.msrb.mxu0 %v1188_v33 }
 0x78e   :  { %1201 = vrot.lane.b32.xlu2 %v1188_v33, %s5235_s17 }
 0x7e0   :  { %v1211_v35 = vpop.permute.xlu2 %1210 }
 0x7e1   :  { %v1212_v32 = vsel %vm1200_vm11, %v1211_v35, %v1195_v40  ;;  %v1561_v35 = vld [vmem:[%s9139_s11] sm:$0xff] }
 0x7e2   :  { %1219 = vrot.lane.b32.xlu0 %v1212_v32, %s5235_s17  ;;  %v1563_v32 = vld [vmem:[%s9139_s11 + $0x10] sm:$0xff] }
 0x7e8   :  { %v1205_v43 = vpop.permute.xlu1 %1204  ;;  %v1202_v56 = vpop.permute.xlu2 %1201 }
 0x7e9   :  { %v1206_v31 = vsel %vm1200_vm11, %v1205_v43, %v1190_v34  ;;  %v1203_v53 = vsel %vm1200_vm11, %v1202_v56, %v1188_v33  ;;  %v1507_v43 = vld [vmem:[%s9138_s30 + $0x10] sm:$0xff]  ;;  %v1509_v56 = vld [vmem:[%s9138_s30 + $0x20] sm:$0xff] }
 0x7ea   :  { %1215 = vrot.lane.b32.xlu0 %v1206_v31, %s5235_s17  ;;  %v1508_v31 = vld [vmem:[%s9138_s30 + $0x18] sm:$0xff] }
 0x7f0   :  { %v1208_v44 = vpop.permute.xlu0 %1207  ;;  %v1237_v47 = vpop.permute.xlu1 %1236 }
 0x7f1   :  { %v1209_v49 = vsel %vm1200_vm11, %v1208_v44, %v1193_v55  ;;  %v1510_v44 = vld [vmem:[%s9138_s30 + $0x28] sm:$0xff] }
 0x7f2   :  { %1217 = vrot.lane.b32.xlu2 %v1209_v49, %s5235_s17  ;;  %v1564_v49 = vld [vmem:[%s9139_s11 + $0x18] sm:$0xff] }
 0x7f9   :  { %v1228_v27 = vpop.permute.xlu1 %1227 }
 0x7fa   :  { %1213 = vrot.lane.b32.xlu2 %v1203_v53, %s5235_s17  ;;  %v1565_v53 = vld [vmem:[%s9139_s11 + $0x20] sm:$0xff] }
 0x84c   :  { %v1218_v28 = vpop.permute.xlu2 %1217 }
 0x84d   :  { %v1223_v42 = vsel %vm1200_vm11, %v1218_v28, %v1193_v55  ;;  %v1505_v55 = vld [vmem:[%s9138_s30] sm:$0xff]  ;;  %v1511_v28 = vld [vmem:[%s9138_s30 + $0x30] sm:$0xff] }
 0x84e   :  { %v1241_v46 = vmul.f32 %v1237_v47, %v1223_v42  ;;  %v1232_v48 = vmul.f32 %v1228_v27, %v1223_v42  ;;  %v1512_v42 = vld [vmem:[%s9138_s30 + $0x38] sm:$0xff] }
 0x854   :  { %v1220_v30 = vpop.permute.xlu0 %1219  ;;  %v1214_v54 = vpop.permute.xlu2 %1213 }
 0x855   :  { %v1224_v52 = vsel %vm1200_vm11, %v1220_v30, %v1195_v40  ;;  %v1221_v45 = vsel %vm1200_vm11, %v1214_v54, %v1188_v33  ;;  %v1562_v33 = vld [vmem:[%s9139_s11 + $0x8] sm:$0xff]  ;;  %v4122_v30 = vld [vmem:[%s9140_s28 + $0x40] sm:$0xff] }
 0x856   :  { %v1233_v51 = vmul.f32 %v1228_v27, %v1224_v52  ;;  %v1242_v50 = vmul.f32 %v1237_v47, %v1224_v52  ;;  %v1230_v41 = vmul.f32 %v1228_v27, %v1221_v45  ;;  %v1239_v37 = vmul.f32 %v1237_v47, %v1221_v45  ;;  %4138 = vmatmul.msk.f32.vlgmr.msrb.gmra.mxu0 %vm1276_vm12, %v4122_v30  ;;  %v4123_v52 = vld [vmem:[%s9140_s28 + $0x48] sm:$0xff]  ;;  %v1258_v30 = vld [vmem:[%s9140_s28 + $0x30] sm:$0xff] }
 0x858   :  { %v5133_v39 = vpack.i.bf16 %v1241_v46, %v1242_v50  ;;  %v5138_v58 = vpack.i.bf16 %v1232_v48, %v1233_v51  ;;  %v4124_v46 = vld [vmem:[%s9140_s28 + $0x50] sm:$0xff] }
 0x85a   :  { %5134 = vrot.lane.b32.xlu0 %v5133_v39, %s5230_s4  ;;  %5139 = vrot.lane.b32.xlu1 %v5138_v58, %s5237_s14 }
 0x85c   :  { %v1216_v36 = vpop.permute.xlu0 %1215 }
 0x85d   :  { %v1222_v57 = vsel %vm1200_vm11, %v1216_v36, %v1190_v34  ;;  %v1506_v34 = vld [vmem:[%s9138_s30 + $0x8] sm:$0xff] }
 0x85e   :  { %v1231_v59 = vmul.f32 %v1228_v27, %v1222_v57  ;;  %v1240_v38 = vmul.f32 %v1237_v47, %v1222_v57  ;;  %v1566_v47 = vld [vmem:[%s9139_s11 + $0x28] sm:$0xff]  ;;  %v1568_v27 = vld [vmem:[%s9139_s11 + $0x38] sm:$0xff]  ;;  %4139 = vmatmul.msk.f32.gmra.mxu0 %vm1276_vm12, %v4123_v52 }
 0x85f   :  { %v4125_v57 = vld [vmem:[%s9140_s28 + $0x58] sm:$0xff] }
 0x860   :  { %v5143_v29 = vpack.i.bf16 %v1239_v37, %v1240_v38  ;;  %v5148_v40 = vpack.i.bf16 %v1230_v41, %v1231_v59  ;;  %v4146_v37 = vld [vmem:[%s9140_s28 + $0x80] sm:$0xff]  ;;  %v4153_v52 = vld [vmem:[%s9140_s28 + $0xb8] sm:$0xff] }
 0x862   :  { %1515 = vperm.xlu1 %5071, %v1505_v55   ;;  %5144 = vrot.lane.b32.xlu2 %v5143_v29, %s5230_s4  ;;  %v1252_v29 = vld [vmem:[%s9140_s28] sm:$0xff] }
 0x863   :  { %5149 = vrot.lane.b32.xlu0 %v5148_v40, %s5237_s14  ;;  %v4126_v40 = vld [vmem:[%s9140_s28 + $0x60] sm:$0xff] }
 0x866   :  { %4140 = vmatmul.msk.f32.gmra.mxu0 %vm1276_vm12, %v4124_v46  ;;  %v1259_v46 = vld [vmem:[%s9140_s28 + $0x38] sm:$0xff] }
 0x86a   :  { %1576 = vperm.xlu1 %5071, %v1562_v33   ;;  %1520 = vperm.xlu2 %5072, %v1506_v34   ;;  %v4147_v33 = vld [vmem:[%s9140_s28 + $0x88] sm:$0xff] }
 0x86b   :  { %1571 = vperm.xlu0 %5070, %v1561_v35   ;;  %v1253_v34 = vld [vmem:[%s9140_s28 + $0x8] sm:$0xff] }
 0x86c   :  { %v4127_v35 = vld [vmem:[%s9140_s28 + $0x68] sm:$0xff] }
 0x86e   :  { %4141 = vmatmul.msk.f32.gmra.mxu0 %vm1276_vm12, %v4125_v57 }
 0x872   :  { %1581 = vperm.xlu1 %5071, %v1563_v32   ;;  %1525 = vperm.xlu2 %5072, %v1507_v43   ;;  %v4148_v32 = vld [vmem:[%s9140_s28 + $0x90] sm:$0xff] }
 0x873   :  { %1530 = vperm.xlu0 %5070, %v1508_v31   ;;  %v1254_v43 = vld [vmem:[%s9140_s28 + $0x10] sm:$0xff] }
 0x874   :  { %v4128_v31 = vld [vmem:[%s9140_s28 + $0x70] sm:$0xff] }
 0x876   :  { %4142 = vmatmul.msk.f32.gmra.mxu0 %vm1276_vm12, %v4126_v40 }
 0x87a   :  { %1540 = vperm.xlu1 %5071, %v1510_v44   ;;  %1586 = vperm.xlu2 %5072, %v1564_v49   ;;  %v4149_v44 = vld [vmem:[%s9140_s28 + $0x98] sm:$0xff] }
 0x87b   :  { %1535 = vperm.xlu0 %5070, %v1509_v56   ;;  %v1255_v49 = vld [vmem:[%s9140_s28 + $0x18] sm:$0xff] }
 0x87c   :  { %v4129_v56 = vld [vmem:[%s9140_s28 + $0x78] sm:$0xff] }
 0x87e   :  { %4143 = vmatmul.msk.f32.gmra.mxu0 %vm1276_vm12, %v4127_v35 }
 0x882   :  { %1591 = vperm.xlu2 %5072, %v1565_v53   ;;  %v4150_v53 = vld [vmem:[%s9140_s28 + $0xa0] sm:$0xff] }
 0x883   :  { %1596 = vperm.xlu0 %5070, %v1566_v47   ;;  %v1256_v47 = vld [vmem:[%s9140_s28 + $0x20] sm:$0xff] }
 0x886   :  { %4144 = vmatmul.msk.f32.gmra.mxu0 %vm1276_vm12, %v4128_v31 }
 0x88a   :  { %1545 = vperm.xlu2 %5072, %v1511_v28   ;;  %v4151_v28 = vld [vmem:[%s9140_s28 + $0xa8] sm:$0xff] }
 0x88b   :  { %1550 = vperm.xlu0 %5070, %v1512_v42   ;;  %v1257_v42 = vld [vmem:[%s9140_s28 + $0x28] sm:$0xff] }
 0x88e   :  { %4145 = vmatmul.msk.f32.gmra.mxu0 %vm1276_vm12, %v4129_v56 }
 0x892   :  { %1606 = vperm.xlu2 %5072, %v1568_v27   ;;  %v4152_v27 = vld [vmem:[%s9140_s28 + $0xb0] sm:$0xff] }
 0x8bc   :  { %v5145_v39 = vpop.permute.xlu2 %5144 }
 0x8bd   :  { %v5146_v36 = vunpack.i.l.bf16 %v5145_v39  ;;  %v5147_v41 = vunpack.i.h.bf16 %v5145_v39 }
 0x8cc   :  { %v5135_v48 = vpop.permute.xlu0 %5134  ;;  %v5140_v51 = vpop.permute.xlu1 %5139 }
 0x8cd   :  { %v5136_v50 = vunpack.i.l.bf16 %v5135_v48  ;;  %v5141_v54 = vunpack.i.l.bf16 %v5140_v51  ;;  %v5137_v58 = vunpack.i.h.bf16 %v5135_v48  ;;  %v5142_v45 = vunpack.i.h.bf16 %v5140_v51 }
 0x8cf   :  { %1313 = vmatpush.msrb.mxu1 %v5141_v54  ;;  %1468 = vmatpush.msra.mxu2 %v5136_v50 }
 0x8d1   :  { %1314 = vmatpush.msrb.mxu1 %v5142_v45  ;;  %1469 = vmatpush.msra.mxu2 %v5137_v58 }
 0x8d3   :  { %1470 = vmatpush.msra.mxu2 %v5146_v36  ;;  %v1383_v48 = vpop.f32.mrf.mxu0 }
 0x8d4   :  { %v1516_v58 = vpop.permute.xlu1 %1515 }
 0x8d5   :  { %v5150_v59 = vpop.permute.xlu0 %5149  ;;  %1471 = vmatpush.msra.mxu2 %v5147_v41 }
 0x8d6   :  { %4154 = vmatmul.msk.f32.vlgmr.msra.gmra.mxu2 %vm1276_vm12, %v4146_v37  ;;  %v5151_v38 = vunpack.i.l.bf16 %v5150_v59  ;;  %v5152_v55 = vunpack.i.h.bf16 %v5150_v59 }
 0x8d8   :  { %1315 = vmatpush.msrb.mxu1 %v5151_v38  ;;  %v1521_v38 = vpop.permute.xlu2 %1520 }
 0x8da   :  { %1316 = vmatpush.msrb.mxu1 %v5152_v55 }
 0x8db   :  { %4130 = vmatmul.msk.f32.vlgmr.msrb.gmra.mxu1 %vm1276_vm12, %v1252_v29  ;;  %v1386_v51 = vpop.f32.mrf.mxu0 }
 0x8dd   :  { %v1572_v29 = vpop.permute.xlu0 %1571 }
 0x8de   :  { %4155 = vmatmul.msk.f32.gmra.mxu2 %vm1276_vm12, %v4147_v33 }
 0x8e3   :  { %4131 = vmatmul.msk.f32.gmra.mxu1 %vm1276_vm12, %v1253_v34  ;;  %v1389_v57 = vpop.f32.mrf.mxu0  ;;  %v1577_v34 = vpop.permute.xlu1 %1576 }
 0x8e6   :  { %4156 = vmatmul.msk.f32.gmra.mxu2 %vm1276_vm12, %v4148_v32 }
 0x8eb   :  { %4132 = vmatmul.msk.f32.gmra.mxu1 %vm1276_vm12, %v1254_v43  ;;  %v1392_v56 = vpop.f32.mrf.mxu0 }
 0x8ee   :  { %4157 = vmatmul.msk.f32.gmra.mxu2 %vm1276_vm12, %v4149_v44 }
 0x8f3   :  { %4133 = vmatmul.msk.f32.gmra.mxu1 %vm1276_vm12, %v1255_v49 }
 0x8f6   :  { %4158 = vmatmul.msk.f32.gmra.mxu2 %vm1276_vm12, %v4150_v53 }
 0x8fb   :  { %4134 = vmatmul.msk.f32.gmra.mxu1 %vm1276_vm12, %v1256_v47  ;;  %v1526_v47 = vpop.permute.xlu2 %1525 }
 0x8fe   :  { %4159 = vmatmul.msk.f32.gmra.mxu2 %vm1276_vm12, %v4151_v28 }
 0x903   :  { %4135 = vmatmul.msk.f32.gmra.mxu1 %vm1276_vm12, %v1257_v42 }
 0x906   :  { %4160 = vmatmul.msk.f32.gmra.mxu2 %vm1276_vm12, %v4152_v27 }
 0x90b   :  { %4136 = vmatmul.msk.f32.gmra.mxu1 %vm1276_vm12, %v1258_v30 }
 0x90e   :  { %4161 = vmatmul.msk.f32.gmra.mxu2 %vm1276_vm12, %v4153_v52 }
 0x913   :  { %4137 = vmatmul.msk.f32.gmra.mxu1 %vm1276_vm12, %v1259_v46  ;;  %v1531_v46 = vpop.permute.xlu0 %1530 }
 0x958   :  { %v1318_v50 = vpop.f32.mrf.mxu1 }
 0x959   :  { %v1384_v54 = vadd.f32 %v1383_v48, %v1318_v50  ;;  %v1473_v39 = vpop.f32.mrf.mxu2  ;;  %v1567_v48 = vld [vmem:[%s9139_s11 + $0x30] sm:$0xff]  ;;  %v1582_v50 = vpop.permute.xlu1 %1581 }
 0x95b   :  { %v1497_v45 = vadd.f32 %v1473_v39, %v1384_v54  ;;  %v1395_v54 = vpop.f32.mrf.mxu0 }
 0x95d   :  { %v1553_v41 = vmul.f32 %v1516_v58, %v1497_v45  ;;  %v1587_v45 = vpop.permute.xlu2 %1586 }
 0x95f   :  { %v1609_v40 = vadd.f32 %v1572_v29, %v1553_v41  ;;  %v1536_v29 = vpop.permute.xlu0 %1535 }
 0x960   :  { %v1321_v36 = vpop.f32.mrf.mxu1 }
 0x961   :  { %v1387_v37 = vadd.f32 %v1386_v51, %v1321_v36  ;;  %v1476_v59 = vpop.f32.mrf.mxu2  ;;  %v6402_v43 = vmax.f32 %v1609_v40, 0.0 }
 0x963   :  { %v1498_v55 = vadd.f32 %v1476_v59, %v1387_v37 }
 0x965   :  { %v1554_v33 = vmul.f32 %v1521_v38, %v1498_v55 }
 0x967   :  { %v1610_v35 = vadd.f32 %v1577_v34, %v1554_v33  ;;  %v1398_v33 = vpop.f32.mrf.mxu0 }
 0x968   :  { %v1324_v32 = vpop.f32.mrf.mxu1 }
 0x969   :  { %v6404_v31 = vmax.f32 %v1610_v35, 0.0  ;;  %v1390_v44 = vadd.f32 %v1389_v57, %v1324_v32  ;;  %v1479_v49 = vpop.f32.mrf.mxu2 }
 0x96b   :  { %v5153_v53 = vpack.i.bf16 %v6404_v31, %v6402_v43  ;;  %v1499_v28 = vadd.f32 %v1479_v49, %v1390_v44 }
 0x96d   :  { %5154 = vrot.lane.b32.xlu1 %v5153_v53, %s5235_s17  ;;  %v1555_v27 = vmul.f32 %v1526_v47, %v1499_v28  ;;  %v1541_v53 = vpop.permute.xlu1 %1540 }
 0x96f   :  { %v1611_v39 = vadd.f32 %v1582_v50, %v1555_v27 }
 0x970   :  { %v1327_v42 = vpop.f32.mrf.mxu1 }
 0x971   :  { %v1393_v30 = vadd.f32 %v1392_v56, %v1327_v42  ;;  %v1482_v52 = vpop.f32.mrf.mxu2  ;;  %v6412_v41 = vmax.f32 %v1611_v39, 0.0  ;;  %v1592_v56 = vpop.permute.xlu2 %1591 }
 0x972   :  { %v1597_v42 = vpop.permute.xlu0 %1596 }
 0x973   :  { %v1500_v51 = vadd.f32 %v1482_v52, %v1393_v30 }
 0x975   :  { %v1556_v58 = vmul.f32 %v1531_v46, %v1500_v51  ;;  %1601 = vperm.xlu1 %5071, %v1567_v48   ;;  %v1401_v51 = vpop.f32.mrf.mxu0 }
 0x977   :  { %v1612_v36 = vadd.f32 %v1587_v45, %v1556_v58 }
 0x978   :  { %v1330_v57 = vpop.f32.mrf.mxu1 }
 0x979   :  { %v6414_v37 = vmax.f32 %v1612_v36, 0.0  ;;  %v1396_v59 = vadd.f32 %v1395_v54, %v1330_v57  ;;  %v1485_v38 = vpop.f32.mrf.mxu2  ;;  %v1546_v45 = vpop.permute.xlu2 %1545 }
 0x97b   :  { %v5158_v55 = vpack.i.bf16 %v6414_v37, %v6412_v41  ;;  %v1501_v40 = vadd.f32 %v1485_v38, %v1396_v59 }
 0x97d   :  { %5159 = vrot.lane.b32.xlu0 %v5158_v55, %s5235_s17  ;;  %v1557_v35 = vmul.f32 %v1536_v29, %v1501_v40  ;;  %v1404_v39 = vpop.f32.mrf.mxu0  ;;  %v1551_v40 = vpop.permute.xlu0 %1550 }
 0x97f   :  { %v1613_v47 = vadd.f32 %v1592_v56, %v1557_v35 }
 0x980   :  { %v1333_v34 = vpop.f32.mrf.mxu1 }
 0x981   :  { %v1399_v32 = vadd.f32 %v1398_v33, %v1333_v34  ;;  %v1488_v44 = vpop.f32.mrf.mxu2  ;;  %v6419_v30 = vmax.f32 %v1613_v47, 0.0 }
 0x983   :  { %v1502_v49 = vadd.f32 %v1488_v44, %v1399_v32 }
 0x985   :  { %v1558_v28 = vmul.f32 %v1541_v53, %v1502_v49  ;;  %v1607_v49 = vpop.permute.xlu2 %1606 }
 0x987   :  { %v1614_v27 = vadd.f32 %v1597_v42, %v1558_v28 }
 0x988   :  { %v1336_v48 = vpop.f32.mrf.mxu1 }
 0x989   :  { %v6421_v52 = vmax.f32 %v1614_v27, 0.0  ;;  %v1491_v50 = vpop.f32.mrf.mxu2  ;;  %v1402_v57 = vadd.f32 %v1401_v51, %v1336_v48 }
 0x98b   :  { %v5163_v46 = vpack.i.bf16 %v6421_v52, %v6419_v30  ;;  %v1503_v33 = vadd.f32 %v1491_v50, %v1402_v57 }
 0x98d   :  { %5164 = vrot.lane.b32.xlu1 %v5163_v46, %s5235_s17  ;;  %v1559_v53 = vmul.f32 %v1546_v45, %v1503_v33 }
 0x990   :  { %v1339_v54 = vpop.f32.mrf.mxu1 }
 0x991   :  { %v1405_v58 = vadd.f32 %v1404_v39, %v1339_v54  ;;  %v1494_v36 = vpop.f32.mrf.mxu2 }
 0x993   :  { %v1504_v59 = vadd.f32 %v1494_v36, %v1405_v58 }
 0x995   :  { %v1560_v34 = vmul.f32 %v1551_v40, %v1504_v59 }
 0x997   :  { %v1616_v56 = vadd.f32 %v1607_v49, %v1560_v34  ;;  %v4652_v49 = vld [vmem:[%s8771_s18 + $0x18] sm:$0x30] }
 0x999   :  { %v6431_v42 = vmax.f32 %v1616_v56, 0.0 }
 0x9df   :  { %v5155_v38 = vpop.permute.xlu1 %5154 }
 0x9e0   :  { %v5157_v55 = vunpack.i.h.bf16 %v5155_v38  ;;  %v5156_v29 = vunpack.i.l.bf16 %v5155_v38 }
 0x9e2   :  { %v1627_v35 = vsel %vm1200_vm11, %v5156_v29, %v6402_v43  ;;  %v1630_v32 = vsel %vm1200_vm11, %v5157_v55, %v6404_v31 }
 0x9e3   :  { %v5168_v44 = vpack.i.bf16 %v1630_v32, %v1627_v35 }
 0x9e5   :  { %5169 = vrot.lane.b32.xlu2 %v5168_v44, %s5235_s17  ;;  %v4176_v44 = vld [vmem:[%s8771_s18 + $0x18] sm:$0xf] }
 0x9e6   :  { %v4177_v56 = vor.u32 %v4652_v49, %v4176_v44 }
 0x9e7   :  { %v1602_v47 = vpop.permute.xlu1 %1601 }
 0x9e8   :  { %v1615_v28 = vadd.f32 %v1602_v47, %v1559_v53  ;;  %v1763_v53 = vsel %vm1761_vm13, %v4177_v56, 0  ;;  %v4651_v47 = vld [vmem:[%s8771_s18 + $0x10] sm:$0xff] }
 0x9e9   :  { %1769 = vmatpush.bf16.msrb.mxu3 %v1763_v53 }
 0x9ea   :  { %v6433_v27 = vmax.f32 %v1615_v28, 0.0  ;;  %v4650_v28 = vld [vmem:[%s8771_s18 + $0x8] sm:$0xff] }
 0x9ec   :  { %v5173_v46 = vpack.i.bf16 %v6431_v42, %v6433_v27 }
 0x9ed   :  { %1770 = vmatpush.bf16.msrb.mxu3 %v4651_v47 }
 0x9ee   :  { %5174 = vrot.lane.b32.xlu0 %v5173_v46, %s5235_s17 }
 0x9ef   :  { %v5160_v48 = vpop.permute.xlu0 %5159 }
 0x9f0   :  { %v5162_v51 = vunpack.i.h.bf16 %v5160_v48  ;;  %v5161_v50 = vunpack.i.l.bf16 %v5160_v48 }
 0x9f1   :  { %1771 = vmatpush.bf16.msrb.mxu3 %v4650_v28 }
 0x9f2   :  { %v1633_v54 = vsel %vm1200_vm11, %v5161_v50, %v6412_v41  ;;  %v1636_v39 = vsel %vm1200_vm11, %v5162_v51, %v6414_v37 }
 0x9f3   :  { %v5178_v58 = vpack.i.bf16 %v1636_v39, %v1633_v54 }
 0x9f5   :  { %5179 = vrot.lane.b32.xlu1 %v5178_v58, %s5235_s17 }
 0x9ff   :  { %v5165_v45 = vpop.permute.xlu1 %5164 }
 0xa00   :  { %v5167_v36 = vunpack.i.h.bf16 %v5165_v45  ;;  %v5166_v57 = vunpack.i.l.bf16 %v5165_v45 }
 0xa02   :  { %v1639_v59 = vsel %vm1200_vm11, %v5166_v57, %v6419_v30  ;;  %v1642_v38 = vsel %vm1200_vm11, %v5167_v36, %v6421_v52 }
 0xa03   :  { %v5183_v55 = vpack.i.bf16 %v1642_v38, %v1639_v59 }
 0xa05   :  { %5184 = vrot.lane.b32.xlu2 %v5183_v55, %s5235_s17 }
 0xa3f   :  { %v5170_v29 = vpop.permute.xlu2 %5169 }
 0xa40   :  { %v5172_v40 = vunpack.i.h.bf16 %v5170_v29  ;;  %v5171_v33 = vunpack.i.l.bf16 %v5170_v29 }
 0xa42   :  { %v1665_v34 = vsel %vm1200_vm11, %v5171_v33, %v6402_v43  ;;  %v1666_v35 = vsel %vm1200_vm11, %v5172_v40, %v6404_v31 }
 0xa43   :  { %v5188_v32 = vpack.i.bf16 %v1666_v35, %v1665_v34 }
 0xa45   :  { %5189 = vrot.lane.b32.xlu0 %v5188_v32, %s5230_s4  ;;  %v4649_v32 = vld [vmem:[%s8771_s18] sm:$0xff] }
 0xa46   :  { %1772 = vmatpush.bf16.msrb.mxu3 %v4649_v32 }
 0xa5f   :  { %v5185_v46 = vpop.permute.xlu2 %5184 }
 0xa60   :  { %v5187_v48 = vunpack.i.h.bf16 %v5185_v46  ;;  %v5186_v51 = vunpack.i.l.bf16 %v5185_v46  ;;  %v5175_v50 = vpop.permute.xlu0 %5174 }
 0xa61   :  { %v5177_v54 = vunpack.i.h.bf16 %v5175_v50  ;;  %v5176_v39 = vunpack.i.l.bf16 %v5175_v50 }
 0xa62   :  { %v1669_v58 = vsel %vm1200_vm11, %v5186_v51, %v6419_v30  ;;  %v1670_v45 = vsel %vm1200_vm11, %v5187_v48, %v6421_v52 }
 0xa63   :  { %v5203_v36 = vpack.i.bf16 %v1670_v45, %v1669_v58  ;;  %v1645_v57 = vsel %vm1200_vm11, %v5176_v39, %v6433_v27  ;;  %v1648_v59 = vsel %vm1200_vm11, %v5177_v54, %v6431_v42 }
 0xa64   :  { %v5193_v38 = vpack.i.bf16 %v1648_v59, %v1645_v57 }
 0xa65   :  { %5204 = vrot.lane.b32.xlu0 %v5203_v36, %s5230_s4 }
 0xa66   :  { %5194 = vrot.lane.b32.xlu1 %v5193_v38, %s5235_s17 }
 0xa67   :  { %v5180_v55 = vpop.permute.xlu1 %5179 }
 0xa68   :  { %v5182_v29 = vunpack.i.h.bf16 %v5180_v55  ;;  %v5181_v40 = vunpack.i.l.bf16 %v5180_v55 }
 0xa6a   :  { %v1667_v33 = vsel %vm1200_vm11, %v5181_v40, %v6412_v41  ;;  %v1668_v34 = vsel %vm1200_vm11, %v5182_v29, %v6414_v37 }
 0xa6b   :  { %v5198_v35 = vpack.i.bf16 %v1668_v34, %v1667_v33 }
 0xa6d   :  { %5199 = vrot.lane.b32.xlu2 %v5198_v35, %s5230_s4 }
 0xab7   :  { %v5190_v44 = vpop.permute.xlu0 %5189 }
 0xab8   :  { %v5192_v49 = vunpack.i.h.bf16 %v5190_v44  ;;  %v5191_v56 = vunpack.i.l.bf16 %v5190_v44 }
 0xaba   :  { %v1706_v53 = vmax.f32 %v6404_v31, %v5192_v49  ;;  %v1705_v47 = vmax.f32 %v6402_v43, %v5191_v56 }
 0xabc   :  { %v1713_v28 = vpack.c.bf16 %v1706_v53, %v1705_v47 }
 0xabe   :  { %4178 = vmatmul.msk.bf16.vlgmr.msrb.gmra.mxu3 %vm1748_vm14, %v1713_v28 }
 0xac7   :  { %v5200_v46 = vpop.permute.xlu2 %5199 }
 0xac8   :  { %v5202_v48 = vunpack.i.h.bf16 %v5200_v46  ;;  %v5201_v51 = vunpack.i.l.bf16 %v5200_v46 }
 0xaca   :  { %v1708_v50 = vmax.f32 %v6414_v37, %v5202_v48  ;;  %v1707_v54 = vmax.f32 %v6412_v41, %v5201_v51 }
 0xacc   :  { %v1714_v39 = vpack.c.bf16 %v1708_v50, %v1707_v54 }
 0xace   :  { %4179 = vmatmul.msk.bf16.gmra.mxu3 %vm1748_vm14, %v1714_v39 }
 0xad7   :  { %v5205_v58 = vpop.permute.xlu0 %5204 }
 0xad8   :  { %v5207_v45 = vunpack.i.h.bf16 %v5205_v58  ;;  %v5206_v36 = vunpack.i.l.bf16 %v5205_v58  ;;  %v5195_v31 = vpop.permute.xlu1 %5194 }
 0xad9   :  { %v5197_v57 = vunpack.i.h.bf16 %v5195_v31  ;;  %v5196_v43 = vunpack.i.l.bf16 %v5195_v31 }
 0xada   :  { %v1710_v59 = vmax.f32 %v6421_v52, %v5207_v45  ;;  %v1709_v38 = vmax.f32 %v6419_v30, %v5206_v36 }
 0xadb   :  { %v1671_v55 = vsel %vm1200_vm11, %v5196_v43, %v6433_v27  ;;  %v1672_v37 = vsel %vm1200_vm11, %v5197_v57, %v6431_v42 }
 0xadc   :  { %v5208_v41 = vpack.i.bf16 %v1672_v37, %v1671_v55  ;;  %v1715_v29 = vpack.c.bf16 %v1710_v59, %v1709_v38 }
 0xade   :  { %5209 = vrot.lane.b32.xlu1 %v5208_v41, %s5230_s4  ;;  %4180 = vmatmul.msk.bf16.gmra.mxu3 %vm1748_vm14, %v1715_v29 }
 0xb41   :  { %v1774_v40 = vpop.f32.mrf.mxu3 }
 0xb49   :  { %v1776_v33 = vpop.f32.mrf.mxu3 }
 0xb4a   :  { %v1794_v34 = vpack.c.bf16 %v1776_v33, %v1774_v40 }
 0xb50   :  { %v5210_v35 = vpop.permute.xlu1 %5209 }
 0xb51   :  { %v5212_v32 = vunpack.i.h.bf16 %v5210_v35  ;;  %v5211_v52 = vunpack.i.l.bf16 %v5210_v35  ;;  %v1779_v44 = vpop.f32.mrf.mxu3 }
 0xb53   :  { %v1712_v30 = vmax.f32 %v6431_v42, %v5212_v32  ;;  %v1711_v49 = vmax.f32 %v6433_v27, %v5211_v52 }
 0xb55   :  { %v1716_v56 = vpack.c.bf16 %v1712_v30, %v1711_v49 }
 0xb57   :  { %4181 = vmatmul.msk.bf16.gmra.mxu3 %vm1748_vm14, %v1716_v56 }
 0xb59   :  { %v1781_v53 = vpop.f32.mrf.mxu3 }
 0xb5a   :  { %v1795_v47 = vpack.c.bf16 %v1781_v53, %v1779_v44 }
 0xb61   :  { %v1784_v28 = vpop.f32.mrf.mxu3 }
 0xb69   :  { %v1786_v46 = vpop.f32.mrf.mxu3 }
 0xb6a   :  { %v1796_v48 = vpack.c.bf16 %v1786_v46, %v1784_v28 }
 0xbda   :  { %v1789_v51 = vpop.f32.mrf.mxu3 }
 0xbe2   :  { %v1791_v50 = vpop.f32.mrf.mxu3 }
 0xbe3   :  { %v1797_v54 = vpack.c.bf16 %v1791_v50, %v1789_v51 }
 0xbe5   :  { %5046 = vmatpush.bf16.msra.mxu1 %v1797_v54 }
 0xbe6   :  { %5220 = dma.done.wait [#allocation5], 7680 }
 0xbe7   :  { %5221 = vsyncadd [#allocation5], 4294959616  ;;  %2407 = vmatpush.bf16.msra.mxu0 %v1797_v54  ;;  %5047 = vmatpush.bf16.msrb.mxu2 %v1797_v54  ;;  %v4666_v42 = vld [vmem:[#allocation2 + $0x150] sm:$0xff]  ;;  %vm2222_vm15 = vcmask 523264   ;;  %v4667_v27 = vld [vmem:[#allocation2 + $0x108] sm:$0xff] }
 0xbe8   :  { %5048 = vmatpush.bf16.msra.mxu3 %v1797_v54  ;;  %v4668_v39 = vld [vmem:[#allocation2 + $0x60] sm:$0xff]  ;;  %v4670_v45 = vld [vmem:[#allocation2 + $0x188] sm:$0xff]  ;;  %v4671_v36 = vld [vmem:[#allocation2 + $0x138] sm:$0xff] }
 0xbe9   :  { %5049 = vmatpush.bf16.msra.mxu1 %v1796_v48  ;;  %v4669_v58 = vld [vmem:[#allocation2 + $0xe0] sm:$0xff]  ;;  %v4674_v43 = vld [vmem:[#allocation2 + $0x1a8] sm:$0xff]  ;;  %v4675_v55 = vld [vmem:[#allocation2 + $0x1b8] sm:$0xff] }
 0xbea   :  { %v4672_v31 = vld [vmem:[#allocation2 + $0x140] sm:$0xff]  ;;  %v4653_v29 = vld [vmem:[#allocation2 + $0xb0] sm:$0xff]  ;;  %v4676_v40 = vld [vmem:[#allocation2 + $0x28] sm:$0xff] }
 0xbeb   :  { %2408 = vmatpush.bf16.msra.mxu0 %v1796_v48  ;;  %5050 = vmatpush.bf16.msrb.mxu2 %v1796_v48  ;;  %v4673_v57 = vld [vmem:[#allocation2 + $0x80] sm:$0xff]  ;;  %v4654_v32 = vld [vmem:[#allocation2 + $0x1b0] sm:$0xff]  ;;  %v4655_v56 = vld [vmem:[#allocation2 + $0xd8] sm:$0xff] }
 0xbec   :  { %5051 = vmatpush.bf16.msra.mxu3 %v1796_v48  ;;  %v4677_v52 = vld [vmem:[#allocation2 + $0xf0] sm:$0xff]  ;;  %v4692_v30 = vld [vmem:[#allocation2 + $0x1a0] sm:$0xff]  ;;  %v4678_v53 = vld [vmem:[#allocation2 + $0x158] sm:$0xff] }
 0xbed   :  { %5052 = vmatpush.bf16.msra.mxu1 %v1795_v47  ;;  %v4693_v28 = vld [vmem:[#allocation2 + $0xb8] sm:$0xff]  ;;  %v4679_v50 = vld [vmem:[#allocation2 + $0x128] sm:$0xff]  ;;  %v4686_v23 = vld [vmem:[#allocation2 + $0x1d0] sm:$0xff] }
 0xbee   :  { %v4703_v46 = vld [vmem:[#allocation2 + $0x198] sm:$0xff]  ;;  %v4687_v16 = vld [vmem:[#allocation2 + $0x100] sm:$0xff] }
 0xbef   :  { %2409 = vmatpush.bf16.msra.mxu0 %v1795_v47  ;;  %5053 = vmatpush.bf16.msrb.mxu2 %v1795_v47  ;;  %v4656_v51 = vld [vmem:[#allocation2 + $0x18] sm:$0xff]  ;;  %v4712_v13 = vld [vmem:[#allocation2 + $0x1c0] sm:$0xff] }
 0xbf0   :  { %5054 = vmatpush.bf16.msra.mxu3 %v1795_v47  ;;  %v4663_v24 = vld [vmem:[#allocation2 + $0x118] sm:$0xff]  ;;  %v4665_v10 = vld [vmem:[#allocation2 + $0x120] sm:$0xff] }
 0xbf1   :  { %5055 = vmatpush.bf16.msra.mxu1 %v1794_v34  ;;  %v4664_v18 = vld [vmem:[#allocation2 + $0x98] sm:$0xff] }
 0xbf2   :  { %v4688_v8 = vld [vmem:[#allocation2 + $0xf8] sm:$0xff] }
 0xbf3   :  { %2410 = vmatpush.bf16.msra.mxu0 %v1794_v34  ;;  %5056 = vmatpush.bf16.msrb.mxu2 %v1794_v34 }
 0xbf4   :  { %5057 = vmatpush.bf16.msra.mxu3 %v1794_v34  ;;  %4435 = vmatmul.msk.bf16.vlgmr.msra.gmra.mxu1 %vm2222_vm15, %v4666_v42  ;;  %v4691_v34 = vld [vmem:[#allocation2 + $0x190] sm:$0xff]  ;;  %v4694_v42 = vld [vmem:[#allocation2] sm:$0xff] }
 0xbf6   :  { %4422 = vmatmul.msk.bf16.vlgmr.msra.gmra.mxu0 %vm2222_vm15, %v4653_v29  ;;  %4460 = vmatmul.msk.bf16.vlgmr.msrb.gmra.mxu2 %vm2222_vm15, %v4691_v34  ;;  %v4681_v29 = vld [vmem:[#allocation2 + $0x8] sm:$0xff]  ;;  %v4696_v34 = vld [vmem:[#allocation2 + $0x20] sm:$0xff] }
 0xbf7   :  { %4472 = vmatmul.msk.bf16.vlgmr.msra.gmra.mxu3 %vm2222_vm15, %v4703_v46  ;;  %v4707_v46 = vld [vmem:[#allocation2 + $0x1c8] sm:$0xff] }
 0xc04   :  { %4436 = vmatmul.msk.bf16.gmra.mxu1 %vm2222_vm15, %v4667_v27  ;;  %v4704_v27 = vld [vmem:[#allocation2 + $0xe8] sm:$0xff] }
 0xc06   :  { %4423 = vmatmul.msk.bf16.gmra.mxu0 %vm2222_vm15, %v4654_v32  ;;  %4461 = vmatmul.msk.bf16.gmra.mxu2 %vm2222_vm15, %v4692_v30  ;;  %v4706_v32 = vld [vmem:[#allocation2 + $0x70] sm:$0xff] }
 0xc07   :  { %4473 = vmatmul.msk.bf16.gmra.mxu3 %vm2222_vm15, %v4704_v27  ;;  %v4659_v30 = vld [vmem:[#allocation2 + $0x130] sm:$0xff] }
 0xc14   :  { %4437 = vmatmul.msk.bf16.gmra.mxu1 %vm2222_vm15, %v4668_v39 }
 0xc16   :  { %4424 = vmatmul.msk.bf16.gmra.mxu0 %vm2222_vm15, %v4655_v56  ;;  %4462 = vmatmul.msk.bf16.gmra.mxu2 %vm2222_vm15, %v4693_v28  ;;  %v4682_v56 = vld [vmem:[#allocation2 + $0x170] sm:$0xff] }
 0xc17   :  { %v4697_v28 = vld [vmem:[#allocation2 + $0x10] sm:$0xff] }
 0xc24   :  { %4438 = vmatmul.msk.bf16.gmra.mxu1 %vm2222_vm15, %v4669_v58  ;;  %v4657_v58 = vld [vmem:[#allocation2 + $0x50] sm:$0xff] }
 0xc26   :  { %4425 = vmatmul.msk.bf16.gmra.mxu0 %vm2222_vm15, %v4656_v51  ;;  %4463 = vmatmul.msk.bf16.gmra.mxu2 %vm2222_vm15, %v4694_v42  ;;  %v4683_v42 = vld [vmem:[#allocation2 + $0xc0] sm:$0xff] }
 0xc34   :  { %4439 = vmatmul.msk.bf16.gmra.mxu1 %vm2222_vm15, %v4670_v45  ;;  %v4680_v45 = vld [vmem:[#allocation2 + $0x1d8] sm:$0xff] }
 0xc36   :  { %4426 = vmatmul.msk.bf16.gmra.mxu0 %vm2222_vm15, %v4657_v58  ;;  %v4698_v58 = vld [vmem:[#allocation2 + $0x58] sm:$0xff] }
 0xc44   :  { %4440 = vmatmul.msk.bf16.gmra.mxu1 %vm2222_vm15, %v4671_v36 }
 0xc54   :  { %4441 = vmatmul.msk.bf16.gmra.mxu1 %vm2222_vm15, %v4672_v31  ;;  %v4695_v31 = vld [vmem:[#allocation2 + $0x38] sm:$0xff] }
 0xc55   :  { %4464 = vmatmul.msk.bf16.gmra.mxu2 %vm2222_vm15, %v4695_v31 }
 0xc64   :  { %4442 = vmatmul.msk.bf16.gmra.mxu1 %vm2222_vm15, %v4673_v57  ;;  %v4705_v57 = vld [vmem:[#allocation2 + $0x178] sm:$0xff] }
 0xc65   :  { %4474 = vmatmul.msk.bf16.gmra.mxu3 %vm2222_vm15, %v4705_v57  ;;  %4465 = vmatmul.msk.bf16.gmra.mxu2 %vm2222_vm15, %v4696_v34 }
 0xc71   :  { %v6509_v59 = vpop.f32.mrf.mxu1 }
 0xc73   :  { %v6579_v31 = vpop.f32.mrf.mxu0 }
 0xc74   :  { %4443 = vmatmul.msk.bf16.gmra.mxu1 %vm2222_vm15, %v4674_v43 }
 0xc75   :  { %4475 = vmatmul.msk.bf16.gmra.mxu3 %vm2222_vm15, %v4706_v32  ;;  %4466 = vmatmul.msk.bf16.gmra.mxu2 %vm2222_vm15, %v4697_v28 }
 0xc79   :  { %v6512_v38 = vpop.f32.mrf.mxu1 }
 0xc7a   :  { %v6629_v17 = vpop.f32.mrf.mxu3 }
 0xc7b   :  { %v6584_v34 = vpop.f32.mrf.mxu0  ;;  %9152 = vst [vmem:[#allocation83_spill] sm:$0xff] %v6629_v17 }
 0xc81   :  { %v6514_v37 = vpop.f32.mrf.mxu1 }
 0xc83   :  { %v6591_v28 = vpop.f32.mrf.mxu0 }
 0xc84   :  { %4444 = vmatmul.msk.bf16.gmra.mxu1 %vm2222_vm15, %v4675_v55  ;;  %v4658_v55 = vld [vmem:[#allocation2 + $0x168] sm:$0xff] }
 0xc85   :  { %4427 = vmatmul.msk.bf16.gmra.mxu0 %vm2222_vm15, %v4658_v55  ;;  %4476 = vmatmul.msk.bf16.gmra.mxu3 %vm2222_vm15, %v4707_v46  ;;  %v4661_v55 = vld [vmem:[#allocation2 + $0x180] sm:$0xff] }
 0xc86   :  { %4467 = vmatmul.msk.bf16.gmra.mxu2 %vm2222_vm15, %v4698_v58  ;;  %v4685_v58 = vld [vmem:[#allocation2 + $0x148] sm:$0xff] }
 0xc89   :  { %v6517_v41 = vpop.f32.mrf.mxu1 }
 0xc91   :  { %v6520_v33 = vpop.f32.mrf.mxu1 }
 0xc94   :  { %4445 = vmatmul.msk.bf16.gmra.mxu1 %vm2222_vm15, %v4676_v40 }
 0xc95   :  { %4428 = vmatmul.msk.bf16.gmra.mxu0 %vm2222_vm15, %v4659_v30  ;;  %v4699_v30 = vld [vmem:[#allocation2 + $0x88] sm:$0xff] }
 0xc96   :  { %4468 = vmatmul.msk.bf16.gmra.mxu2 %vm2222_vm15, %v4699_v30  ;;  %v4700_v30 = vld [vmem:[#allocation2 + $0xd0] sm:$0xff] }
 0xc99   :  { %v6524_v35 = vpop.f32.mrf.mxu1 }
 0xca1   :  { %v6527_v44 = vpop.f32.mrf.mxu1 }
 0xca4   :  { %4446 = vmatmul.msk.bf16.gmra.mxu1 %vm2222_vm15, %v4677_v52 }
 0xca6   :  { %4469 = vmatmul.msk.bf16.gmra.mxu2 %vm2222_vm15, %v4700_v30  ;;  %v4701_v30 = vld [vmem:[#allocation2 + $0x68] sm:$0xff] }
 0xca9   :  { %v6531_v49 = vpop.f32.mrf.mxu1 }
 0xcb1   :  { %v6534_v47 = vpop.f32.mrf.mxu1 }
 0xcb4   :  { %4447 = vmatmul.msk.bf16.gmra.mxu1 %vm2222_vm15, %v4678_v53 }
 0xcb6   :  { %4470 = vmatmul.msk.bf16.gmra.mxu2 %vm2222_vm15, %v4701_v30  ;;  %v6638_v30 = vpop.f32.mrf.mxu3 }
 0xcb7   :  { %9155 = vst [vmem:[#allocation86_spill] sm:$0xff] %v6638_v30 }
 0xcb9   :  { %v6539_v48 = vpop.f32.mrf.mxu1 }
 0xcbe   :  { %v6649_v9 = vpop.f32.mrf.mxu3 }
 0xcbf   :  { %9158 = vst [vmem:[#allocation89_spill] sm:$0xff] %v6649_v9 }
 0xcc1   :  { %v6542_v54 = vpop.f32.mrf.mxu1 }
 0xcc4   :  { %4448 = vmatmul.msk.bf16.gmra.mxu1 %vm2222_vm15, %v4679_v50  ;;  %v4660_v50 = vld [vmem:[#allocation2 + $0x48] sm:$0xff] }
 0xcc5   :  { %4429 = vmatmul.msk.bf16.gmra.mxu0 %vm2222_vm15, %v4660_v50  ;;  %v6595_v50 = vpop.f32.mrf.mxu2 }
 0xcc6   :  { %9143 = vst [vmem:[#allocation74_spill] sm:$0xff] %v6595_v50 }
 0xcc9   :  { %v6547_v39 = vpop.f32.mrf.mxu1 }
 0xcd1   :  { %v6550_v36 = vpop.f32.mrf.mxu1 }
 0xcd4   :  { %4449 = vmatmul.msk.bf16.gmra.mxu1 %vm2222_vm15, %v4680_v45  ;;  %v4708_v45 = vld [vmem:[#allocation2 + $0x90] sm:$0xff] }
 0xcd5   :  { %4477 = vmatmul.msk.bf16.gmra.mxu3 %vm2222_vm15, %v4708_v45  ;;  %4430 = vmatmul.msk.bf16.gmra.mxu0 %vm2222_vm15, %v4661_v55  ;;  %v6598_v45 = vpop.f32.mrf.mxu0 }
 0xcd9   :  { %v6555_v43 = vpop.f32.mrf.mxu1 }
 0xcdd   :  { %v6607_v26 = vpop.f32.mrf.mxu0 }
 0xce1   :  { %v6558_v40 = vpop.f32.mrf.mxu1 }
 0xce4   :  { %4450 = vmatmul.msk.bf16.gmra.mxu1 %vm2222_vm15, %v4681_v29  ;;  %v4684_v29 = vld [vmem:[#allocation2 + $0xa0] sm:$0xff] }
 0xce5   :  { %v6614_v22 = vpop.f32.mrf.mxu0 }
 0xce9   :  { %v6563_v52 = vpop.f32.mrf.mxu1 }
 0xced   :  { %v6623_v20 = vpop.f32.mrf.mxu0 }
 0xcf1   :  { %v6566_v53 = vpop.f32.mrf.mxu1 }
 0xcf4   :  { %4451 = vmatmul.msk.bf16.gmra.mxu1 %vm2222_vm15, %v4682_v56  ;;  %v4709_v56 = vld [vmem:[#allocation2 + $0x160] sm:$0xff] }
 0xcf5   :  { %4478 = vmatmul.msk.bf16.gmra.mxu3 %vm2222_vm15, %v4709_v56  ;;  %v4710_v56 = vld [vmem:[#allocation2 + $0x30] sm:$0xff]  ;;  %v6632_v15 = vpop.f32.mrf.mxu0 }
 0xcf9   :  { %v6571_v51 = vpop.f32.mrf.mxu1 }
 0xcfd   :  { %v6643_v12 = vpop.f32.mrf.mxu0 }
 0xd01   :  { %v6574_v27 = vpop.f32.mrf.mxu1 }
 0xd04   :  { %4452 = vmatmul.msk.bf16.gmra.mxu1 %vm2222_vm15, %v4683_v42  ;;  %v4662_v42 = vld [vmem:[#allocation2 + $0x110] sm:$0xff] }
 0xd05   :  { %4431 = vmatmul.msk.bf16.gmra.mxu0 %vm2222_vm15, %v4662_v42  ;;  %4479 = vmatmul.msk.bf16.gmra.mxu3 %vm2222_vm15, %v4710_v56  ;;  %v4711_v56 = vld [vmem:[#allocation2 + $0x78] sm:$0xff]  ;;  %v6652_v7 = vpop.f32.mrf.mxu0 }
 0xd09   :  { %v6581_v57 = vpop.f32.mrf.mxu1 }
 0xd11   :  { %v6586_v32 = vpop.f32.mrf.mxu1 }
 0xd12   :  { %9141 = vst [vmem:[#allocation72_spill] sm:$0xff] %v6586_v32 }
 0xd14   :  { %4453 = vmatmul.msk.bf16.gmra.mxu1 %vm2222_vm15, %v4684_v29  ;;  %v6602_v29 = vpop.f32.mrf.mxu2 }
 0xd15   :  { %9145 = vst [vmem:[#allocation76_spill] sm:$0xff] %v6602_v29  ;;  %4432 = vmatmul.msk.bf16.gmra.mxu0 %vm2222_vm15, %v4663_v24  ;;  %4480 = vmatmul.msk.bf16.gmra.mxu3 %vm2222_vm15, %v4711_v56  ;;  %v4702_v56 = vld [vmem:[#allocation2 + $0xc8] sm:$0xff] }
 0xd16   :  { %4471 = vmatmul.msk.bf16.gmra.mxu2 %vm2222_vm15, %v4702_v56  ;;  %v6658_v56 = vpop.f32.mrf.mxu3 }
 0xd17   :  { %9161 = vst [vmem:[#allocation92_spill] sm:$0xff] %v6658_v56 }
 0xd19   :  { %v6593_v46 = vpop.f32.mrf.mxu1 }
 0xd1a   :  { %9142 = vst [vmem:[#allocation73_spill] sm:$0xff] %v6593_v46 }
 0xd1c   :  { %v6611_v42 = vpop.f32.mrf.mxu2 }
 0xd1d   :  { %9147 = vst [vmem:[#allocation78_spill] sm:$0xff] %v6611_v42 }
 0xd1e   :  { %v6667_v3 = vpop.f32.mrf.mxu3 }
 0xd1f   :  { %9164 = vst [vmem:[#allocation95_spill] sm:$0xff] %v6667_v3  ;;  %v4690_v3 = vld [vmem:[#allocation2 + $0xa8] sm:$0xff] }
 0xd21   :  { %v6600_v55 = vpop.f32.mrf.mxu1 }
 0xd22   :  { %9144 = vst [vmem:[#allocation75_spill] sm:$0xff] %v6600_v55 }
 0xd24   :  { %4454 = vmatmul.msk.bf16.gmra.mxu1 %vm2222_vm15, %v4685_v58  ;;  %v6618_v58 = vpop.f32.mrf.mxu2 }
 0xd25   :  { %9149 = vst [vmem:[#allocation80_spill] sm:$0xff] %v6618_v58  ;;  %4433 = vmatmul.msk.bf16.gmra.mxu0 %vm2222_vm15, %v4664_v18  ;;  %4481 = vmatmul.msk.bf16.gmra.mxu3 %vm2222_vm15, %v4712_v13  ;;  %v6661_v13 = vpop.f32.mrf.mxu0 }
 0xd26   :  { %v6675_v63 = vpop.f32.mrf.mxu3 }
 0xd27   :  { %9167 = vst [vmem:[#allocation98_spill] sm:$0xff] %v6675_v63 }
 0xd29   :  { %v6609_v25 = vpop.f32.mrf.mxu1 }
 0xd2a   :  { %9146 = vst [vmem:[#allocation77_spill] sm:$0xff] %v6609_v25 }
 0xd2c   :  { %v6627_v24 = vpop.f32.mrf.mxu2 }
 0xd2d   :  { %9151 = vst [vmem:[#allocation82_spill] sm:$0xff] %v6627_v24  ;;  %v6669_v2 = vpop.f32.mrf.mxu0 }
 0xd2e   :  { %v6684_v60 = vpop.f32.mrf.mxu3 }
 0xd2f   :  { %9170 = vst [vmem:[#allocation101_spill] sm:$0xff] %v6684_v60 }
 0xd31   :  { %v6616_v21 = vpop.f32.mrf.mxu1 }
 0xd32   :  { %9148 = vst [vmem:[#allocation79_spill] sm:$0xff] %v6616_v21 }
 0xd34   :  { %4455 = vmatmul.msk.bf16.gmra.mxu1 %vm2222_vm15, %v4686_v23  ;;  %v6636_v14 = vpop.f32.mrf.mxu2 }
 0xd35   :  { %9154 = vst [vmem:[#allocation85_spill] sm:$0xff] %v6636_v14  ;;  %4434 = vmatmul.msk.bf16.gmra.mxu0 %vm2222_vm15, %v4665_v10  ;;  %v4689_v10 = vld [vmem:[#allocation2 + $0x40] sm:$0xff] }
 0xd36   :  { %v6692_v17 = vpop.f32.mrf.mxu3 }
 0xd37   :  { %9173 = vst [vmem:[#allocation104_spill] sm:$0xff] %v6692_v17 }
 0xd39   :  { %v6625_v19 = vpop.f32.mrf.mxu1 }
 0xd3a   :  { %9150 = vst [vmem:[#allocation81_spill] sm:$0xff] %v6625_v19 }
 0xd3c   :  { %v6647_v11 = vpop.f32.mrf.mxu2 }
 0xd3d   :  { %9157 = vst [vmem:[#allocation88_spill] sm:$0xff] %v6647_v11 }
 0xd41   :  { %v6634_v23 = vpop.f32.mrf.mxu1 }
 0xd42   :  { %9153 = vst [vmem:[#allocation84_spill] sm:$0xff] %v6634_v23 }
 0xd44   :  { %4456 = vmatmul.msk.bf16.gmra.mxu1 %vm2222_vm15, %v4687_v16  ;;  %v6656_v6 = vpop.f32.mrf.mxu2 }
 0xd45   :  { %9160 = vst [vmem:[#allocation91_spill] sm:$0xff] %v6656_v6 }
 0xd49   :  { %v6645_v18 = vpop.f32.mrf.mxu1 }
 0xd4a   :  { %9156 = vst [vmem:[#allocation87_spill] sm:$0xff] %v6645_v18 }
 0xd4c   :  { %v6665_v4 = vpop.f32.mrf.mxu2 }
 0xd4d   :  { %9163 = vst [vmem:[#allocation94_spill] sm:$0xff] %v6665_v4 }
 0xd51   :  { %v6654_v16 = vpop.f32.mrf.mxu1 }
 0xd52   :  { %9159 = vst [vmem:[#allocation90_spill] sm:$0xff] %v6654_v16 }
 0xd54   :  { %4457 = vmatmul.msk.bf16.gmra.mxu1 %vm2222_vm15, %v4688_v8  ;;  %v6673_v0 = vpop.f32.mrf.mxu2  ;;  %v6678_v8 = vpop.f32.mrf.mxu0 }
 0xd55   :  { %9166 = vst [vmem:[#allocation97_spill] sm:$0xff] %v6673_v0 }
 0xd59   :  { %v6663_v5 = vpop.f32.mrf.mxu1 }
 0xd5a   :  { %9162 = vst [vmem:[#allocation93_spill] sm:$0xff] %v6663_v5 }
 0xd5c   :  { %v6682_v61 = vpop.f32.mrf.mxu2  ;;  %v6686_v56 = vpop.f32.mrf.mxu0 }
 0xd5d   :  { %9169 = vst [vmem:[#allocation100_spill] sm:$0xff] %v6682_v61  ;;  %v6701_v61 = vpop.f32.mrf.mxu3 }
 0xd5e   :  { %9176 = vst [vmem:[#allocation107_spill] sm:$0xff] %v6701_v61 }
 0xd61   :  { %v6671_v1 = vpop.f32.mrf.mxu1 }
 0xd62   :  { %9165 = vst [vmem:[#allocation96_spill] sm:$0xff] %v6671_v1 }
 0xd64   :  { %4458 = vmatmul.msk.bf16.gmra.mxu1 %vm2222_vm15, %v4689_v10  ;;  %v6690_v30 = vpop.f32.mrf.mxu2  ;;  %v6695_v10 = vpop.f32.mrf.mxu0 }
 0xd65   :  { %9172 = vst [vmem:[#allocation103_spill] sm:$0xff] %v6690_v30  ;;  %v6709_v11 = vpop.f32.mrf.mxu3 }
 0xd66   :  { %9179 = vst [vmem:[#allocation110_spill] sm:$0xff] %v6709_v11 }
 0xd69   :  { %v6680_v62 = vpop.f32.mrf.mxu1 }
 0xd6a   :  { %9168 = vst [vmem:[#allocation99_spill] sm:$0xff] %v6680_v62 }
 0xd6c   :  { %v6699_v0 = vpop.f32.mrf.mxu2  ;;  %v6703_v60 = vpop.f32.mrf.mxu0 }
 0xd6d   :  { %9175 = vst [vmem:[#allocation106_spill] sm:$0xff] %v6699_v0  ;;  %v6717_v14 = vpop.f32.mrf.mxu3 }
 0xd6e   :  { %9182 = vst [vmem:[#allocation113_spill] sm:$0xff] %v6717_v14 }
 0xd71   :  { %v6688_v9 = vpop.f32.mrf.mxu1 }
 0xd72   :  { %9171 = vst [vmem:[#allocation102_spill] sm:$0xff] %v6688_v9 }
 0xd74   :  { %4459 = vmatmul.msk.bf16.gmra.mxu1 %vm2222_vm15, %v4690_v3  ;;  %v6707_v6 = vpop.f32.mrf.mxu2  ;;  %v6711_v30 = vpop.f32.mrf.mxu0 }
 0xd75   :  { %9178 = vst [vmem:[#allocation109_spill] sm:$0xff] %v6707_v6  ;;  %v6725_v58 = vpop.f32.mrf.mxu3 }
 0xd76   :  { %9185 = vst [vmem:[#allocation116_spill] sm:$0xff] %v6725_v58 }
 0xd79   :  { %v6697_v63 = vpop.f32.mrf.mxu1 }
 0xd7a   :  { %9174 = vst [vmem:[#allocation105_spill] sm:$0xff] %v6697_v63 }
 0xd7c   :  { %v6715_v3 = vpop.f32.mrf.mxu2  ;;  %v6719_v24 = vpop.f32.mrf.mxu0 }
 0xd7d   :  { %9181 = vst [vmem:[#allocation112_spill] sm:$0xff] %v6715_v3  ;;  %v6733_v29 = vpop.f32.mrf.mxu3 }
 0xd7e   :  { %9188 = vst [vmem:[#allocation119_spill] sm:$0xff] %v6733_v29 }
 0xd81   :  { %v6705_v4 = vpop.f32.mrf.mxu1 }
 0xd82   :  { %9177 = vst [vmem:[#allocation108_spill] sm:$0xff] %v6705_v4 }
 0xd84   :  { %v6723_v61 = vpop.f32.mrf.mxu2  ;;  %v6727_v42 = vpop.f32.mrf.mxu0 }
 0xd85   :  { %9184 = vst [vmem:[#allocation115_spill] sm:$0xff] %v6723_v61 }
 0xd89   :  { %v6713_v17 = vpop.f32.mrf.mxu1 }
 0xd8a   :  { %9180 = vst [vmem:[#allocation111_spill] sm:$0xff] %v6713_v17  ;;  %v6741_v17 = vpop.f32.mrf.mxu3 }
 0xd8b   :  { %9191 = vst [vmem:[#allocation122_spill] sm:$0xff] %v6741_v17 }
 0xd8c   :  { %v6731_v11 = vpop.f32.mrf.mxu2  ;;  %v6735_v50 = vpop.f32.mrf.mxu0 }
 0xd8d   :  { %9187 = vst [vmem:[#allocation118_spill] sm:$0xff] %v6731_v11 }
 0xd91   :  { %v6721_v0 = vpop.f32.mrf.mxu1 }
 0xd92   :  { %9183 = vst [vmem:[#allocation114_spill] sm:$0xff] %v6721_v0  ;;  %v6749_v4 = vpop.f32.mrf.mxu3 }
 0xd93   :  { %9194 = vst [vmem:[#allocation125_spill] sm:$0xff] %v6749_v4 }
 0xd94   :  { %v6739_v14 = vpop.f32.mrf.mxu2  ;;  %v6743_v0 = vpop.f32.mrf.mxu0 }
 0xd95   :  { %9190 = vst [vmem:[#allocation121_spill] sm:$0xff] %v6739_v14 }
 0xd99   :  { %v6729_v6 = vpop.f32.mrf.mxu1 }
 0xd9a   :  { %9186 = vst [vmem:[#allocation117_spill] sm:$0xff] %v6729_v6  ;;  %v6757_v63 = vpop.f32.mrf.mxu3 }
 0xd9b   :  { %9197 = vst [vmem:[#allocation128_spill] sm:$0xff] %v6757_v63 }
 0xd9c   :  { %v6747_v58 = vpop.f32.mrf.mxu2  ;;  %v6751_v6 = vpop.f32.mrf.mxu0 }
 0xd9d   :  { %9193 = vst [vmem:[#allocation124_spill] sm:$0xff] %v6747_v58 }
 0xda1   :  { %v6737_v3 = vpop.f32.mrf.mxu1 }
 0xda2   :  { %9189 = vst [vmem:[#allocation120_spill] sm:$0xff] %v6737_v3  ;;  %v6765_v9 = vpop.f32.mrf.mxu3 }
 0xda3   :  { %9200 = vst [vmem:[#allocation131_spill] sm:$0xff] %v6765_v9 }
 0xda4   :  { %v6755_v29 = vpop.f32.mrf.mxu2  ;;  %v6759_v3 = vpop.f32.mrf.mxu0 }
 0xda5   :  { %9196 = vst [vmem:[#allocation127_spill] sm:$0xff] %v6755_v29 }
 0xda9   :  { %v6745_v61 = vpop.f32.mrf.mxu1 }
 0xdaa   :  { %9192 = vst [vmem:[#allocation123_spill] sm:$0xff] %v6745_v61  ;;  %v6773_v62 = vpop.f32.mrf.mxu3 }
 0xdab   :  { %9203 = vst [vmem:[#allocation134_spill] sm:$0xff] %v6773_v62 }
 0xdac   :  { %v6763_v17 = vpop.f32.mrf.mxu2  ;;  %v6767_v61 = vpop.f32.mrf.mxu0 }
 0xdad   :  { %9199 = vst [vmem:[#allocation130_spill] sm:$0xff] %v6763_v17 }
 0xdb1   :  { %v6753_v11 = vpop.f32.mrf.mxu1 }
 0xdb2   :  { %9195 = vst [vmem:[#allocation126_spill] sm:$0xff] %v6753_v11  ;;  %v6781_v1 = vpop.f32.mrf.mxu3 }
 0xdb3   :  { %9206 = vst [vmem:[#allocation137_spill] sm:$0xff] %v6781_v1 }
 0xdb4   :  { %v6771_v4 = vpop.f32.mrf.mxu2  ;;  %v6775_v11 = vpop.f32.mrf.mxu0 }
 0xdb5   :  { %9202 = vst [vmem:[#allocation133_spill] sm:$0xff] %v6771_v4 }
 0xdb9   :  { %v6761_v14 = vpop.f32.mrf.mxu1 }
 0xdba   :  { %9198 = vst [vmem:[#allocation129_spill] sm:$0xff] %v6761_v14  ;;  %v6789_v5 = vpop.f32.mrf.mxu3 }
 0xdbb   :  { %9209 = vst [vmem:[#allocation140_spill] sm:$0xff] %v6789_v5 }
 0xdbc   :  { %v6779_v63 = vpop.f32.mrf.mxu2  ;;  %v6783_v14 = vpop.f32.mrf.mxu0 }
 0xdbd   :  { %9205 = vst [vmem:[#allocation136_spill] sm:$0xff] %v6779_v63 }
 0xdc1   :  { %v6769_v58 = vpop.f32.mrf.mxu1 }
 0xdc2   :  { %9201 = vst [vmem:[#allocation132_spill] sm:$0xff] %v6769_v58 }
 0xdc4   :  { %v6787_v9 = vpop.f32.mrf.mxu2 }
 0xdc5   :  { %9208 = vst [vmem:[#allocation139_spill] sm:$0xff] %v6787_v9 }
 0xdc9   :  { %v6777_v29 = vpop.f32.mrf.mxu1 }
 0xdca   :  { %9204 = vst [vmem:[#allocation135_spill] sm:$0xff] %v6777_v29 }
 0xdd1   :  { %v6785_v17 = vpop.f32.mrf.mxu1 }
 0xdd2   :  { %9207 = vst [vmem:[#allocation138_spill] sm:$0xff] %v6785_v17 }
 0xdd9   :  { %v6791_v58 = vpop.f32.mrf.mxu1 }
 0xdda   :  { %9210 = vst [vmem:[#allocation141_spill] sm:$0xff] %v6791_v58 }
 0xde1   :  { %v6793_v4 = vpop.f32.mrf.mxu1 }
 0xde2   :  { %9211 = vst [vmem:[#allocation142_spill] sm:$0xff] %v6793_v4 }
 0xde9   :  { %v6795_v62 = vpop.f32.mrf.mxu1 }
 0xdea   :  { %9212 = vst [vmem:[#allocation143_spill] sm:$0xff] %v6795_v62 }
 0xdf1   :  { %v6797_v16 = vpop.f32.mrf.mxu1 }
 0xdf2   :  { %9213 = vst [vmem:[#allocation144_spill] sm:$0xff] %v6797_v16 }
 0xdf9   :  { %v6799_v29 = vpop.f32.mrf.mxu1 }
 0xdfa   :  { %9214 = vst [vmem:[#allocation145_spill] sm:$0xff] %v6799_v29 }
 0xdfb   :  { %5222 = dma.done.wait [#allocation5 + $0x1], 7680 }
 0xdfc   :  { %5223 = vsyncadd [#allocation5 + $0x1], 4294959616  ;;  %v9223_v32 = vld [vmem:[#allocation114_spill] sm:$0xff]  ;;  %v9224_v46 = vld [vmem:[#allocation117_spill] sm:$0xff]  ;;  %v9338_v9 = vpack.c.bf16 %v6579_v31, %v6579_v31  ;;  %v9339_v63 = vpack.c.bf16 %v6584_v34, %v6584_v34  ;;  %v9340_v62 = vpack.c.bf16 %v6591_v28, %v6591_v28  ;;  %v9341_v17 = vpack.c.bf16 %v6598_v45, %v6598_v45 }
 0xdfd   :  { %v9342_v31 = vpack.c.bf16 %v6607_v26, %v6607_v26  ;;  %v9343_v34 = vpack.c.bf16 %v6614_v22, %v6614_v22  ;;  %v9344_v28 = vpack.c.bf16 %v6623_v20, %v6623_v20  ;;  %v9345_v45 = vpack.c.bf16 %v6632_v15, %v6632_v15  ;;  %v9384_v1 = vld [vmem:[#allocation72_spill] sm:$0xff]  ;;  %v9386_v55 = vld [vmem:[#allocation73_spill] sm:$0xff]  ;;  %v9388_v58 = vld [vmem:[#allocation75_spill] sm:$0xff] }
 0xdfe   :  { %v7164_v25 = vunpack.c.l.bf16 %v9338_v9  ;;  %v7169_v21 = vunpack.c.l.bf16 %v9339_v63  ;;  %v7174_v29 = vunpack.c.l.bf16 %v9340_v62  ;;  %v7179_v18 = vunpack.c.l.bf16 %v9341_v17  ;;  %v9390_v16 = vld [vmem:[#allocation77_spill] sm:$0xff]  ;;  %v9393_v23 = vld [vmem:[#allocation79_spill] sm:$0xff]  ;;  %v9399_v5 = vld [vmem:[#allocation84_spill] sm:$0xff] }
 0xdff   :  { %v7184_v9 = vunpack.c.l.bf16 %v9342_v31  ;;  %v7189_v63 = vunpack.c.l.bf16 %v9343_v34  ;;  %v7194_v62 = vunpack.c.l.bf16 %v9344_v28  ;;  %v7199_v17 = vunpack.c.l.bf16 %v9345_v45  ;;  %v9396_v19 = vld [vmem:[#allocation81_spill] sm:$0xff]  ;;  %v9402_v4 = vld [vmem:[#allocation87_spill] sm:$0xff] }
 0xe00   :  { %v9346_v26 = vpack.c.bf16 %v6643_v12, %v6643_v12  ;;  %v9347_v22 = vpack.c.bf16 %v6652_v7, %v6652_v7  ;;  %v9348_v20 = vpack.c.bf16 %v6661_v13, %v6661_v13  ;;  %v9349_v15 = vpack.c.bf16 %v6669_v2, %v6669_v2 }
 0xe01   :  { %v9350_v12 = vpack.c.bf16 %v6678_v8, %v6678_v8  ;;  %v9351_v7 = vpack.c.bf16 %v6686_v56, %v6686_v56  ;;  %v9352_v13 = vpack.c.bf16 %v6695_v10, %v6695_v10  ;;  %v9353_v2 = vpack.c.bf16 %v6703_v60, %v6703_v60 }
 0xe02   :  { %v7204_v31 = vunpack.c.l.bf16 %v9346_v26  ;;  %v7209_v34 = vunpack.c.l.bf16 %v9347_v22  ;;  %v7214_v28 = vunpack.c.l.bf16 %v9348_v20  ;;  %v7219_v45 = vunpack.c.l.bf16 %v9349_v15 }
 0xe03   :  { %v7224_v26 = vunpack.c.l.bf16 %v9350_v12  ;;  %v7229_v22 = vunpack.c.l.bf16 %v9351_v7  ;;  %v7234_v20 = vunpack.c.l.bf16 %v9352_v13  ;;  %v7239_v15 = vunpack.c.l.bf16 %v9353_v2 }
 0xe04   :  { %v9354_v8 = vpack.c.bf16 %v6711_v30, %v6711_v30  ;;  %v9355_v56 = vpack.c.bf16 %v6719_v24, %v6719_v24  ;;  %v9356_v10 = vpack.c.bf16 %v6727_v42, %v6727_v42  ;;  %v9357_v60 = vpack.c.bf16 %v6735_v50, %v6735_v50 }
 0xe05   :  { %v9358_v30 = vpack.c.bf16 %v6743_v0, %v6743_v0  ;;  %v9359_v24 = vpack.c.bf16 %v6751_v6, %v6751_v6  ;;  %v9360_v42 = vpack.c.bf16 %v6759_v3, %v6759_v3  ;;  %v9361_v50 = vpack.c.bf16 %v6767_v61, %v6767_v61 }
 0xe06   :  { %v7244_v12 = vunpack.c.l.bf16 %v9354_v8  ;;  %v7249_v7 = vunpack.c.l.bf16 %v9355_v56  ;;  %v7254_v13 = vunpack.c.l.bf16 %v9356_v10  ;;  %v7259_v2 = vunpack.c.l.bf16 %v9357_v60 }
 0xe07   :  { %v7264_v8 = vunpack.c.l.bf16 %v9358_v30  ;;  %v7269_v56 = vunpack.c.l.bf16 %v9359_v24  ;;  %v7274_v10 = vunpack.c.l.bf16 %v9360_v42  ;;  %v7279_v60 = vunpack.c.l.bf16 %v9361_v50 }
 0xe08   :  { %v9362_v0 = vpack.c.bf16 %v6775_v11, %v6775_v11  ;;  %v9363_v6 = vpack.c.bf16 %v6783_v14, %v6783_v14  ;;  %v9364_v3 = vpack.c.bf16 %v6509_v59, %v6509_v59  ;;  %v9365_v61 = vpack.c.bf16 %v6512_v38, %v6512_v38 }
 0xe09   :  { %v9366_v11 = vpack.c.bf16 %v6514_v37, %v6514_v37  ;;  %v9367_v14 = vpack.c.bf16 %v6517_v41, %v6517_v41  ;;  %v9368_v59 = vpack.c.bf16 %v6520_v33, %v6520_v33  ;;  %v9369_v38 = vpack.c.bf16 %v6524_v35, %v6524_v35 }
 0xe0a   :  { %v7284_v30 = vunpack.c.l.bf16 %v9362_v0  ;;  %v7289_v24 = vunpack.c.l.bf16 %v9363_v6  ;;  %v7294_v42 = vunpack.c.l.bf16 %v9364_v3  ;;  %v7299_v50 = vunpack.c.l.bf16 %v9365_v61 }
 0xe0b   :  { %v7304_v0 = vunpack.c.l.bf16 %v9366_v11  ;;  %v7309_v6 = vunpack.c.l.bf16 %v9367_v14  ;;  %v7314_v3 = vunpack.c.l.bf16 %v9368_v59  ;;  %v7319_v61 = vunpack.c.l.bf16 %v9369_v38 }
 0xe0c   :  { %v9370_v37 = vpack.c.bf16 %v6527_v44, %v6527_v44  ;;  %v9371_v41 = vpack.c.bf16 %v6531_v49, %v6531_v49  ;;  %v9372_v33 = vpack.c.bf16 %v6534_v47, %v6534_v47  ;;  %v9373_v35 = vpack.c.bf16 %v6539_v48, %v6539_v48 }
 0xe0d   :  { %v9374_v44 = vpack.c.bf16 %v6542_v54, %v6542_v54  ;;  %v9375_v49 = vpack.c.bf16 %v6547_v39, %v6547_v39  ;;  %v9376_v47 = vpack.c.bf16 %v6550_v36, %v6550_v36  ;;  %v9377_v48 = vpack.c.bf16 %v6555_v43, %v6555_v43 }
 0xe0e   :  { %v7324_v11 = vunpack.c.l.bf16 %v9370_v37  ;;  %v7329_v14 = vunpack.c.l.bf16 %v9371_v41  ;;  %v7334_v59 = vunpack.c.l.bf16 %v9372_v33  ;;  %v7339_v38 = vunpack.c.l.bf16 %v9373_v35 }
 0xe0f   :  { %v7344_v37 = vunpack.c.l.bf16 %v9374_v44  ;;  %v7349_v41 = vunpack.c.l.bf16 %v9375_v49  ;;  %v7354_v33 = vunpack.c.l.bf16 %v9376_v47  ;;  %v7359_v35 = vunpack.c.l.bf16 %v9377_v48 }
 0xe10   :  { %v9378_v54 = vpack.c.bf16 %v6558_v40, %v6558_v40  ;;  %v9379_v39 = vpack.c.bf16 %v6563_v52, %v6563_v52  ;;  %v9380_v36 = vpack.c.bf16 %v6566_v53, %v6566_v53  ;;  %v9381_v43 = vpack.c.bf16 %v6571_v51, %v6571_v51 }
 0xe11   :  { %v9382_v40 = vpack.c.bf16 %v6574_v27, %v6574_v27  ;;  %v9383_v52 = vpack.c.bf16 %v6581_v57, %v6581_v57  ;;  %v9385_v53 = vpack.c.bf16 %v9384_v1, %v9384_v1  ;;  %v9387_v51 = vpack.c.bf16 %v9386_v55, %v9386_v55 }
 0xe12   :  { %v7364_v44 = vunpack.c.l.bf16 %v9378_v54  ;;  %v7369_v49 = vunpack.c.l.bf16 %v9379_v39  ;;  %v7374_v47 = vunpack.c.l.bf16 %v9380_v36  ;;  %v7379_v48 = vunpack.c.l.bf16 %v9381_v43 }
 0xe13   :  { %v7384_v54 = vunpack.c.l.bf16 %v9382_v40  ;;  %v7389_v39 = vunpack.c.l.bf16 %v9383_v52  ;;  %v7394_v36 = vunpack.c.l.bf16 %v9385_v53  ;;  %v7399_v43 = vunpack.c.l.bf16 %v9387_v51 }
 0xe14   :  { %v9389_v27 = vpack.c.bf16 %v9388_v58, %v9388_v58  ;;  %v9391_v57 = vpack.c.bf16 %v9390_v16, %v9390_v16  ;;  %v9394_v1 = vpack.c.bf16 %v9393_v23, %v9393_v23  ;;  %v9397_v55 = vpack.c.bf16 %v9396_v19, %v9396_v19 }
 0xe15   :  { %v9400_v58 = vpack.c.bf16 %v9399_v5, %v9399_v5  ;;  %v9403_v16 = vpack.c.bf16 %v9402_v4, %v9402_v4 }
 0xe16   :  { %v7404_v40 = vunpack.c.l.bf16 %v9389_v27  ;;  %v7409_v52 = vunpack.c.l.bf16 %v9391_v57  ;;  %v7414_v53 = vunpack.c.l.bf16 %v9394_v1  ;;  %v7419_v51 = vunpack.c.l.bf16 %v9397_v55 }
 0xe17   :  { %v7424_v27 = vunpack.c.l.bf16 %v9400_v58  ;;  %v7429_v57 = vunpack.c.l.bf16 %v9403_v16 }
 0xe18   :  { %9392 = vst [vmem:[#allocation114_spill] sm:$0xff] %v7409_v52  ;;  %v9405_v52 = vld [vmem:[#allocation90_spill] sm:$0xff] }
 0xe19   :  { %9395 = vst [vmem:[#allocation117_spill] sm:$0xff] %v7414_v53  ;;  %v9406_v23 = vpack.c.bf16 %v9405_v52, %v9405_v52  ;;  %v9408_v53 = vld [vmem:[#allocation93_spill] sm:$0xff] }
 0xe1a   :  { %9398 = vst [vmem:[#allocation72_spill] sm:$0xff] %v7419_v51  ;;  %v9409_v19 = vpack.c.bf16 %v9408_v53, %v9408_v53  ;;  %v9411_v51 = vld [vmem:[#allocation96_spill] sm:$0xff] }
 0xe1b   :  { %9401 = vst [vmem:[#allocation73_spill] sm:$0xff] %v7424_v27  ;;  %v7434_v1 = vunpack.c.l.bf16 %v9406_v23  ;;  %v9412_v5 = vpack.c.bf16 %v9411_v51, %v9411_v51  ;;  %v9414_v27 = vld [vmem:[#allocation99_spill] sm:$0xff] }
 0xe1c   :  { %9404 = vst [vmem:[#allocation75_spill] sm:$0xff] %v7429_v57  ;;  %v7439_v55 = vunpack.c.l.bf16 %v9409_v19  ;;  %v9415_v4 = vpack.c.bf16 %v9414_v27, %v9414_v27  ;;  %v9416_v57 = vld [vmem:[#allocation102_spill] sm:$0xff] }
 0xe1d   :  { %9407 = vst [vmem:[#allocation77_spill] sm:$0xff] %v7434_v1  ;;  %v7444_v58 = vunpack.c.l.bf16 %v9412_v5  ;;  %v9417_v52 = vpack.c.bf16 %v9416_v57, %v9416_v57  ;;  %v9418_v1 = vld [vmem:[#allocation105_spill] sm:$0xff]  ;;  %v9427_v57 = vpack.c.bf16 %v9223_v32, %v9223_v32 }
 0xe1e   :  { %9410 = vst [vmem:[#allocation79_spill] sm:$0xff] %v7439_v55  ;;  %v7449_v16 = vunpack.c.l.bf16 %v9415_v4  ;;  %v9419_v53 = vpack.c.bf16 %v9418_v1, %v9418_v1  ;;  %v9421_v55 = vld [vmem:[#allocation108_spill] sm:$0xff]  ;;  %v9429_v1 = vpack.c.bf16 %v9224_v46, %v9224_v46 }
 0xe1f   :  { %9413 = vst [vmem:[#allocation81_spill] sm:$0xff] %v7444_v58  ;;  %v7454_v23 = vunpack.c.l.bf16 %v9417_v52  ;;  %v9422_v51 = vpack.c.bf16 %v9421_v55, %v9421_v55  ;;  %v9424_v58 = vld [vmem:[#allocation111_spill] sm:$0xff]  ;;  %v7474_v52 = vunpack.c.l.bf16 %v9427_v57 }
 0xe20   :  { %v7459_v19 = vunpack.c.l.bf16 %v9419_v53  ;;  %v9425_v27 = vpack.c.bf16 %v9424_v58, %v9424_v58  ;;  %v7479_v53 = vunpack.c.l.bf16 %v9429_v1 }
 0xe21   :  { %v7464_v5 = vunpack.c.l.bf16 %v9422_v51  ;;  %9428 = vst [vmem:[#allocation93_spill] sm:$0xff] %v7474_v52  ;;  %v9440_v52 = vld [vmem:[#allocation129_spill] sm:$0xff] }
 0xe22   :  { %9420 = vst [vmem:[#allocation84_spill] sm:$0xff] %v7459_v19  ;;  %v7469_v4 = vunpack.c.l.bf16 %v9425_v27  ;;  %v9431_v19 = vld [vmem:[#allocation120_spill] sm:$0xff]  ;;  %v9441_v46 = vpack.c.bf16 %v9440_v52, %v9440_v52 }
 0xe23   :  { %9423 = vst [vmem:[#allocation87_spill] sm:$0xff] %v7464_v5  ;;  %v9432_v55 = vpack.c.bf16 %v9431_v19, %v9431_v19  ;;  %v9434_v5 = vld [vmem:[#allocation123_spill] sm:$0xff] }
 0xe24   :  { %9426 = vst [vmem:[#allocation90_spill] sm:$0xff] %v7469_v4  ;;  %v9435_v58 = vpack.c.bf16 %v9434_v5, %v9434_v5  ;;  %v9437_v4 = vld [vmem:[#allocation126_spill] sm:$0xff]  ;;  %v7499_v1 = vunpack.c.l.bf16 %v9441_v46 }
 0xe25   :  { %9430 = vst [vmem:[#allocation96_spill] sm:$0xff] %v7479_v53  ;;  %v7484_v51 = vunpack.c.l.bf16 %v9432_v55  ;;  %v9438_v32 = vpack.c.bf16 %v9437_v4, %v9437_v4  ;;  %v9443_v53 = vld [vmem:[#allocation132_spill] sm:$0xff] }
 0xe26   :  { %v7489_v27 = vunpack.c.l.bf16 %v9435_v58  ;;  %9442 = vst [vmem:[#allocation108_spill] sm:$0xff] %v7499_v1  ;;  %v9444_v19 = vpack.c.bf16 %v9443_v53, %v9443_v53  ;;  %v9455_v1 = vld [vmem:[#allocation142_spill] sm:$0xff] }
 0xe27   :  { %9433 = vst [vmem:[#allocation99_spill] sm:$0xff] %v7484_v51  ;;  %v7494_v57 = vunpack.c.l.bf16 %v9438_v32  ;;  %v9446_v51 = vld [vmem:[#allocation135_spill] sm:$0xff]  ;;  %v9456_v53 = vpack.c.bf16 %v9455_v1, %v9455_v1 }
 0xe28   :  { %9436 = vst [vmem:[#allocation102_spill] sm:$0xff] %v7489_v27  ;;  %v7504_v55 = vunpack.c.l.bf16 %v9444_v19  ;;  %v9447_v5 = vpack.c.bf16 %v9446_v51, %v9446_v51  ;;  %v9449_v27 = vld [vmem:[#allocation138_spill] sm:$0xff] }
 0xe29   :  { %9439 = vst [vmem:[#allocation105_spill] sm:$0xff] %v7494_v57  ;;  %v9450_v4 = vpack.c.bf16 %v9449_v27, %v9449_v27  ;;  %v9452_v57 = vld [vmem:[#allocation141_spill] sm:$0xff]  ;;  %v7524_v19 = vunpack.c.l.bf16 %v9456_v53 }
 0xe2a   :  { %9445 = vst [vmem:[#allocation111_spill] sm:$0xff] %v7504_v55  ;;  %v7509_v58 = vunpack.c.l.bf16 %v9447_v5  ;;  %v9453_v52 = vpack.c.bf16 %v9452_v57, %v9452_v57  ;;  %v9458_v55 = vld [vmem:[#allocation143_spill] sm:$0xff] }
 0xe2b   :  { %v7514_v32 = vunpack.c.l.bf16 %v9450_v4  ;;  %9457 = vst [vmem:[#allocation129_spill] sm:$0xff] %v7524_v19  ;;  %v9459_v51 = vpack.c.bf16 %v9458_v55, %v9458_v55  ;;  %v9470_v19 = vld [vmem:[#allocation76_spill] sm:$0xff] }
 0xe2c   :  { %9448 = vst [vmem:[#allocation120_spill] sm:$0xff] %v7509_v58  ;;  %v7519_v46 = vunpack.c.l.bf16 %v9453_v52  ;;  %v9461_v58 = vld [vmem:[#allocation144_spill] sm:$0xff]  ;;  %v9471_v55 = vpack.c.bf16 %v9470_v19, %v9470_v19 }
 0xe2d   :  { %9451 = vst [vmem:[#allocation123_spill] sm:$0xff] %v7514_v32  ;;  %v7529_v5 = vunpack.c.l.bf16 %v9459_v51  ;;  %v9462_v27 = vpack.c.bf16 %v9461_v58, %v9461_v58  ;;  %v9464_v32 = vld [vmem:[#allocation145_spill] sm:$0xff] }
 0xe2e   :  { %9454 = vst [vmem:[#allocation126_spill] sm:$0xff] %v7519_v46  ;;  %v9465_v57 = vpack.c.bf16 %v9464_v32, %v9464_v32  ;;  %v9467_v46 = vld [vmem:[#allocation74_spill] sm:$0xff]  ;;  %v7549_v51 = vunpack.c.l.bf16 %v9471_v55 }
 0xe2f   :  { %9460 = vst [vmem:[#allocation132_spill] sm:$0xff] %v7529_v5  ;;  %v7534_v4 = vunpack.c.l.bf16 %v9462_v27  ;;  %v9468_v1 = vpack.c.bf16 %v9467_v46, %v9467_v46  ;;  %v9473_v5 = vld [vmem:[#allocation78_spill] sm:$0xff] }
 0xe30   :  { %v7539_v52 = vunpack.c.l.bf16 %v9465_v57  ;;  %9472 = vst [vmem:[#allocation142_spill] sm:$0xff] %v7549_v51  ;;  %v9474_v58 = vpack.c.bf16 %v9473_v5, %v9473_v5  ;;  %v9485_v51 = vld [vmem:[#allocation88_spill] sm:$0xff] }
 0xe31   :  { %9463 = vst [vmem:[#allocation135_spill] sm:$0xff] %v7534_v4  ;;  %v7544_v53 = vunpack.c.l.bf16 %v9468_v1  ;;  %v9476_v4 = vld [vmem:[#allocation80_spill] sm:$0xff]  ;;  %v9486_v5 = vpack.c.bf16 %v9485_v51, %v9485_v51 }
 0xe32   :  { %9466 = vst [vmem:[#allocation138_spill] sm:$0xff] %v7539_v52  ;;  %v7554_v27 = vunpack.c.l.bf16 %v9474_v58  ;;  %v9477_v32 = vpack.c.bf16 %v9476_v4, %v9476_v4  ;;  %v9479_v52 = vld [vmem:[#allocation82_spill] sm:$0xff] }
 0xe33   :  { %9469 = vst [vmem:[#allocation141_spill] sm:$0xff] %v7544_v53  ;;  %v9480_v46 = vpack.c.bf16 %v9479_v52, %v9479_v52  ;;  %v9482_v53 = vld [vmem:[#allocation85_spill] sm:$0xff]  ;;  %v7574_v58 = vunpack.c.l.bf16 %v9486_v5 }
 0xe34   :  { %9475 = vst [vmem:[#allocation143_spill] sm:$0xff] %v7554_v27  ;;  %v7559_v57 = vunpack.c.l.bf16 %v9477_v32  ;;  %v9483_v19 = vpack.c.bf16 %v9482_v53, %v9482_v53  ;;  %v9488_v27 = vld [vmem:[#allocation91_spill] sm:$0xff] }
 0xe35   :  { %v7564_v1 = vunpack.c.l.bf16 %v9480_v46  ;;  %9487 = vst [vmem:[#allocation76_spill] sm:$0xff] %v7574_v58  ;;  %v9489_v4 = vpack.c.bf16 %v9488_v27, %v9488_v27  ;;  %v9500_v58 = vld [vmem:[#allocation103_spill] sm:$0xff] }
 0xe36   :  { %9478 = vst [vmem:[#allocation144_spill] sm:$0xff] %v7559_v57  ;;  %v7569_v55 = vunpack.c.l.bf16 %v9483_v19  ;;  %v9491_v57 = vld [vmem:[#allocation94_spill] sm:$0xff]  ;;  %v9501_v27 = vpack.c.bf16 %v9500_v58, %v9500_v58 }
 0xe37   :  { %9481 = vst [vmem:[#allocation145_spill] sm:$0xff] %v7564_v1  ;;  %v7579_v32 = vunpack.c.l.bf16 %v9489_v4  ;;  %v9492_v52 = vpack.c.bf16 %v9491_v57, %v9491_v57  ;;  %v9494_v1 = vld [vmem:[#allocation97_spill] sm:$0xff] }
 0xe38   :  { %9484 = vst [vmem:[#allocation74_spill] sm:$0xff] %v7569_v55  ;;  %v9495_v53 = vpack.c.bf16 %v9494_v1, %v9494_v1  ;;  %v9497_v55 = vld [vmem:[#allocation100_spill] sm:$0xff]  ;;  %v7599_v4 = vunpack.c.l.bf16 %v9501_v27 }
 0xe39   :  { %9490 = vst [vmem:[#allocation78_spill] sm:$0xff] %v7579_v32  ;;  %v7584_v46 = vunpack.c.l.bf16 %v9492_v52  ;;  %v9498_v51 = vpack.c.bf16 %v9497_v55, %v9497_v55  ;;  %v9503_v32 = vld [vmem:[#allocation106_spill] sm:$0xff] }
 0xe3a   :  { %v7589_v19 = vunpack.c.l.bf16 %v9495_v53  ;;  %9502 = vst [vmem:[#allocation88_spill] sm:$0xff] %v7599_v4  ;;  %v9504_v57 = vpack.c.bf16 %v9503_v32, %v9503_v32  ;;  %v9515_v4 = vld [vmem:[#allocation118_spill] sm:$0xff] }
 0xe3b   :  { %9493 = vst [vmem:[#allocation80_spill] sm:$0xff] %v7584_v46  ;;  %v7594_v5 = vunpack.c.l.bf16 %v9498_v51  ;;  %v9506_v46 = vld [vmem:[#allocation109_spill] sm:$0xff]  ;;  %v9516_v32 = vpack.c.bf16 %v9515_v4, %v9515_v4 }
 0xe3c   :  { %9496 = vst [vmem:[#allocation82_spill] sm:$0xff] %v7589_v19  ;;  %v7604_v52 = vunpack.c.l.bf16 %v9504_v57  ;;  %v9507_v1 = vpack.c.bf16 %v9506_v46, %v9506_v46  ;;  %v9509_v19 = vld [vmem:[#allocation112_spill] sm:$0xff] }
 0xe3d   :  { %9499 = vst [vmem:[#allocation85_spill] sm:$0xff] %v7594_v5  ;;  %v9510_v55 = vpack.c.bf16 %v9509_v19, %v9509_v19  ;;  %v9512_v5 = vld [vmem:[#allocation115_spill] sm:$0xff]  ;;  %v7624_v57 = vunpack.c.l.bf16 %v9516_v32 }
 0xe3e   :  { %9505 = vst [vmem:[#allocation91_spill] sm:$0xff] %v7604_v52  ;;  %v7609_v53 = vunpack.c.l.bf16 %v9507_v1  ;;  %v9513_v58 = vpack.c.bf16 %v9512_v5, %v9512_v5  ;;  %v9518_v52 = vld [vmem:[#allocation121_spill] sm:$0xff] }
 0xe3f   :  { %v7614_v51 = vunpack.c.l.bf16 %v9510_v55  ;;  %9517 = vst [vmem:[#allocation103_spill] sm:$0xff] %v7624_v57  ;;  %v9519_v46 = vpack.c.bf16 %v9518_v52, %v9518_v52  ;;  %v9530_v57 = vld [vmem:[#allocation133_spill] sm:$0xff] }
 0xe40   :  { %9508 = vst [vmem:[#allocation94_spill] sm:$0xff] %v7609_v53  ;;  %v7619_v27 = vunpack.c.l.bf16 %v9513_v58  ;;  %v9521_v53 = vld [vmem:[#allocation124_spill] sm:$0xff]  ;;  %v9531_v52 = vpack.c.bf16 %v9530_v57, %v9530_v57 }
 0xe41   :  { %9511 = vst [vmem:[#allocation97_spill] sm:$0xff] %v7614_v51  ;;  %v7629_v1 = vunpack.c.l.bf16 %v9519_v46  ;;  %v9522_v19 = vpack.c.bf16 %v9521_v53, %v9521_v53  ;;  %v9524_v51 = vld [vmem:[#allocation127_spill] sm:$0xff] }
 0xe42   :  { %9514 = vst [vmem:[#allocation100_spill] sm:$0xff] %v7619_v27  ;;  %v9525_v5 = vpack.c.bf16 %v9524_v51, %v9524_v51  ;;  %v9527_v27 = vld [vmem:[#allocation130_spill] sm:$0xff]  ;;  %v7649_v46 = vunpack.c.l.bf16 %v9531_v52 }
 0xe43   :  { %9520 = vst [vmem:[#allocation106_spill] sm:$0xff] %v7629_v1  ;;  %v7634_v55 = vunpack.c.l.bf16 %v9522_v19  ;;  %v9528_v4 = vpack.c.bf16 %v9527_v27, %v9527_v27  ;;  %v9533_v1 = vld [vmem:[#allocation136_spill] sm:$0xff] }
 0xe44   :  { %v7639_v58 = vunpack.c.l.bf16 %v9525_v5  ;;  %9532 = vst [vmem:[#allocation118_spill] sm:$0xff] %v7649_v46  ;;  %v9534_v53 = vpack.c.bf16 %v9533_v1, %v9533_v1  ;;  %v9545_v46 = vld [vmem:[#allocation89_spill] sm:$0xff] }
 0xe45   :  { %9523 = vst [vmem:[#allocation109_spill] sm:$0xff] %v7634_v55  ;;  %v7644_v32 = vunpack.c.l.bf16 %v9528_v4  ;;  %v9536_v55 = vld [vmem:[#allocation139_spill] sm:$0xff]  ;;  %v9546_v1 = vpack.c.bf16 %v9545_v46, %v9545_v46 }
 0xe46   :  { %9526 = vst [vmem:[#allocation112_spill] sm:$0xff] %v7639_v58  ;;  %v7654_v19 = vunpack.c.l.bf16 %v9534_v53  ;;  %v9537_v51 = vpack.c.bf16 %v9536_v55, %v9536_v55  ;;  %v9539_v58 = vld [vmem:[#allocation83_spill] sm:$0xff] }
 0xe47   :  { %9529 = vst [vmem:[#allocation115_spill] sm:$0xff] %v7644_v32  ;;  %v9540_v27 = vpack.c.bf16 %v9539_v58, %v9539_v58  ;;  %v9542_v32 = vld [vmem:[#allocation86_spill] sm:$0xff]  ;;  %v7674_v53 = vunpack.c.l.bf16 %v9546_v1 }
 0xe48   :  { %9535 = vst [vmem:[#allocation121_spill] sm:$0xff] %v7654_v19  ;;  %v7659_v5 = vunpack.c.l.bf16 %v9537_v51  ;;  %v9543_v57 = vpack.c.bf16 %v9542_v32, %v9542_v32  ;;  %v9548_v19 = vld [vmem:[#allocation92_spill] sm:$0xff] }
 0xe49   :  { %v7664_v4 = vunpack.c.l.bf16 %v9540_v27  ;;  %9547 = vst [vmem:[#allocation133_spill] sm:$0xff] %v7674_v53  ;;  %v9549_v55 = vpack.c.bf16 %v9548_v19, %v9548_v19  ;;  %v9560_v53 = vld [vmem:[#allocation104_spill] sm:$0xff] }
 0xe4a   :  { %9538 = vst [vmem:[#allocation124_spill] sm:$0xff] %v7659_v5  ;;  %v7669_v52 = vunpack.c.l.bf16 %v9543_v57  ;;  %v9551_v5 = vld [vmem:[#allocation95_spill] sm:$0xff]  ;;  %v9561_v19 = vpack.c.bf16 %v9560_v53, %v9560_v53 }
 0xe4b   :  { %9541 = vst [vmem:[#allocation127_spill] sm:$0xff] %v7664_v4  ;;  %v7679_v51 = vunpack.c.l.bf16 %v9549_v55  ;;  %v9552_v58 = vpack.c.bf16 %v9551_v5, %v9551_v5  ;;  %v9554_v4 = vld [vmem:[#allocation98_spill] sm:$0xff] }
 0xe4c   :  { %9544 = vst [vmem:[#allocation130_spill] sm:$0xff] %v7669_v52  ;;  %v9555_v32 = vpack.c.bf16 %v9554_v4, %v9554_v4  ;;  %v9557_v52 = vld [vmem:[#allocation101_spill] sm:$0xff]  ;;  %v7699_v55 = vunpack.c.l.bf16 %v9561_v19 }
 0xe4d   :  { %9550 = vst [vmem:[#allocation136_spill] sm:$0xff] %v7679_v51  ;;  %v7684_v27 = vunpack.c.l.bf16 %v9552_v58  ;;  %v9558_v46 = vpack.c.bf16 %v9557_v52, %v9557_v52  ;;  %v9563_v51 = vld [vmem:[#allocation107_spill] sm:$0xff] }
 0xe4e   :  { %v7689_v57 = vunpack.c.l.bf16 %v9555_v32  ;;  %9562 = vst [vmem:[#allocation89_spill] sm:$0xff] %v7699_v55  ;;  %v9564_v5 = vpack.c.bf16 %v9563_v51, %v9563_v51  ;;  %v9575_v55 = vld [vmem:[#allocation119_spill] sm:$0xff] }
 0xe4f   :  { %9553 = vst [vmem:[#allocation139_spill] sm:$0xff] %v7684_v27  ;;  %v7694_v1 = vunpack.c.l.bf16 %v9558_v46  ;;  %v9566_v27 = vld [vmem:[#allocation110_spill] sm:$0xff]  ;;  %v9576_v51 = vpack.c.bf16 %v9575_v55, %v9575_v55 }
 0xe50   :  { %9556 = vst [vmem:[#allocation83_spill] sm:$0xff] %v7689_v57  ;;  %v7704_v58 = vunpack.c.l.bf16 %v9564_v5  ;;  %v9567_v4 = vpack.c.bf16 %v9566_v27, %v9566_v27  ;;  %v9569_v57 = vld [vmem:[#allocation113_spill] sm:$0xff] }
 0xe51   :  { %9559 = vst [vmem:[#allocation86_spill] sm:$0xff] %v7694_v1  ;;  %v9570_v52 = vpack.c.bf16 %v9569_v57, %v9569_v57  ;;  %v9572_v1 = vld [vmem:[#allocation116_spill] sm:$0xff]  ;;  %v7724_v5 = vunpack.c.l.bf16 %v9576_v51 }
 0xe52   :  { %9565 = vst [vmem:[#allocation92_spill] sm:$0xff] %v7704_v58  ;;  %v7709_v32 = vunpack.c.l.bf16 %v9567_v4  ;;  %v9573_v53 = vpack.c.bf16 %v9572_v1, %v9572_v1  ;;  %v9578_v58 = vld [vmem:[#allocation122_spill] sm:$0xff] }
 0xe53   :  { %v7714_v46 = vunpack.c.l.bf16 %v9570_v52  ;;  %9577 = vst [vmem:[#allocation104_spill] sm:$0xff] %v7724_v5  ;;  %v9579_v27 = vpack.c.bf16 %v9578_v58, %v9578_v58  ;;  %v9589_v5 = vld [vmem:[#allocation134_spill] sm:$0xff] }
 0xe54   :  { %9568 = vst [vmem:[#allocation95_spill] sm:$0xff] %v7709_v32  ;;  %v7719_v19 = vunpack.c.l.bf16 %v9573_v53  ;;  %v9581_v32 = vld [vmem:[#allocation125_spill] sm:$0xff]  ;;  %v9590_v58 = vpack.c.bf16 %v9589_v5, %v9589_v5 }
 0xe55   :  { %9571 = vst [vmem:[#allocation98_spill] sm:$0xff] %v7714_v46  ;;  %v7729_v4 = vunpack.c.l.bf16 %v9579_v27  ;;  %v9582_v57 = vpack.c.bf16 %v9581_v32, %v9581_v32  ;;  %v9584_v46 = vld [vmem:[#allocation128_spill] sm:$0xff] }
 0xe56   :  { %9574 = vst [vmem:[#allocation101_spill] sm:$0xff] %v7719_v19  ;;  %v9585_v1 = vpack.c.bf16 %v9584_v46, %v9584_v46  ;;  %v9587_v19 = vld [vmem:[#allocation131_spill] sm:$0xff]  ;;  %v7749_v27 = vunpack.c.l.bf16 %v9590_v58 }
 0xe57   :  { %9580 = vst [vmem:[#allocation107_spill] sm:$0xff] %v7729_v4  ;;  %v7734_v52 = vunpack.c.l.bf16 %v9582_v57  ;;  %v9588_v55 = vpack.c.bf16 %v9587_v19, %v9587_v19  ;;  %v9592_v4 = vld [vmem:[#allocation137_spill] sm:$0xff] }
 0xe58   :  { %v7739_v53 = vunpack.c.l.bf16 %v9585_v1  ;;  %9591 = vst [vmem:[#allocation116_spill] sm:$0xff] %v7749_v27  ;;  %v9593_v32 = vpack.c.bf16 %v9592_v4, %v9592_v4  ;;  %v9601_v27 = vld [vmem:[#allocation13_spill] sm:$0xff] }
 0xe59   :  { %9583 = vst [vmem:[#allocation110_spill] sm:$0xff] %v7734_v52  ;;  %v7744_v51 = vunpack.c.l.bf16 %v9588_v55  ;;  %v9595_v52 = vld [vmem:[#allocation140_spill] sm:$0xff]  ;;  %v9602_v4 = vunpack.c.l.bf16 %v9601_v27 }
 0xe5a   :  { %9586 = vst [vmem:[#allocation113_spill] sm:$0xff] %v7739_v53  ;;  %v7754_v57 = vunpack.c.l.bf16 %v9593_v32  ;;  %v9596_v46 = vpack.c.bf16 %v9595_v52, %v9595_v52  ;;  %v9598_v53 = vld [vmem:[#allocation12_spill] sm:$0xff]  ;;  %v9603_v52 = vunpack.c.h.bf16 %v9601_v27 }
 0xe5b   :  { %v9599_v19 = vunpack.c.l.bf16 %v9598_v53  ;;  %v9600_v5 = vunpack.c.h.bf16 %v9598_v53  ;;  %v7774_v32 = vmul.f32 %v9602_v4, %v7174_v29  ;;  %v9610_v4 = vld [vmem:[#allocation16_spill] sm:$0xff] }
 0xe5c   :  { %9594 = vst [vmem:[#allocation119_spill] sm:$0xff] %v7754_v57  ;;  %v7759_v1 = vunpack.c.l.bf16 %v9596_v46  ;;  %v7779_v46 = vmul.f32 %v9603_v52, %v7179_v18  ;;  %v9611_v52 = vunpack.c.l.bf16 %v9610_v4 }
 0xe5d   :  { %v7764_v55 = vmul.f32 %v9599_v19, %v7164_v25  ;;  %v7769_v58 = vmul.f32 %v9600_v5, %v7169_v21  ;;  %v9607_v19 = vld [vmem:[#allocation15_spill] sm:$0xff] }
 0xe5e   :  { %9597 = vst [vmem:[#allocation122_spill] sm:$0xff] %v7759_v1  ;;  %v9604_v1 = vld [vmem:[#allocation14_spill] sm:$0xff]  ;;  %v9608_v5 = vunpack.c.l.bf16 %v9607_v19  ;;  %v9609_v27 = vunpack.c.h.bf16 %v9607_v19 }
 0xe5f   :  { %v9605_v57 = vunpack.c.l.bf16 %v9604_v1  ;;  %v9606_v53 = vunpack.c.h.bf16 %v9604_v1  ;;  %v9613_v1 = vld [vmem:[#allocation17_spill] sm:$0xff] }
 0xe60   :  { %v7794_v29 = vmul.f32 %v9608_v5, %v7194_v62  ;;  %v7799_v18 = vmul.f32 %v9609_v27, %v7199_v17  ;;  %v9615_v19 = vunpack.c.h.bf16 %v9613_v1  ;;  %v9616_v5 = vld [vmem:[#allocation18_spill] sm:$0xff] }
 0xe61   :  { %v7784_v25 = vmul.f32 %v9605_v57, %v7184_v9  ;;  %v7789_v21 = vmul.f32 %v9606_v53, %v7189_v63  ;;  %v7804_v9 = vmul.f32 %v9611_v52, %v7204_v31  ;;  %v9612_v57 = vunpack.c.h.bf16 %v9610_v4  ;;  %v9619_v52 = vld [vmem:[#allocation19_spill] sm:$0xff] }
 0xe62   :  { %v9614_v53 = vunpack.c.l.bf16 %v9613_v1  ;;  %v7819_v17 = vmul.f32 %v9615_v19, %v7219_v45  ;;  %v9617_v27 = vunpack.c.l.bf16 %v9616_v5  ;;  %v9618_v4 = vunpack.c.h.bf16 %v9616_v5 }
 0xe63   :  { %v7809_v63 = vmul.f32 %v9612_v57, %v7209_v34  ;;  %v9620_v57 = vunpack.c.l.bf16 %v9619_v52  ;;  %v9621_v1 = vunpack.c.h.bf16 %v9619_v52 }
 0xe64   :  { %v7814_v62 = vmul.f32 %v9614_v53, %v7214_v28  ;;  %v7824_v31 = vmul.f32 %v9617_v27, %v7224_v26  ;;  %v7829_v34 = vmul.f32 %v9618_v4, %v7229_v22  ;;  %v9622_v53 = vld [vmem:[#allocation20_spill] sm:$0xff]  ;;  %v9627_v27 = vld [vmem:[#allocation21_spill] sm:$0xff] }
 0xe65   :  { %v7834_v28 = vmul.f32 %v9620_v57, %v7234_v20  ;;  %v7839_v45 = vmul.f32 %v9621_v1, %v7239_v15  ;;  %v9623_v19 = vunpack.c.l.bf16 %v9622_v53  ;;  %v9625_v5 = vunpack.c.h.bf16 %v9622_v53  ;;  %v9630_v57 = vld [vmem:[#allocation22_spill] sm:$0xff] }
 0xe66   :  { %v9628_v4 = vunpack.c.l.bf16 %v9627_v27  ;;  %v9629_v52 = vunpack.c.h.bf16 %v9627_v27  ;;  %v9631_v1 = vunpack.c.l.bf16 %v9630_v57  ;;  %v9632_v53 = vunpack.c.h.bf16 %v9630_v57 }
 0xe67   :  { %v7844_v26 = vmul.f32 %v9623_v19, %v7244_v12  ;;  %v7849_v22 = vmul.f32 %v9625_v5, %v7249_v7  ;;  %v9633_v19 = vld [vmem:[#allocation23_spill] sm:$0xff] }
 0xe68   :  { %v7854_v20 = vmul.f32 %v9628_v4, %v7254_v13  ;;  %v7859_v15 = vmul.f32 %v9629_v52, %v7259_v2  ;;  %v7864_v12 = vmul.f32 %v9631_v1, %v7264_v8  ;;  %v7869_v7 = vmul.f32 %v9632_v53, %v7269_v56  ;;  %v9636_v4 = vld [vmem:[#allocation24_spill] sm:$0xff]  ;;  %v9639_v1 = vld [vmem:[#allocation25_spill] sm:$0xff] }
 0xe69   :  { %9624 = vst [vmem:[#allocation125_spill] sm:$0xff] %v7844_v26  ;;  %v9634_v5 = vunpack.c.l.bf16 %v9633_v19  ;;  %v9635_v27 = vunpack.c.h.bf16 %v9633_v19  ;;  %v9637_v52 = vunpack.c.l.bf16 %v9636_v4  ;;  %v9638_v57 = vunpack.c.h.bf16 %v9636_v4 }
 0xe6a   :  { %9626 = vst [vmem:[#allocation128_spill] sm:$0xff] %v7849_v22  ;;  %v9640_v53 = vunpack.c.l.bf16 %v9639_v1  ;;  %v9641_v19 = vunpack.c.h.bf16 %v9639_v1 }
 0xe6b   :  { %v7874_v13 = vmul.f32 %v9634_v5, %v7274_v10  ;;  %v7879_v2 = vmul.f32 %v9635_v27, %v7279_v60  ;;  %v7884_v8 = vmul.f32 %v9637_v52, %v7284_v30  ;;  %v7889_v56 = vmul.f32 %v9638_v57, %v7289_v24  ;;  %v9642_v5 = vld [vmem:[#allocation26_spill] sm:$0xff]  ;;  %v9645_v52 = vld [vmem:[#allocation27_spill] sm:$0xff] }
 0xe6c   :  { %v7894_v10 = vmul.f32 %v9640_v53, %v7294_v42  ;;  %v7899_v60 = vmul.f32 %v9641_v19, %v7299_v50  ;;  %v9643_v27 = vunpack.c.l.bf16 %v9642_v5  ;;  %v9644_v4 = vunpack.c.h.bf16 %v9642_v5  ;;  %v9648_v53 = vld [vmem:[#allocation28_spill] sm:$0xff] }
 0xe6d   :  { %v9646_v57 = vunpack.c.l.bf16 %v9645_v52  ;;  %v9647_v1 = vunpack.c.h.bf16 %v9645_v52  ;;  %v9649_v19 = vunpack.c.l.bf16 %v9648_v53  ;;  %v9651_v5 = vunpack.c.h.bf16 %v9648_v53 }
 0xe6e   :  { %v7904_v30 = vmul.f32 %v9643_v27, %v7304_v0  ;;  %v7909_v24 = vmul.f32 %v9644_v4, %v7309_v6  ;;  %v9653_v27 = vld [vmem:[#allocation29_spill] sm:$0xff] }
 0xe6f   :  { %v7914_v42 = vmul.f32 %v9646_v57, %v7314_v3  ;;  %v7919_v50 = vmul.f32 %v9647_v1, %v7319_v61  ;;  %v7924_v0 = vmul.f32 %v9649_v19, %v7324_v11  ;;  %v7929_v6 = vmul.f32 %v9651_v5, %v7329_v14  ;;  %v9656_v57 = vld [vmem:[#allocation30_spill] sm:$0xff]  ;;  %v9659_v19 = vld [vmem:[#allocation31_spill] sm:$0xff] }
 0xe70   :  { %v9654_v4 = vunpack.c.l.bf16 %v9653_v27  ;;  %v9655_v52 = vunpack.c.h.bf16 %v9653_v27  ;;  %v9657_v1 = vunpack.c.l.bf16 %v9656_v57  ;;  %v9658_v53 = vunpack.c.h.bf16 %v9656_v57 }
 0xe71   :  { %9650 = vst [vmem:[#allocation131_spill] sm:$0xff] %v7924_v0  ;;  %v9660_v5 = vunpack.c.l.bf16 %v9659_v19  ;;  %v9661_v27 = vunpack.c.h.bf16 %v9659_v19 }
 0xe72   :  { %9652 = vst [vmem:[#allocation134_spill] sm:$0xff] %v7929_v6  ;;  %v7934_v3 = vmul.f32 %v9654_v4, %v7334_v59  ;;  %v7939_v61 = vmul.f32 %v9655_v52, %v7339_v38  ;;  %v7944_v11 = vmul.f32 %v9657_v1, %v7344_v37  ;;  %v7949_v14 = vmul.f32 %v9658_v53, %v7349_v41  ;;  %v9662_v4 = vld [vmem:[#allocation32_spill] sm:$0xff]  ;;  %v9665_v1 = vld [vmem:[#allocation33_spill] sm:$0xff] }
 0xe73   :  { %v7954_v59 = vmul.f32 %v9660_v5, %v7354_v33  ;;  %v7959_v38 = vmul.f32 %v9661_v27, %v7359_v35  ;;  %v9663_v52 = vunpack.c.l.bf16 %v9662_v4  ;;  %v9664_v57 = vunpack.c.h.bf16 %v9662_v4  ;;  %v9668_v5 = vld [vmem:[#allocation34_spill] sm:$0xff] }
 0xe74   :  { %v9666_v53 = vunpack.c.l.bf16 %v9665_v1  ;;  %v9667_v19 = vunpack.c.h.bf16 %v9665_v1  ;;  %v9669_v27 = vunpack.c.l.bf16 %v9668_v5  ;;  %v9671_v4 = vunpack.c.h.bf16 %v9668_v5 }
 0xe75   :  { %v7964_v37 = vmul.f32 %v9663_v52, %v7364_v44  ;;  %v7969_v41 = vmul.f32 %v9664_v57, %v7369_v49  ;;  %v9673_v52 = vld [vmem:[#allocation35_spill] sm:$0xff] }
 0xe76   :  { %v7974_v33 = vmul.f32 %v9666_v53, %v7374_v47  ;;  %v7979_v35 = vmul.f32 %v9667_v19, %v7379_v48  ;;  %v7984_v44 = vmul.f32 %v9669_v27, %v7384_v54  ;;  %v7989_v49 = vmul.f32 %v9671_v4, %v7389_v39  ;;  %v9678_v53 = vld [vmem:[#allocation36_spill] sm:$0xff]  ;;  %v9681_v27 = vld [vmem:[#allocation114_spill] sm:$0xff]  ;;  %v9684_v4 = vld [vmem:[#allocation117_spill] sm:$0xff] }
 0xe77   :  { %v9674_v57 = vunpack.c.l.bf16 %v9673_v52  ;;  %v9676_v1 = vunpack.c.h.bf16 %v9673_v52  ;;  %v9679_v19 = vunpack.c.l.bf16 %v9678_v53  ;;  %v9682_v5 = vunpack.c.h.bf16 %v9678_v53 }
 0xe78   :  { %9670 = vst [vmem:[#allocation137_spill] sm:$0xff] %v7984_v44 }
 0xe79   :  { %9672 = vst [vmem:[#allocation140_spill] sm:$0xff] %v7989_v49  ;;  %v7994_v47 = vmul.f32 %v9674_v57, %v7394_v36  ;;  %v7999_v48 = vmul.f32 %v9676_v1, %v7399_v43  ;;  %v8004_v54 = vmul.f32 %v9679_v19, %v7404_v40  ;;  %v8009_v39 = vmul.f32 %v9682_v5, %v9681_v27  ;;  %v9685_v49 = vld [vmem:[#allocation37_spill] sm:$0xff]  ;;  %v9688_v57 = vld [vmem:[#allocation72_spill] sm:$0xff]  ;;  %v9695_v19 = vld [vmem:[#allocation75_spill] sm:$0xff] }
 0xe7a   :  { %v9686_v44 = vunpack.c.l.bf16 %v9685_v49  ;;  %v9689_v52 = vunpack.c.h.bf16 %v9685_v49  ;;  %v9691_v1 = vld [vmem:[#allocation73_spill] sm:$0xff] }
 0xe7b   :  { %9675 = vst [vmem:[#allocation12_spill] sm:$0xff] %v7994_v47  ;;  %v9698_v5 = vld [vmem:[#allocation77_spill] sm:$0xff] }
 0xe7c   :  { %9677 = vst [vmem:[#allocation13_spill] sm:$0xff] %v7999_v48  ;;  %v8014_v36 = vmul.f32 %v9686_v44, %v9684_v4  ;;  %v8019_v43 = vmul.f32 %v9689_v52, %v9688_v57  ;;  %v9692_v48 = vld [vmem:[#allocation38_spill] sm:$0xff]  ;;  %v9702_v4 = vld [vmem:[#allocation79_spill] sm:$0xff]  ;;  %v9705_v52 = vld [vmem:[#allocation81_spill] sm:$0xff] }
 0xe7d   :  { %9680 = vst [vmem:[#allocation14_spill] sm:$0xff] %v8004_v54  ;;  %v9693_v47 = vunpack.c.l.bf16 %v9692_v48  ;;  %v9696_v53 = vunpack.c.h.bf16 %v9692_v48 }
 0xe7e   :  { %9683 = vst [vmem:[#allocation15_spill] sm:$0xff] %v8009_v39  ;;  %v9699_v39 = vld [vmem:[#allocation39_spill] sm:$0xff] }
 0xe7f   :  { %9687 = vst [vmem:[#allocation16_spill] sm:$0xff] %v8014_v36  ;;  %v8024_v40 = vmul.f32 %v9693_v47, %v9691_v1  ;;  %v8029_v27 = vmul.f32 %v9696_v53, %v9695_v19  ;;  %v9700_v54 = vunpack.c.l.bf16 %v9699_v39  ;;  %v9703_v49 = vunpack.c.h.bf16 %v9699_v39  ;;  %v9711_v19 = vld [vmem:[#allocation41_spill] sm:$0xff] }
 0xe80   :  { %9690 = vst [vmem:[#allocation17_spill] sm:$0xff] %v8019_v43  ;;  %v9706_v43 = vld [vmem:[#allocation40_spill] sm:$0xff]  ;;  %v9712_v53 = vunpack.c.l.bf16 %v9711_v19  ;;  %v9715_v39 = vunpack.c.h.bf16 %v9711_v19 }
 0xe81   :  { %9694 = vst [vmem:[#allocation18_spill] sm:$0xff] %v8024_v40  ;;  %v8034_v44 = vmul.f32 %v9700_v54, %v9698_v5  ;;  %v8039_v57 = vmul.f32 %v9703_v49, %v9702_v4  ;;  %v9707_v36 = vunpack.c.l.bf16 %v9706_v43  ;;  %v9709_v48 = vunpack.c.h.bf16 %v9706_v43  ;;  %v9714_v5 = vld [vmem:[#allocation84_spill] sm:$0xff]  ;;  %v9717_v49 = vld [vmem:[#allocation87_spill] sm:$0xff] }
 0xe82   :  { %9697 = vst [vmem:[#allocation19_spill] sm:$0xff] %v8029_v27  ;;  %v8054_v54 = vmul.f32 %v9712_v53, %v7454_v23  ;;  %v8059_v4 = vmul.f32 %v9715_v39, %v9714_v5  ;;  %v9728_v53 = vld [vmem:[#allocation96_spill] sm:$0xff]  ;;  %v9731_v39 = vld [vmem:[#allocation99_spill] sm:$0xff] }
 0xe83   :  { %9701 = vst [vmem:[#allocation20_spill] sm:$0xff] %v8034_v44  ;;  %v8044_v47 = vmul.f32 %v9707_v36, %v9705_v52  ;;  %v8049_v1 = vmul.f32 %v9709_v48, %v7449_v16  ;;  %v9721_v52 = vld [vmem:[#allocation90_spill] sm:$0xff]  ;;  %v9724_v48 = vld [vmem:[#allocation93_spill] sm:$0xff] }
 0xe84   :  { %9704 = vst [vmem:[#allocation21_spill] sm:$0xff] %v8039_v57  ;;  %v9718_v57 = vld [vmem:[#allocation42_spill] sm:$0xff] }
 0xe85   :  { %9708 = vst [vmem:[#allocation22_spill] sm:$0xff] %v8044_v47  ;;  %v9719_v44 = vunpack.c.l.bf16 %v9718_v57  ;;  %v9722_v43 = vunpack.c.h.bf16 %v9718_v57 }
 0xe86   :  { %9710 = vst [vmem:[#allocation23_spill] sm:$0xff] %v8049_v1  ;;  %v9725_v1 = vld [vmem:[#allocation43_spill] sm:$0xff] }
 0xe87   :  { %9713 = vst [vmem:[#allocation24_spill] sm:$0xff] %v8054_v54  ;;  %v8064_v36 = vmul.f32 %v9719_v44, %v9717_v49  ;;  %v8069_v16 = vmul.f32 %v9722_v43, %v9721_v52  ;;  %v9726_v47 = vunpack.c.l.bf16 %v9725_v1  ;;  %v9729_v19 = vunpack.c.h.bf16 %v9725_v1  ;;  %v9735_v49 = vld [vmem:[#allocation102_spill] sm:$0xff]  ;;  %v9738_v43 = vld [vmem:[#allocation105_spill] sm:$0xff] }
 0xe88   :  { %9716 = vst [vmem:[#allocation25_spill] sm:$0xff] %v8059_v4  ;;  %v9732_v4 = vld [vmem:[#allocation44_spill] sm:$0xff] }
 0xe89   :  { %9720 = vst [vmem:[#allocation26_spill] sm:$0xff] %v8064_v36  ;;  %v8074_v23 = vmul.f32 %v9726_v47, %v9724_v48  ;;  %v8079_v5 = vmul.f32 %v9729_v19, %v9728_v53  ;;  %v9733_v54 = vunpack.c.l.bf16 %v9732_v4  ;;  %v9736_v57 = vunpack.c.h.bf16 %v9732_v4  ;;  %v9742_v48 = vld [vmem:[#allocation108_spill] sm:$0xff]  ;;  %v9745_v19 = vld [vmem:[#allocation111_spill] sm:$0xff] }
 0xe8a   :  { %9723 = vst [vmem:[#allocation27_spill] sm:$0xff] %v8069_v16  ;;  %v9739_v16 = vld [vmem:[#allocation45_spill] sm:$0xff] }
 0xe8b   :  { %9727 = vst [vmem:[#allocation28_spill] sm:$0xff] %v8074_v23  ;;  %v8084_v44 = vmul.f32 %v9733_v54, %v9731_v39  ;;  %v8089_v52 = vmul.f32 %v9736_v57, %v9735_v49  ;;  %v9740_v36 = vunpack.c.l.bf16 %v9739_v16  ;;  %v9743_v1 = vunpack.c.h.bf16 %v9739_v16  ;;  %v9749_v39 = vld [vmem:[#allocation120_spill] sm:$0xff]  ;;  %v9752_v57 = vld [vmem:[#allocation123_spill] sm:$0xff] }
 0xe8c   :  { %9730 = vst [vmem:[#allocation29_spill] sm:$0xff] %v8079_v5  ;;  %v9746_v5 = vld [vmem:[#allocation46_spill] sm:$0xff] }
 0xe8d   :  { %9734 = vst [vmem:[#allocation30_spill] sm:$0xff] %v8084_v44  ;;  %v8094_v47 = vmul.f32 %v9740_v36, %v9738_v43  ;;  %v8099_v53 = vmul.f32 %v9743_v1, %v9742_v48  ;;  %v9747_v23 = vunpack.c.l.bf16 %v9746_v5  ;;  %v9750_v4 = vunpack.c.h.bf16 %v9746_v5  ;;  %v9756_v43 = vld [vmem:[#allocation126_spill] sm:$0xff]  ;;  %v9759_v1 = vld [vmem:[#allocation129_spill] sm:$0xff] }
 0xe8e   :  { %9737 = vst [vmem:[#allocation31_spill] sm:$0xff] %v8089_v52  ;;  %v9753_v52 = vld [vmem:[#allocation47_spill] sm:$0xff] }
 0xe8f   :  { %9741 = vst [vmem:[#allocation32_spill] sm:$0xff] %v8094_v47  ;;  %v8104_v54 = vmul.f32 %v9747_v23, %v9745_v19  ;;  %v8109_v49 = vmul.f32 %v9750_v4, %v9749_v39  ;;  %v9754_v44 = vunpack.c.l.bf16 %v9753_v52  ;;  %v9757_v16 = vunpack.c.h.bf16 %v9753_v52  ;;  %v9763_v19 = vld [vmem:[#allocation132_spill] sm:$0xff]  ;;  %v9766_v4 = vld [vmem:[#allocation135_spill] sm:$0xff] }
 0xe90   :  { %9744 = vst [vmem:[#allocation33_spill] sm:$0xff] %v8099_v53  ;;  %v9760_v53 = vld [vmem:[#allocation48_spill] sm:$0xff] }
 0xe91   :  { %9748 = vst [vmem:[#allocation34_spill] sm:$0xff] %v8104_v54  ;;  %v8114_v36 = vmul.f32 %v9754_v44, %v9752_v57  ;;  %v8119_v48 = vmul.f32 %v9757_v16, %v9756_v43  ;;  %v9761_v47 = vunpack.c.l.bf16 %v9760_v53  ;;  %v9764_v5 = vunpack.c.h.bf16 %v9760_v53  ;;  %v9770_v57 = vld [vmem:[#allocation138_spill] sm:$0xff]  ;;  %v9773_v16 = vld [vmem:[#allocation141_spill] sm:$0xff] }
 0xe92   :  { %9751 = vst [vmem:[#allocation35_spill] sm:$0xff] %v8109_v49  ;;  %v9767_v49 = vld [vmem:[#allocation49_spill] sm:$0xff] }
 0xe93   :  { %9755 = vst [vmem:[#allocation36_spill] sm:$0xff] %v8114_v36  ;;  %v8124_v23 = vmul.f32 %v9761_v47, %v9759_v1  ;;  %v8129_v39 = vmul.f32 %v9764_v5, %v9763_v19  ;;  %v9768_v54 = vunpack.c.l.bf16 %v9767_v49  ;;  %v9771_v52 = vunpack.c.h.bf16 %v9767_v49  ;;  %v9777_v1 = vld [vmem:[#allocation142_spill] sm:$0xff]  ;;  %v9780_v5 = vld [vmem:[#allocation143_spill] sm:$0xff] }
 0xe94   :  { %9758 = vst [vmem:[#allocation114_spill] sm:$0xff] %v8119_v48  ;;  %v9774_v48 = vld [vmem:[#allocation50_spill] sm:$0xff] }
 0xe95   :  { %9762 = vst [vmem:[#allocation117_spill] sm:$0xff] %v8124_v23  ;;  %v8134_v44 = vmul.f32 %v9768_v54, %v9766_v4  ;;  %v8139_v43 = vmul.f32 %v9771_v52, %v9770_v57  ;;  %v9775_v36 = vunpack.c.l.bf16 %v9774_v48  ;;  %v9778_v53 = vunpack.c.h.bf16 %v9774_v48  ;;  %v9784_v4 = vld [vmem:[#allocation144_spill] sm:$0xff]  ;;  %v9787_v52 = vld [vmem:[#allocation145_spill] sm:$0xff] }
 0xe96   :  { %9765 = vst [vmem:[#allocation37_spill] sm:$0xff] %v8129_v39  ;;  %v9781_v39 = vld [vmem:[#allocation51_spill] sm:$0xff] }
 0xe97   :  { %9769 = vst [vmem:[#allocation72_spill] sm:$0xff] %v8134_v44  ;;  %v8144_v47 = vmul.f32 %v9775_v36, %v9773_v16  ;;  %v8149_v19 = vmul.f32 %v9778_v53, %v9777_v1  ;;  %v9782_v23 = vunpack.c.l.bf16 %v9781_v39  ;;  %v9785_v49 = vunpack.c.h.bf16 %v9781_v39  ;;  %v9791_v16 = vld [vmem:[#allocation74_spill] sm:$0xff]  ;;  %v9794_v53 = vld [vmem:[#allocation76_spill] sm:$0xff] }
 0xe98   :  { %9772 = vst [vmem:[#allocation73_spill] sm:$0xff] %v8139_v43  ;;  %v9788_v43 = vld [vmem:[#allocation52_spill] sm:$0xff] }
 0xe99   :  { %9776 = vst [vmem:[#allocation38_spill] sm:$0xff] %v8144_v47  ;;  %v8154_v54 = vmul.f32 %v9782_v23, %v9780_v5  ;;  %v8159_v57 = vmul.f32 %v9785_v49, %v9784_v4  ;;  %v9789_v44 = vunpack.c.l.bf16 %v9788_v43  ;;  %v9792_v48 = vunpack.c.h.bf16 %v9788_v43  ;;  %v9798_v5 = vld [vmem:[#allocation78_spill] sm:$0xff]  ;;  %v9801_v49 = vld [vmem:[#allocation80_spill] sm:$0xff] }
 0xe9a   :  { %9779 = vst [vmem:[#allocation75_spill] sm:$0xff] %v8149_v19  ;;  %v9795_v19 = vld [vmem:[#allocation53_spill] sm:$0xff] }
 0xe9b   :  { %9783 = vst [vmem:[#allocation77_spill] sm:$0xff] %v8154_v54  ;;  %v8164_v36 = vmul.f32 %v9789_v44, %v9787_v52  ;;  %v8169_v1 = vmul.f32 %v9792_v48, %v9791_v16  ;;  %v9796_v47 = vunpack.c.l.bf16 %v9795_v19  ;;  %v9799_v39 = vunpack.c.h.bf16 %v9795_v19  ;;  %v9805_v52 = vld [vmem:[#allocation82_spill] sm:$0xff]  ;;  %v9808_v48 = vld [vmem:[#allocation85_spill] sm:$0xff] }
 0xe9c   :  { %9786 = vst [vmem:[#allocation39_spill] sm:$0xff] %v8159_v57  ;;  %v9802_v57 = vld [vmem:[#allocation54_spill] sm:$0xff] }
 0xe9d   :  { %9790 = vst [vmem:[#allocation79_spill] sm:$0xff] %v8164_v36  ;;  %v8174_v23 = vmul.f32 %v9796_v47, %v9794_v53  ;;  %v8179_v4 = vmul.f32 %v9799_v39, %v9798_v5  ;;  %v9803_v54 = vunpack.c.l.bf16 %v9802_v57  ;;  %v9806_v43 = vunpack.c.h.bf16 %v9802_v57  ;;  %v9812_v53 = vld [vmem:[#allocation88_spill] sm:$0xff]  ;;  %v9815_v39 = vld [vmem:[#allocation91_spill] sm:$0xff] }
 0xe9e   :  { %9793 = vst [vmem:[#allocation81_spill] sm:$0xff] %v8169_v1  ;;  %v9809_v1 = vld [vmem:[#allocation55_spill] sm:$0xff] }
 0xe9f   :  { %9797 = vst [vmem:[#allocation40_spill] sm:$0xff] %v8174_v23  ;;  %v8184_v44 = vmul.f32 %v9803_v54, %v9801_v49  ;;  %v8189_v16 = vmul.f32 %v9806_v43, %v9805_v52  ;;  %v9810_v36 = vunpack.c.l.bf16 %v9809_v1  ;;  %v9813_v19 = vunpack.c.h.bf16 %v9809_v1  ;;  %v9819_v49 = vld [vmem:[#allocation94_spill] sm:$0xff]  ;;  %v9822_v43 = vld [vmem:[#allocation97_spill] sm:$0xff] }
 0xea0   :  { %9800 = vst [vmem:[#allocation41_spill] sm:$0xff] %v8179_v4  ;;  %v9816_v4 = vld [vmem:[#allocation56_spill] sm:$0xff] }
 0xea1   :  { %9804 = vst [vmem:[#allocation84_spill] sm:$0xff] %v8184_v44  ;;  %v8194_v47 = vmul.f32 %v9810_v36, %v9808_v48  ;;  %v8199_v5 = vmul.f32 %v9813_v19, %v9812_v53  ;;  %v9817_v23 = vunpack.c.l.bf16 %v9816_v4  ;;  %v9820_v57 = vunpack.c.h.bf16 %v9816_v4  ;;  %v9826_v48 = vld [vmem:[#allocation100_spill] sm:$0xff]  ;;  %v9829_v19 = vld [vmem:[#allocation103_spill] sm:$0xff] }
 0xea2   :  { %9807 = vst [vmem:[#allocation87_spill] sm:$0xff] %v8189_v16  ;;  %v9823_v16 = vld [vmem:[#allocation57_spill] sm:$0xff] }
 0xea3   :  { %9811 = vst [vmem:[#allocation42_spill] sm:$0xff] %v8194_v47  ;;  %v8204_v54 = vmul.f32 %v9817_v23, %v9815_v39  ;;  %v8209_v52 = vmul.f32 %v9820_v57, %v9819_v49  ;;  %v9824_v44 = vunpack.c.l.bf16 %v9823_v16  ;;  %v9827_v1 = vunpack.c.h.bf16 %v9823_v16  ;;  %v9833_v39 = vld [vmem:[#allocation106_spill] sm:$0xff]  ;;  %v9836_v57 = vld [vmem:[#allocation109_spill] sm:$0xff] }
 0xea4   :  { %9814 = vst [vmem:[#allocation90_spill] sm:$0xff] %v8199_v5  ;;  %v9830_v5 = vld [vmem:[#allocation58_spill] sm:$0xff] }
 0xea5   :  { %9818 = vst [vmem:[#allocation93_spill] sm:$0xff] %v8204_v54  ;;  %v8214_v36 = vmul.f32 %v9824_v44, %v9822_v43  ;;  %v8219_v53 = vmul.f32 %v9827_v1, %v9826_v48  ;;  %v9831_v47 = vunpack.c.l.bf16 %v9830_v5  ;;  %v9834_v4 = vunpack.c.h.bf16 %v9830_v5  ;;  %v9840_v43 = vld [vmem:[#allocation112_spill] sm:$0xff]  ;;  %v9843_v1 = vld [vmem:[#allocation115_spill] sm:$0xff] }
 0xea6   :  { %9821 = vst [vmem:[#allocation43_spill] sm:$0xff] %v8209_v52  ;;  %v9837_v52 = vld [vmem:[#allocation59_spill] sm:$0xff] }
 0xea7   :  { %9825 = vst [vmem:[#allocation96_spill] sm:$0xff] %v8214_v36  ;;  %v8224_v23 = vmul.f32 %v9831_v47, %v9829_v19  ;;  %v8229_v49 = vmul.f32 %v9834_v4, %v9833_v39  ;;  %v9838_v54 = vunpack.c.l.bf16 %v9837_v52  ;;  %v9841_v16 = vunpack.c.h.bf16 %v9837_v52  ;;  %v9847_v19 = vld [vmem:[#allocation118_spill] sm:$0xff]  ;;  %v9850_v4 = vld [vmem:[#allocation121_spill] sm:$0xff] }
 0xea8   :  { %9828 = vst [vmem:[#allocation99_spill] sm:$0xff] %v8219_v53  ;;  %v9844_v53 = vld [vmem:[#allocation60_spill] sm:$0xff] }
 0xea9   :  { %9832 = vst [vmem:[#allocation44_spill] sm:$0xff] %v8224_v23  ;;  %v8234_v44 = vmul.f32 %v9838_v54, %v9836_v57  ;;  %v8239_v48 = vmul.f32 %v9841_v16, %v9840_v43  ;;  %v9845_v36 = vunpack.c.l.bf16 %v9844_v53  ;;  %v9848_v5 = vunpack.c.h.bf16 %v9844_v53  ;;  %v9854_v57 = vld [vmem:[#allocation124_spill] sm:$0xff]  ;;  %v9857_v16 = vld [vmem:[#allocation127_spill] sm:$0xff] }
 0xeaa   :  { %9835 = vst [vmem:[#allocation102_spill] sm:$0xff] %v8229_v49  ;;  %v9851_v49 = vld [vmem:[#allocation61_spill] sm:$0xff] }
 0xeab   :  { %9839 = vst [vmem:[#allocation105_spill] sm:$0xff] %v8234_v44  ;;  %v8244_v47 = vmul.f32 %v9845_v36, %v9843_v1  ;;  %v8249_v39 = vmul.f32 %v9848_v5, %v9847_v19  ;;  %v9852_v23 = vunpack.c.l.bf16 %v9851_v49  ;;  %v9855_v52 = vunpack.c.h.bf16 %v9851_v49  ;;  %v9861_v1 = vld [vmem:[#allocation130_spill] sm:$0xff]  ;;  %v9864_v5 = vld [vmem:[#allocation133_spill] sm:$0xff] }
 0xeac   :  { %9842 = vst [vmem:[#allocation45_spill] sm:$0xff] %v8239_v48  ;;  %v9858_v48 = vld [vmem:[#allocation62_spill] sm:$0xff] }
 0xead   :  { %9846 = vst [vmem:[#allocation108_spill] sm:$0xff] %v8244_v47  ;;  %v8254_v54 = vmul.f32 %v9852_v23, %v9850_v4  ;;  %v8259_v43 = vmul.f32 %v9855_v52, %v9854_v57  ;;  %v9859_v44 = vunpack.c.l.bf16 %v9858_v48  ;;  %v9862_v53 = vunpack.c.h.bf16 %v9858_v48  ;;  %v9868_v4 = vld [vmem:[#allocation136_spill] sm:$0xff]  ;;  %v9871_v52 = vld [vmem:[#allocation139_spill] sm:$0xff] }
 0xeae   :  { %9849 = vst [vmem:[#allocation111_spill] sm:$0xff] %v8249_v39  ;;  %v9865_v39 = vld [vmem:[#allocation63_spill] sm:$0xff] }
 0xeaf   :  { %9853 = vst [vmem:[#allocation46_spill] sm:$0xff] %v8254_v54  ;;  %v8264_v36 = vmul.f32 %v9859_v44, %v9857_v16  ;;  %v8269_v19 = vmul.f32 %v9862_v53, %v9861_v1  ;;  %v9866_v47 = vunpack.c.l.bf16 %v9865_v39  ;;  %v9869_v49 = vunpack.c.h.bf16 %v9865_v39  ;;  %v9875_v16 = vld [vmem:[#allocation83_spill] sm:$0xff]  ;;  %v9878_v53 = vld [vmem:[#allocation86_spill] sm:$0xff] }
 0xeb0   :  { %9856 = vst [vmem:[#allocation120_spill] sm:$0xff] %v8259_v43  ;;  %v9872_v43 = vld [vmem:[#allocation64_spill] sm:$0xff] }
 0xeb1   :  { %9860 = vst [vmem:[#allocation123_spill] sm:$0xff] %v8264_v36  ;;  %v8274_v23 = vmul.f32 %v9866_v47, %v9864_v5  ;;  %v8279_v57 = vmul.f32 %v9869_v49, %v9868_v4  ;;  %v9873_v54 = vunpack.c.l.bf16 %v9872_v43  ;;  %v9876_v48 = vunpack.c.h.bf16 %v9872_v43  ;;  %v9882_v5 = vld [vmem:[#allocation89_spill] sm:$0xff]  ;;  %v9885_v49 = vld [vmem:[#allocation92_spill] sm:$0xff] }
 0xeb2   :  { %9863 = vst [vmem:[#allocation47_spill] sm:$0xff] %v8269_v19  ;;  %v9879_v19 = vld [vmem:[#allocation65_spill] sm:$0xff] }
 0xeb3   :  { %9867 = vst [vmem:[#allocation126_spill] sm:$0xff] %v8274_v23  ;;  %v8284_v44 = vmul.f32 %v9873_v54, %v9871_v52  ;;  %v8289_v1 = vmul.f32 %v9876_v48, %v9875_v16  ;;  %v9880_v36 = vunpack.c.l.bf16 %v9879_v19  ;;  %v9883_v39 = vunpack.c.h.bf16 %v9879_v19  ;;  %v9889_v52 = vld [vmem:[#allocation95_spill] sm:$0xff]  ;;  %v9892_v48 = vld [vmem:[#allocation98_spill] sm:$0xff]  ;;  %v9967_v26 = vld [vmem:[#allocation105_spill] sm:$0xff] }
 0xeb4   :  { %9870 = vst [vmem:[#allocation129_spill] sm:$0xff] %v8279_v57  ;;  %v9886_v57 = vld [vmem:[#allocation66_spill] sm:$0xff] }
 0xeb5   :  { %9874 = vst [vmem:[#allocation48_spill] sm:$0xff] %v8284_v44  ;;  %v8294_v47 = vmul.f32 %v9880_v36, %v9878_v53  ;;  %v8299_v4 = vmul.f32 %v9883_v39, %v9882_v5  ;;  %v9887_v23 = vunpack.c.l.bf16 %v9886_v57  ;;  %v9890_v43 = vunpack.c.h.bf16 %v9886_v57  ;;  %v9895_v53 = vld [vmem:[#allocation101_spill] sm:$0xff]  ;;  %v9898_v39 = vld [vmem:[#allocation104_spill] sm:$0xff] }
 0xeb6   :  { %9877 = vst [vmem:[#allocation132_spill] sm:$0xff] %v8289_v1  ;;  %v9893_v1 = vld [vmem:[#allocation67_spill] sm:$0xff] }
 0xeb7   :  { %9881 = vst [vmem:[#allocation135_spill] sm:$0xff] %v8294_v47  ;;  %v8304_v54 = vmul.f32 %v9887_v23, %v9885_v49  ;;  %v8309_v16 = vmul.f32 %v9890_v43, %v9889_v52  ;;  %v9894_v44 = vunpack.c.l.bf16 %v9893_v1  ;;  %v9896_v19 = vunpack.c.h.bf16 %v9893_v1  ;;  %v9902_v49 = vld [vmem:[#allocation107_spill] sm:$0xff]  ;;  %v9905_v43 = vld [vmem:[#allocation110_spill] sm:$0xff] }
 0xeb8   :  { %9884 = vst [vmem:[#allocation49_spill] sm:$0xff] %v8299_v4  ;;  %v9899_v4 = vld [vmem:[#allocation68_spill] sm:$0xff] }
 0xeb9   :  { %9888 = vst [vmem:[#allocation138_spill] sm:$0xff] %v8304_v54  ;;  %v8314_v36 = vmul.f32 %v9894_v44, %v9892_v48  ;;  %v8319_v5 = vmul.f32 %v9896_v19, %v9895_v53  ;;  %v9900_v47 = vunpack.c.l.bf16 %v9899_v4  ;;  %v9903_v57 = vunpack.c.h.bf16 %v9899_v4  ;;  %v9908_v48 = vld [vmem:[#allocation113_spill] sm:$0xff]  ;;  %v9910_v19 = vld [vmem:[#allocation70_spill] sm:$0xff] }
 0xeba   :  { %9891 = vst [vmem:[#allocation141_spill] sm:$0xff] %v8309_v16  ;;  %v9906_v16 = vld [vmem:[#allocation69_spill] sm:$0xff]  ;;  %v9913_v4 = vunpack.c.h.bf16 %v9910_v19 }
 0xebb   :  { %9897 = vst [vmem:[#allocation50_spill] sm:$0xff] %v8319_v5  ;;  %v8324_v23 = vmul.f32 %v9900_v47, %v9898_v39  ;;  %v8329_v52 = vmul.f32 %v9903_v57, %v9902_v49  ;;  %v9907_v54 = vunpack.c.l.bf16 %v9906_v16  ;;  %v9909_v1 = vunpack.c.h.bf16 %v9906_v16  ;;  %v9912_v39 = vld [vmem:[#allocation116_spill] sm:$0xff]  ;;  %v9914_v57 = vld [vmem:[#allocation119_spill] sm:$0xff] }
 0xebc   :  { %v9911_v5 = vunpack.c.l.bf16 %v9910_v19  ;;  %v8349_v49 = vmul.f32 %v9913_v4, %v9912_v39  ;;  %v3320_v39 = vpack.c.bf16 %v7829_v34, %v7824_v31  ;;  %v3321_v4 = vpack.c.bf16 %v7839_v45, %v7834_v28  ;;  %v9977_v0 = vld [vmem:[#allocation48_spill] sm:$0xff] }
 0xebd   :  { %9901 = vst [vmem:[#allocation142_spill] sm:$0xff] %v8324_v23  ;;  %v8334_v44 = vmul.f32 %v9907_v54, %v9905_v43  ;;  %v8339_v53 = vmul.f32 %v9909_v1, %v9908_v48  ;;  %v9917_v43 = vld [vmem:[#allocation122_spill] sm:$0xff]  ;;  %v3327_v31 = vpack.c.bf16 %v7899_v60, %v7894_v10  ;;  %v3328_v34 = vpack.c.bf16 %v7909_v24, %v7904_v30  ;;  %v9919_v60 = vld [vmem:[#allocation137_spill] sm:$0xff]  ;;  %v9920_v30 = vld [vmem:[#allocation140_spill] sm:$0xff] }
 0xebe   :  { %9904 = vst [vmem:[#allocation143_spill] sm:$0xff] %v8329_v52  ;;  %v8344_v47 = vmul.f32 %v9911_v5, %v7744_v51  ;;  %v9915_v52 = vld [vmem:[#allocation71_spill] sm:$0xff]  ;;  %v3326_v51 = vpack.c.bf16 %v7889_v56, %v7884_v8  ;;  %v3329_v28 = vpack.c.bf16 %v7919_v50, %v7914_v42  ;;  %v3333_v8 = vpack.c.bf16 %v7959_v38, %v7954_v59  ;;  %v9921_v42 = vld [vmem:[#allocation12_spill] sm:$0xff]  ;;  %v9922_v50 = vld [vmem:[#allocation13_spill] sm:$0xff] }
 0xebf   :  { %v9916_v23 = vunpack.c.l.bf16 %v9915_v52  ;;  %v9918_v16 = vunpack.c.h.bf16 %v9915_v52  ;;  %v3334_v56 = vpack.c.bf16 %v7969_v41, %v7964_v37  ;;  %v3335_v10 = vpack.c.bf16 %v7979_v35, %v7974_v33  ;;  %v9951_v5 = vld [vmem:[#allocation77_spill] sm:$0xff]  ;;  %v9952_v1 = vld [vmem:[#allocation39_spill] sm:$0xff]  ;;  %v9972_v37 = vld [vmem:[#allocation120_spill] sm:$0xff]  ;;  %3578 = vmatpush.bf16.msrb.mxu0 %v3321_v4 }
 0xec0   :  { %v3336_v24 = vpack.c.bf16 %v9920_v30, %v9919_v60  ;;  %v3337_v45 = vpack.c.bf16 %v9922_v50, %v9921_v42  ;;  %v9974_v33 = vld [vmem:[#allocation47_spill] sm:$0xff]  ;;  %v9975_v52 = vld [vmem:[#allocation126_spill] sm:$0xff]  ;;  %v9976_v60 = vld [vmem:[#allocation129_spill] sm:$0xff]  ;;  %v3371_v35 = vpack.c.bf16 %v8339_v53, %v8334_v44  ;;  %v3372_v30 = vpack.c.bf16 %v8349_v49, %v8344_v47  ;;  %3607 = vmatpush.bf16.msra.mxu2 %v3329_v28 }
 0xec1   :  { %v8354_v54 = vmul.f32 %v9916_v23, %v9914_v57  ;;  %v8359_v48 = vmul.f32 %v9918_v16, %v9917_v43  ;;  %v3353_v57 = vpack.c.bf16 %v9952_v1, %v9951_v5  ;;  %v9965_v16 = vld [vmem:[#allocation44_spill] sm:$0xff]  ;;  %v9966_v1 = vld [vmem:[#allocation102_spill] sm:$0xff]  ;;  %v9968_v43 = vld [vmem:[#allocation45_spill] sm:$0xff] }
 0xec2   :  { %v3360_v5 = vpack.c.bf16 %v9966_v1, %v9965_v16  ;;  %v3361_v19 = vpack.c.bf16 %v9968_v43, %v9967_v26  ;;  %v9973_v23 = vld [vmem:[#allocation123_spill] sm:$0xff]  ;;  %v9978_v42 = vld [vmem:[#allocation132_spill] sm:$0xff]  ;;  %v9980_v16 = vld [vmem:[#allocation49_spill] sm:$0xff] }
 0xec3   :  { %v9979_v6 = vld [vmem:[#allocation135_spill] sm:$0xff]  ;;  %v9981_v22 = vld [vmem:[#allocation138_spill] sm:$0xff]  ;;  %v9982_v26 = vld [vmem:[#allocation141_spill] sm:$0xff]  ;;  %v3373_v50 = vpack.c.bf16 %v8359_v48, %v8354_v54 }
 0xec4   :  { %v3368_v43 = vpack.c.bf16 %v9982_v26, %v9981_v22  ;;  %v9983_v59 = vld [vmem:[#allocation50_spill] sm:$0xff] }
 0xec5   :  { %v3369_v40 = vpack.c.bf16 %v9983_v59, %v8314_v36  ;;  %v9984_v27 = vld [vmem:[#allocation142_spill] sm:$0xff]  ;;  %v9985_v41 = vld [vmem:[#allocation143_spill] sm:$0xff] }
 0xec6   :  { %5224 = dma.done.wait [#allocation5 + $0x2], 4096 }
 0xec7   :  { %5225 = vsyncadd [#allocation5 + $0x2], 4294963200  ;;  %3636 = vmatpush.bf16.msrb.mxu3 %v3337_v45  ;;  %v9986_v1 = vmov 0   ;;  %3579 = vmatpush.bf16.msrb.mxu0 %v3320_v39  ;;  %v9987_v38 = vpack.c.bf16 %v7819_v17, %v7814_v62  ;;  %v9988_v4 = vpack.c.bf16 %v7809_v63, %v7804_v9  ;;  %v9989_v28 = vpack.c.bf16 %v7799_v18, %v7794_v29  ;;  %v4484_v63 = vld [vmem:[#allocation4] sm:$0xf]  ;;  %v10072_v53 = vld [vmem:[#allocation46_spill] sm:$0xff] }
 0xec8   :  { %5218 = vset.pattern.permute.xlu1 %v9986_v1  ;;  %5217 = vset.pattern.permute.xlu0 %v9986_v1  ;;  %v9990_v39 = vpack.c.bf16 %v7879_v2, %v7874_v13  ;;  %v9991_v62 = vpack.c.bf16 %v7789_v21, %v7784_v25  ;;  %v9992_v17 = vpack.c.bf16 %v7869_v7, %v7864_v12  ;;  %v4717_v13 = vld [vmem:[#allocation4 + $0x1c] sm:$0xf0]  ;;  %v4713_v25 = vld [vmem:[#allocation4 + $0x4] sm:$0xf]  ;;  %v4492_v7 = vld [vmem:[#allocation4 + $0x8] sm:$0xf] }
 0xec9   :  { %5219 = vset.pattern.permute.xlu2 %v9986_v1  ;;  %3608 = vmatpush.bf16.msra.mxu2 %v3328_v34  ;;  %v9993_v9 = vpack.c.bf16 %v7949_v14, %v7944_v11  ;;  %v9994_v29 = vpack.c.bf16 %v7779_v46, %v7774_v32  ;;  %v9995_v18 = vpack.c.bf16 %v7859_v15, %v7854_v20  ;;  %v4486_v21 = vld [vmem:[#allocation4 + $0x20] sm:$0xf0]  ;;  %v4718_v2 = vld [vmem:[#allocation4 + $0x24] sm:$0xf0]  ;;  %v10001_v15 = vld [vmem:[#allocation134_spill] sm:$0xff]  ;;  %vm3862_vm0 = vcmask 244736  }
 0xeca   :  { %v9996_v12 = vpack.c.bf16 %v7939_v61, %v7934_v3  ;;  %v4485_v11 = vor.u32 %v4717_v13, %v4484_v63  ;;  %v4489_v14 = vor.u32 %v4713_v25, %v4486_v21  ;;  %v9998_v32 = vld [vmem:[#allocation128_spill] sm:$0xff]  ;;  %v9999_v46 = vld [vmem:[#allocation125_spill] sm:$0xff]  ;;  %v4493_v20 = vor.u32 %v4718_v2, %v4492_v7  ;;  %v10002_v34 = vld [vmem:[#allocation131_spill] sm:$0xff] }
 0xecb   :  { %3637 = vmatpush.bf16.msrb.mxu3 %v3336_v24  ;;  %3580 = vmatpush.bf16.msrb.mxu0 %v9987_v38  ;;  %v10003_v45 = vpack.c.bf16 %v10001_v15, %v10002_v34  ;;  %v10005_v3 = vld [vmem:[#allocation28_spill] sm:$0xff]  ;;  %v10011_v24 = vld [vmem:[#allocation38_spill] sm:$0xff]  ;;  %v10013_v1 = vld [vmem:[#allocation25_spill] sm:$0xff]  ;;  %v10067_v36 = vpack.c.bf16 %v9980_v16, %v9979_v6  ;;  %v10068_v22 = vpack.c.bf16 %v9978_v42, %v9977_v0  ;;  %vm3969_vm1 = vcmask 12288  }
 0xecc   :  { %v4516_v63 = vld [vmem:[#allocation4 + $0x40] sm:$0xf]  ;;  %v4518_v13 = vld [vmem:[#allocation4 + $0x60] sm:$0xf0]  ;;  %v4524_v25 = vld [vmem:[#allocation4 + $0x48] sm:$0xf]  ;;  %v10069_v47 = vpack.c.bf16 %v9985_v41, %v9984_v27  ;;  %v10070_v44 = vpack.c.bf16 %v9976_v60, %v9975_v52  ;;  %v10071_v0 = vpack.c.bf16 %v9974_v33, %v9973_v23 }
 0xecd   :  { %3609 = vmatpush.bf16.msra.mxu2 %v3327_v31  ;;  %v10000_v31 = vpack.c.bf16 %v9998_v32, %v9999_v46  ;;  %v4726_v21 = vld [vmem:[#allocation4 + $0x64] sm:$0xf0]  ;;  %v4741_v54 = vld [vmem:[#allocation4 + $0xdc] sm:$0xf0]  ;;  %v4737_v48 = vld [vmem:[#allocation4 + $0xc4] sm:$0xf] }
 0xece   :  { %v10025_v2 = vld [vmem:[#allocation37_spill] sm:$0xff]  ;;  %v4525_v15 = vor.u32 %v4726_v21, %v4524_v25  ;;  %v10056_v21 = vld [vmem:[#allocation40_spill] sm:$0xff]  ;;  %v4500_v42 = vld [vmem:[#allocation4 + $0x10] sm:$0xf] }
 0xecf   :  { %3638 = vmatpush.bf16.msrb.mxu3 %v3335_v10  ;;  %3581 = vmatpush.bf16.msrb.mxu0 %v9988_v4  ;;  %v10010_v10 = vld [vmem:[#allocation75_spill] sm:$0xff]  ;;  %v10014_v4 = vld [vmem:[#allocation24_spill] sm:$0xff]  ;;  %v10029_v32 = vld [vmem:[#allocation93_spill] sm:$0xff] }
 0xed0   :  { %v10012_v38 = vpack.c.bf16 %v10010_v10, %v10011_v24  ;;  %v10031_v34 = vld [vmem:[#allocation21_spill] sm:$0xff]  ;;  %v10040_v24 = vld [vmem:[#allocation19_spill] sm:$0xff]  ;;  %v4582_v59 = vld [vmem:[#allocation4 + $0xe0] sm:$0xf0] }
 0xed1   :  { %3610 = vmatpush.bf16.msra.mxu2 %v3326_v51  ;;  %v9997_v51 = vpack.c.bf16 %v7769_v58, %v7764_v55  ;;  %v10007_v55 = vld [vmem:[#allocation27_spill] sm:$0xff]  ;;  %v10008_v58 = vld [vmem:[#allocation26_spill] sm:$0xff]  ;;  %v10055_v25 = vld [vmem:[#allocation41_spill] sm:$0xff]  ;;  %v4585_v49 = vor.u32 %v4737_v48, %v4582_v59 }
 0xed2   :  { %v4742_v26 = vld [vmem:[#allocation4 + $0xe4] sm:$0xf0]  ;;  %v4714_v27 = vld [vmem:[#allocation4 + $0xc] sm:$0xf]  ;;  %v4719_v16 = vld [vmem:[#allocation4 + $0x2c] sm:$0xf0] }
 0xed3   :  { %3639 = vmatpush.bf16.msrb.mxu3 %v3334_v56  ;;  %3582 = vmatpush.bf16.msrb.mxu0 %v9989_v28  ;;  %v10009_v56 = vpack.c.bf16 %v10007_v55, %v10008_v58  ;;  %v10015_v28 = vpack.c.bf16 %v10013_v1, %v10014_v4  ;;  %v10037_v58 = vld [vmem:[#allocation90_spill] sm:$0xff]  ;;  %v10043_v4 = vld [vmem:[#allocation35_spill] sm:$0xff]  ;;  %v4494_v41 = vld [vmem:[#allocation4 + $0x28] sm:$0xf0] }
 0xed4   :  { %v4715_v52 = vld [vmem:[#allocation4 + $0x14] sm:$0xf]  ;;  %v4722_v23 = vld [vmem:[#allocation4 + $0x4c] sm:$0xf]  ;;  %v4724_v48 = vld [vmem:[#allocation4 + $0x5c] sm:$0xf] }
 0xed5   :  { %3611 = vmatpush.bf16.msra.mxu2 %v9990_v39  ;;  %v10016_v39 = vld [vmem:[#allocation73_spill] sm:$0xff]  ;;  %v4502_v60 = vld [vmem:[#allocation4 + $0x30] sm:$0xf0]  ;;  %v4542_v59 = vld [vmem:[#allocation4 + $0x78] sm:$0xf0] }
 0xed6   :  { %v4526_v33 = vld [vmem:[#allocation4 + $0x68] sm:$0xf0] }
 0xed7   :  { %3640 = vmatpush.bf16.msrb.mxu3 %v3333_v8  ;;  %3583 = vmatpush.bf16.msrb.mxu0 %v9991_v62  ;;  %v10004_v8 = vld [vmem:[#allocation29_spill] sm:$0xff]  ;;  %v10017_v62 = vld [vmem:[#allocation72_spill] sm:$0xff] }
 0xed8   :  { %v10006_v61 = vpack.c.bf16 %v10004_v8, %v10005_v3  ;;  %v10034_v3 = vld [vmem:[#allocation114_spill] sm:$0xff] }
 0xed9   :  { %3612 = vmatpush.bf16.msra.mxu2 %v9992_v17  ;;  %v10020_v17 = vld [vmem:[#allocation96_spill] sm:$0xff] }
 0xedb   :  { %3641 = vmatpush.bf16.msrb.mxu3 %v9993_v9  ;;  %3584 = vmatpush.bf16.msrb.mxu0 %v9994_v29  ;;  %v4725_v29 = vld [vmem:[#allocation4 + $0x5c] sm:$0xf0] }
 0xedd   :  { %3613 = vmatpush.bf16.msra.mxu2 %v9995_v18  ;;  %v4721_v18 = vld [vmem:[#allocation4 + $0x44] sm:$0xf] }
 0xedf   :  { %3642 = vmatpush.bf16.msrb.mxu3 %v9996_v12  ;;  %3585 = vmatpush.bf16.msrb.mxu0 %v9997_v51  ;;  %v10022_v12 = vld [vmem:[#allocation23_spill] sm:$0xff] }
 0xee0   :  { %v10028_v51 = vld [vmem:[#allocation43_spill] sm:$0xff] }
 0xee1   :  { %3614 = vmatpush.bf16.msra.mxu2 %v10000_v31  ;;  %v10030_v46 = vpack.c.bf16 %v10028_v51, %v10029_v32  ;;  %v4517_v31 = vor.u32 %v4725_v29, %v4516_v63  ;;  %v10052_v29 = vld [vmem:[#allocation33_spill] sm:$0xff]  ;;  %v10058_v32 = vld [vmem:[#allocation15_spill] sm:$0xff] }
 0xee2   :  { %3586 = vmatmul.bf16.vlgmr.msrb.gmra.mxu0 %v4485_v11  ;;  %v10026_v11 = vld [vmem:[#allocation117_spill] sm:$0xff] }
 0xee3   :  { %3643 = vmatpush.bf16.msrb.mxu3 %v10003_v45  ;;  %3665 = vmatpush.bf16.msra.mxu0 %v10006_v61  ;;  %v10032_v45 = vld [vmem:[#allocation20_spill] sm:$0xff]  ;;  %v4734_v51 = vld [vmem:[#allocation4 + $0xa4] sm:$0xf0] }
 0xee4   :  { %3615 = vmatmul.bf16.vlgmr.msra.gmra.mxu2 %v4489_v14  ;;  %v10027_v14 = vpack.c.bf16 %v10025_v2, %v10026_v11  ;;  %v10033_v8 = vpack.c.bf16 %v10031_v34, %v10032_v45  ;;  %v10035_v61 = vld [vmem:[#allocation36_spill] sm:$0xff]  ;;  %v10064_v45 = vld [vmem:[#allocation81_spill] sm:$0xff] }
 0xee5   :  { %3694 = vmatpush.bf16.msrb.mxu2 %v3353_v57  ;;  %v10018_v57 = vpack.c.bf16 %v10016_v39, %v10017_v62  ;;  %v10036_v55 = vpack.c.bf16 %v10034_v3, %v10035_v61  ;;  %v10046_v62 = vld [vmem:[#allocation87_spill] sm:$0xff]  ;;  %v4729_v2 = vld [vmem:[#allocation4 + $0x84] sm:$0xf] }
 0xee6   :  { %3644 = vmatmul.bf16.vlgmr.msrb.gmra.mxu3 %v4493_v20  ;;  %v4521_v20 = vor.u32 %v4721_v18, %v4518_v13  ;;  %v10053_v18 = vld [vmem:[#allocation32_spill] sm:$0xff] }
 0xee7   :  { %3723 = vmatpush.bf16.msra.mxu3 %v3361_v19  ;;  %3666 = vmatpush.bf16.msra.mxu0 %v10009_v56  ;;  %v10019_v19 = vld [vmem:[#allocation99_spill] sm:$0xff]  ;;  %v10038_v56 = vld [vmem:[#allocation42_spill] sm:$0xff]  ;;  %v10054_v13 = vpack.c.bf16 %v10052_v29, %v10053_v18  ;;  %v4550_v11 = vld [vmem:[#allocation4 + $0xa0] sm:$0xf0] }
 0xee8   :  { %v10021_v9 = vpack.c.bf16 %v10019_v19, %v10020_v17  ;;  %v10039_v10 = vpack.c.bf16 %v10037_v58, %v10038_v56  ;;  %v10049_v17 = vld [vmem:[#allocation17_spill] sm:$0xff]  ;;  %v10075_v56 = vld [vmem:[#allocation108_spill] sm:$0xff]  ;;  %v4735_v29 = vld [vmem:[#allocation4 + $0xac] sm:$0xf0] }
 0xee9   :  { %3695 = vmatpush.bf16.msrb.mxu2 %v10012_v38  ;;  %v10041_v38 = vld [vmem:[#allocation18_spill] sm:$0xff] }
 0xeea   :  { %v10042_v1 = vpack.c.bf16 %v10040_v24, %v10041_v38  ;;  %v4497_v24 = vor.u32 %v4714_v27, %v4494_v41  ;;  %v4501_v38 = vor.u32 %v4719_v16, %v4500_v42  ;;  %v4731_v18 = vld [vmem:[#allocation4 + $0x94] sm:$0xf]  ;;  %v4574_v27 = vld [vmem:[#allocation4 + $0xb8] sm:$0xf0] }
 0xeeb   :  { %3724 = vmatpush.bf16.msra.mxu3 %v3360_v5  ;;  %3667 = vmatpush.bf16.msra.mxu0 %v10015_v28  ;;  %v10023_v5 = vld [vmem:[#allocation22_spill] sm:$0xff] }
 0xeec   :  { %v10024_v7 = vpack.c.bf16 %v10022_v12, %v10023_v5  ;;  %v10044_v28 = vld [vmem:[#allocation34_spill] sm:$0xff]  ;;  %v10057_v12 = vpack.c.bf16 %v10055_v25, %v10056_v21  ;;  %v4548_v5 = vld [vmem:[#allocation4 + $0x80] sm:$0xf] }
 0xeed   :  { %3696 = vmatpush.bf16.msrb.mxu2 %v10018_v57  ;;  %v10045_v39 = vpack.c.bf16 %v10043_v4, %v10044_v28  ;;  %v10047_v57 = vld [vmem:[#allocation84_spill] sm:$0xff]  ;;  %v4727_v4 = vld [vmem:[#allocation4 + $0x6c] sm:$0xf0]  ;;  %v4723_v28 = vld [vmem:[#allocation4 + $0x54] sm:$0xf] }
 0xeee   :  { %v10048_v19 = vpack.c.bf16 %v10046_v62, %v10047_v57  ;;  %v4529_v62 = vor.u32 %v4722_v23, %v4526_v33  ;;  %v4744_v23 = vld [vmem:[#allocation4 + $0xf4] sm:$0xf0]  ;;  %v4740_v33 = vld [vmem:[#allocation4 + $0xdc] sm:$0xf] }
 0xeef   :  { %3725 = vmatpush.bf16.msra.mxu3 %v10021_v9  ;;  %3668 = vmatpush.bf16.msra.mxu0 %v10024_v7  ;;  %v10050_v9 = vld [vmem:[#allocation16_spill] sm:$0xff] }
 0xef0   :  { %v10051_v63 = vpack.c.bf16 %v10049_v17, %v10050_v9  ;;  %v4733_v7 = vld [vmem:[#allocation4 + $0x9c] sm:$0xf0]  ;;  %v4730_v17 = vld [vmem:[#allocation4 + $0x8c] sm:$0xf] }
 0xef1   :  { %3697 = vmatpush.bf16.msrb.mxu2 %v10027_v14  ;;  %v4556_v14 = vld [vmem:[#allocation4 + $0x88] sm:$0xf]  ;;  %v4549_v61 = vor.u32 %v4733_v7, %v4548_v5  ;;  %v4558_v9 = vld [vmem:[#allocation4 + $0xa8] sm:$0xf0] }
 0xef2   :  { %3591 = vmatmul.bf16.gmra.mxu0 %v4517_v31  ;;  %v4557_v58 = vor.u32 %v4734_v51, %v4556_v14  ;;  %v4561_v25 = vor.u32 %v4730_v17, %v4558_v9  ;;  %v4738_v5 = vld [vmem:[#allocation4 + $0xcc] sm:$0xf]  ;;  %v4739_v14 = vld [vmem:[#allocation4 + $0xd4] sm:$0xf] }
 0xef3   :  { %3726 = vmatpush.bf16.msra.mxu3 %v10030_v46  ;;  %3669 = vmatpush.bf16.msra.mxu0 %v10033_v8  ;;  %v10059_v46 = vld [vmem:[#allocation14_spill] sm:$0xff]  ;;  %v10065_v8 = vld [vmem:[#allocation79_spill] sm:$0xff]  ;;  %v4590_v7 = vld [vmem:[#allocation4 + $0xe8] sm:$0xf0] }
 0xef4   :  { %3620 = vmatmul.bf16.gmra.mxu2 %v4521_v20  ;;  %v10060_v31 = vpack.c.bf16 %v10058_v32, %v10059_v46  ;;  %v10061_v20 = vld [vmem:[#allocation31_spill] sm:$0xff]  ;;  %v10066_v3 = vpack.c.bf16 %v10064_v45, %v10065_v8  ;;  %v4598_v51 = vld [vmem:[#allocation4 + $0xf0] sm:$0xf0]  ;;  %v4593_v32 = vor.u32 %v4738_v5, %v4590_v7 }
 0xef5   :  { %3698 = vmatpush.bf16.msrb.mxu2 %v10036_v55  ;;  %v4553_v55 = vor.u32 %v4729_v2, %v4550_v11  ;;  %v4596_v2 = vld [vmem:[#allocation4 + $0xd0] sm:$0xf]  ;;  %v4510_v45 = vld [vmem:[#allocation4 + $0x38] sm:$0xf0] }
 0xef6   :  { %3649 = vmatmul.bf16.gmra.mxu3 %v4525_v15  ;;  %v10062_v15 = vld [vmem:[#allocation30_spill] sm:$0xff] }
 0xef7   :  { %3727 = vmatpush.bf16.msra.mxu3 %v10039_v10  ;;  %3670 = vmatpush.bf16.msra.mxu0 %v10042_v1  ;;  %v10063_v34 = vpack.c.bf16 %v10061_v20, %v10062_v15  ;;  %v4505_v1 = vor.u32 %v4715_v52, %v4502_v60  ;;  %v4743_v11 = vld [vmem:[#allocation4 + $0xec] sm:$0xf0]  ;;  %v4508_v20 = vld [vmem:[#allocation4 + $0x18] sm:$0xf] }
 0xef8   :  { %v4597_v46 = vor.u32 %v4743_v11, %v4596_v2  ;;  %v4720_v15 = vld [vmem:[#allocation4 + $0x34] sm:$0xf0] }
 0xef9   :  { %3699 = vmatpush.bf16.msrb.mxu2 %v10045_v39  ;;  %v4534_v39 = vld [vmem:[#allocation4 + $0x70] sm:$0xf0]  ;;  %v4509_v8 = vor.u32 %v4720_v15, %v4508_v20 }
 0xefa   :  { %v3812_v15 = vld [vmem:[%s8772_s19 + $0x10] sm:$0xff] }
 0xefb   :  { %3728 = vmatpush.bf16.msra.mxu3 %v10048_v19  ;;  %3671 = vmatpush.bf16.msra.mxu0 %v10051_v63  ;;  %v4537_v19 = vor.u32 %v4723_v28, %v4534_v39  ;;  %v4564_v63 = vld [vmem:[#allocation4 + $0x90] sm:$0xf] }
 0xefc   :  { %v4565_v21 = vor.u32 %v4735_v29, %v4564_v63 }
 0xefd   :  { %3700 = vmatpush.bf16.msrb.mxu2 %v10054_v13  ;;  %v4566_v13 = vld [vmem:[#allocation4 + $0xb0] sm:$0xf0] }
 0xeff   :  { %3729 = vmatpush.bf16.msra.mxu3 %v10057_v12  ;;  %3672 = vmatpush.bf16.msra.mxu0 %v10060_v31  ;;  %v4569_v12 = vor.u32 %v4731_v18, %v4566_v13  ;;  %v4601_v31 = vor.u32 %v4739_v14, %v4598_v51 }
 0xf01   :  { %3701 = vmatpush.bf16.msrb.mxu2 %v10063_v34  ;;  %v4716_v34 = vld [vmem:[#allocation4 + $0x1c] sm:$0xf] }
 0xf02   :  { %3596 = vmatmul.bf16.gmra.mxu0 %v4549_v61 }
 0xf03   :  { %3730 = vmatpush.bf16.msra.mxu3 %v10066_v3  ;;  %3752 = vmatpush.bf16.msrb.mxu0 %v3369_v40  ;;  %v4580_v40 = vld [vmem:[#allocation4 + $0xc0] sm:$0xf]  ;;  %v4513_v3 = vor.u32 %v4716_v34, %v4510_v45  ;;  %v3811_v34 = vld [vmem:[%s8772_s19 + $0x8] sm:$0xff] }
 0xf04   :  { %3625 = vmatmul.bf16.gmra.mxu2 %v4553_v55  ;;  %v4581_v6 = vor.u32 %v4741_v54, %v4580_v40  ;;  %v4540_v40 = vld [vmem:[#allocation4 + $0x58] sm:$0xf] }
 0xf05   :  { %3785 = vmatpush.bf16.msra.mxu2 %v3373_v50  ;;  %v4588_v50 = vld [vmem:[#allocation4 + $0xc8] sm:$0xf]  ;;  %v4728_v54 = vld [vmem:[#allocation4 + $0x74] sm:$0xf0] }
 0xf06   :  { %3654 = vmatmul.bf16.gmra.mxu3 %v4557_v58 }
 0xf07   :  { %3753 = vmatpush.bf16.msrb.mxu0 %v3368_v43  ;;  %v10074_v43 = vld [vmem:[#allocation111_spill] sm:$0xff] }
 0xf08   :  { %v10076_v10 = vpack.c.bf16 %v10074_v43, %v10075_v56 }
 0xf09   :  { %3786 = vmatpush.bf16.msra.mxu2 %v3372_v30  ;;  %v4589_v30 = vor.u32 %v4742_v26, %v4588_v50  ;;  %v4541_v26 = vor.u32 %v4728_v54, %v4540_v40  ;;  %v3821_v54 = vld [vmem:[%s8773_s20 + $0x38] sm:$0xff] }
 0xf0a   :  { %3859 = vperm.xlu0 %5217, %v3821_v54  }
 0xf0b   :  { %3754 = vmatpush.bf16.msrb.mxu0 %v10067_v36 }
 0xf0d   :  { %3787 = vmatpush.bf16.msra.mxu2 %v3371_v35  ;;  %v10073_v35 = vpack.c.bf16 %v9972_v37, %v10072_v53  ;;  %v4532_v37 = vld [vmem:[#allocation4 + $0x50] sm:$0xf]  ;;  %v4736_v53 = vld [vmem:[#allocation4 + $0xb4] sm:$0xf0] }
 0xf0e   :  { %v4533_v57 = vor.u32 %v4727_v4, %v4532_v37  ;;  %v4606_v37 = vld [vmem:[#allocation4 + $0xf8] sm:$0xf0] }
 0xf0f   :  { %3755 = vmatpush.bf16.msrb.mxu0 %v10068_v22 }
 0xf11   :  { %3788 = vmatpush.bf16.msra.mxu2 %v10069_v47  ;;  %v4545_v47 = vor.u32 %v4724_v48, %v4542_v59  ;;  %v3818_v48 = vld [vmem:[%s8773_s20 + $0x20] sm:$0xff] }
 0xf12   :  { %3601 = vmatmul.bf16.gmra.mxu0 %v4581_v6 }
 0xf13   :  { %3756 = vmatpush.bf16.msrb.mxu0 %v10070_v44 }
 0xf14   :  { %3630 = vmatmul.bf16.gmra.mxu2 %v4585_v49 }
 0xf16   :  { %3659 = vmatmul.bf16.gmra.mxu3 %v4589_v30 }
 0xf17   :  { %3757 = vmatpush.bf16.msrb.mxu0 %v10071_v0  ;;  %v4572_v0 = vld [vmem:[#allocation4 + $0x98] sm:$0xf] }
 0xf18   :  { %v4573_v16 = vor.u32 %v4736_v53, %v4572_v0 }
 0xf1b   :  { %3758 = vmatpush.bf16.msrb.mxu0 %v10073_v35  ;;  %v4732_v35 = vld [vmem:[#allocation4 + $0x9c] sm:$0xf] }
 0xf1c   :  { %v4577_v43 = vor.u32 %v4732_v35, %v4574_v27 }
 0xf1f   :  { %3759 = vmatpush.bf16.msrb.mxu0 %v10076_v10 }
 0xf22   :  { %3673 = vmatmul.bf16.vlgmr.msra.gmra.mxu0 %v4497_v24 }
 0xf24   :  { %3702 = vmatmul.bf16.vlgmr.msrb.gmra.mxu2 %v4501_v38  ;;  %v4604_v38 = vld [vmem:[#allocation4 + $0xd8] sm:$0xf] }
 0xf25   :  { %v4605_v39 = vor.u32 %v4744_v23, %v4604_v38 }
 0xf26   :  { %3731 = vmatmul.bf16.vlgmr.msra.gmra.mxu3 %v4505_v1 }
 0xf32   :  { %3678 = vmatmul.bf16.gmra.mxu0 %v4529_v62  ;;  %v4609_v62 = vor.u32 %v4740_v33, %v4606_v37 }
 0xf34   :  { %3707 = vmatmul.bf16.gmra.mxu2 %v4533_v57 }
 0xf36   :  { %3736 = vmatmul.bf16.gmra.mxu3 %v4537_v19 }
 0xf42   :  { %3683 = vmatmul.bf16.gmra.mxu0 %v4561_v25 }
 0xf44   :  { %3712 = vmatmul.bf16.gmra.mxu2 %v4565_v21 }
 0xf46   :  { %3741 = vmatmul.bf16.gmra.mxu3 %v4569_v12 }
 0xf52   :  { %3688 = vmatmul.bf16.gmra.mxu0 %v4593_v32  ;;  %v3813_v32 = vld [vmem:[%s8772_s19 + $0x18] sm:$0x3f] }
 0xf53   :  { %4614 = vmatpush.msk.msrb.mxu3 %vm1761_vm13, %v3813_v32 }
 0xf54   :  { %3717 = vmatmul.bf16.gmra.mxu2 %v4597_v46 }
 0xf55   :  { %3903 = vmatpush.msrb.mxu3 %v3812_v15 }
 0xf56   :  { %3746 = vmatmul.bf16.gmra.mxu3 %v4601_v31 }
 0xf57   :  { %3904 = vmatpush.msrb.mxu3 %v3811_v34 }
 0xf5f   :  { %v3587_v61 = vpop.f32.mrf.mxu0 }
 0xf62   :  { %3760 = vmatmul.bf16.vlgmr.msrb.gmra.mxu0 %v4509_v8  ;;  %v3810_v8 = vld [vmem:[%s8772_s19] sm:$0xff] }
 0xf63   :  { %3905 = vmatpush.msrb.mxu3 %v3810_v8 }
 0xf64   :  { %4610 = vmatmul.msk.bf16.vlgmr.msra.gmra.mxu2 %vm2222_vm15, %v4513_v3 }
 0xf67   :  { %v3616_v55 = vpop.f32.mrf.mxu2  ;;  %v3589_v36 = vpop.f32.mrf.mxu0 }
 0xf68   :  { %v8623_v58 = vadd.f32 %v3616_v55, %v3587_v61  ;;  %v3819_v55 = vld [vmem:[%s8773_s20 + $0x28] sm:$0xff] }
 0xf69   :  { %v8632_v10 = vpop.f32.mrf.mxu3  ;;  %3849 = vperm.xlu1 %5218, %v3819_v55   ;;  %v3816_v55 = vld [vmem:[%s8773_s20 + $0x10] sm:$0xff] }
 0xf6f   :  { %v3618_v22 = vpop.f32.mrf.mxu2  ;;  %v3592_v6 = vpop.f32.mrf.mxu0 }
 0xf70   :  { %v8625_v50 = vadd.f32 %v3618_v22, %v3589_v36 }
 0xf71   :  { %v8637_v1 = vpop.f32.mrf.mxu3  ;;  %3844 = vperm.xlu1 %5218, %v3818_v48  }
 0xf72   :  { %3765 = vmatmul.bf16.gmra.mxu0 %v4541_v26 }
 0xf74   :  { %4611 = vmatmul.msk.bf16.gmra.mxu2 %vm2222_vm15, %v4545_v47  ;;  %v3820_v47 = vld [vmem:[%s8773_s20 + $0x30] sm:$0xff] }
 0xf75   :  { %3854 = vperm.xlu0 %5217, %v3820_v47  }
 0xf77   :  { %v3621_v49 = vpop.f32.mrf.mxu2  ;;  %v3594_v44 = vpop.f32.mrf.mxu0 }
 0xf78   :  { %v8628_v30 = vadd.f32 %v3621_v49, %v3592_v6  ;;  %v3814_v6 = vld [vmem:[%s8773_s20] sm:$0xff]  ;;  %v3646_v49 = vadd.f32 %v8632_v10, %v8623_v58 }
 0xf79   :  { %v8642_v19 = vpop.f32.mrf.mxu3  ;;  %3824 = vperm.xlu1 %5218, %v3814_v6  }
 0xf7a   :  { %v3651_v33 = vadd.f32 %v8642_v19, %v8628_v30  ;;  %v3817_v19 = vld [vmem:[%s8773_s20 + $0x18] sm:$0xff] }
 0xf7b   :  { %3839 = vperm.xlu2 %5219, %v3817_v19  }
 0xf7f   :  { %v3623_v41 = vpop.f32.mrf.mxu2  ;;  %v3597_v56 = vpop.f32.mrf.mxu0 }
 0xf80   :  { %v8630_v42 = vadd.f32 %v3623_v41, %v3594_v44  ;;  %v3815_v41 = vld [vmem:[%s8773_s20 + $0x8] sm:$0xff] }
 0xf81   :  { %v8648_v13 = vpop.f32.mrf.mxu3  ;;  %3829 = vperm.xlu0 %5217, %v3815_v41  }
 0xf82   :  { %3770 = vmatmul.bf16.gmra.mxu0 %v4573_v16  ;;  %v3648_v16 = vadd.f32 %v8637_v1, %v8625_v50 }
 0xf83   :  { %3834 = vperm.xlu2 %5219, %v3816_v55  }
 0xf84   :  { %4612 = vmatmul.msk.bf16.gmra.mxu2 %vm2222_vm15, %v4577_v43 }
 0xf87   :  { %v3626_v52 = vpop.f32.mrf.mxu2  ;;  %v3599_v24 = vpop.f32.mrf.mxu0 }
 0xf88   :  { %v8635_v60 = vadd.f32 %v3626_v52, %v3597_v56 }
 0xf89   :  { %v8650_v5 = vpop.f32.mrf.mxu3 }
 0xf8f   :  { %v3628_v4 = vpop.f32.mrf.mxu2  ;;  %v3602_v57 = vpop.f32.mrf.mxu0 }
 0xf90   :  { %v8639_v28 = vadd.f32 %v3628_v4, %v3599_v24 }
 0xf91   :  { %v8652_v11 = vpop.f32.mrf.mxu3 }
 0xf92   :  { %3775 = vmatmul.bf16.gmra.mxu0 %v4605_v39  ;;  %v3658_v54 = vadd.f32 %v8652_v11, %v8639_v28 }
 0xf94   :  { %4613 = vmatmul.msk.bf16.gmra.mxu2 %vm2222_vm15, %v4609_v62 }
 0xf97   :  { %v3631_v17 = vpop.f32.mrf.mxu2  ;;  %v3604_v63 = vpop.f32.mrf.mxu0 }
 0xf98   :  { %v8644_v9 = vadd.f32 %v3631_v17, %v3602_v57 }
 0xf99   :  { %v8658_v46 = vpop.f32.mrf.mxu3 }
 0xf9f   :  { %v3633_v29 = vpop.f32.mrf.mxu2  ;;  %v3674_v25 = vpop.f32.mrf.mxu0 }
 0xfa0   :  { %v8646_v18 = vadd.f32 %v3633_v29, %v3604_v63  ;;  %v3675_v0 = vadd.f32 %v3674_v25, %v3646_v49  ;;  %v3653_v63 = vadd.f32 %v8648_v13, %v8630_v42  ;;  %v3661_v49 = vadd.f32 %v8658_v46, %v8644_v9 }
 0xfa1   :  { %v8673_v3 = vpop.f32.mrf.mxu3 }
 0xfa7   :  { %v3703_v21 = vpop.f32.mrf.mxu2  ;;  %v3676_v12 = vpop.f32.mrf.mxu0 }
 0xfa8   :  { %v3704_v35 = vadd.f32 %v3703_v21, %v3675_v0  ;;  %v3677_v56 = vadd.f32 %v3676_v12, %v3648_v16 }
 0xfa9   :  { %v3732_v59 = vpop.f32.mrf.mxu3 }
 0xfaa   :  { %v3733_v43 = vadd.f32 %v3732_v59, %v3704_v35 }
 0xfaf   :  { %v3705_v7 = vpop.f32.mrf.mxu2  ;;  %v3679_v2 = vpop.f32.mrf.mxu0 }
 0xfb0   :  { %v3706_v58 = vadd.f32 %v3705_v7, %v3677_v56  ;;  %v3680_v4 = vadd.f32 %v3679_v2, %v3651_v33 }
 0xfb1   :  { %v3734_v44 = vpop.f32.mrf.mxu3 }
 0xfb2   :  { %v3735_v37 = vadd.f32 %v3734_v44, %v3706_v58 }
 0xfb7   :  { %v3708_v14 = vpop.f32.mrf.mxu2  ;;  %v3681_v51 = vpop.f32.mrf.mxu0 }
 0xfb8   :  { %v3709_v57 = vadd.f32 %v3708_v14, %v3680_v4  ;;  %v3682_v25 = vadd.f32 %v3681_v51, %v3653_v63  ;;  %v3656_v14 = vadd.f32 %v8650_v5, %v8635_v60  ;;  %v3860_v4 = vpop.permute.xlu0 %3859 }
 0xfb9   :  { %v3737_v24 = vpop.f32.mrf.mxu3 }
 0xfba   :  { %v3738_v29 = vadd.f32 %v3737_v24, %v3709_v57 }
 0xfbf   :  { %v3710_v31 = vpop.f32.mrf.mxu2  ;;  %v8660_v20 = vpop.f32.mrf.mxu0 }
 0xfc0   :  { %v3711_v7 = vadd.f32 %v3710_v31, %v3682_v25  ;;  %v3685_v42 = vadd.f32 %v8660_v20, %v3656_v14 }
 0xfc1   :  { %v3739_v1 = vpop.f32.mrf.mxu3 }
 0xfc2   :  { %v3740_v15 = vadd.f32 %v3739_v1, %v3711_v7 }
 0xfc7   :  { %v8668_v45 = vpop.f32.mrf.mxu2  ;;  %v8675_v61 = vpop.f32.mrf.mxu0 }
 0xfc8   :  { %v3714_v31 = vadd.f32 %v8668_v45, %v3685_v42  ;;  %v3687_v20 = vadd.f32 %v8675_v61, %v3658_v54  ;;  %v3939_v54 = vld [vmem:[%s8774_s21] sm:$0x1f] }
 0xfc9   :  { %v3742_v2 = vpop.f32.mrf.mxu3 }
 0xfca   :  { %v3743_v60 = vadd.f32 %v3742_v2, %v3714_v31 }
 0xfcf   :  { %v8680_v36 = vpop.f32.mrf.mxu2  ;;  %v8682_v40 = vpop.f32.mrf.mxu0 }
 0xfd0   :  { %v3716_v45 = vadd.f32 %v8680_v36, %v3687_v20  ;;  %v3690_v0 = vadd.f32 %v8682_v40, %v3661_v49  ;;  %v3663_v36 = vadd.f32 %v8673_v3, %v8646_v18  ;;  %v3940_v18 = vld [vmem:[%s8775_s22] sm:$0x1f] }
 0xfd1   :  { %v3744_v5 = vpop.f32.mrf.mxu3  ;;  %3943 = vperm.xlu2 %5219, %v3940_v18  }
 0xfd2   :  { %v3745_v44 = vadd.f32 %v3744_v5, %v3716_v45 }
 0xfd5   :  { %v3840_v57 = vpop.permute.xlu2 %3839 }
 0xfd7   :  { %v8690_v22 = vpop.f32.mrf.mxu2  ;;  %v8692_v26 = vpop.f32.mrf.mxu0 }
 0xfd9   :  { %v3747_v28 = vpop.f32.mrf.mxu3 }
 0xfdf   :  { %v8702_v53 = vpop.f32.mrf.mxu2  ;;  %v3761_v27 = vpop.f32.mrf.mxu0 }
 0xfe0   :  { %v3762_v52 = vadd.f32 %v3761_v27, %v3733_v43  ;;  %v3719_v27 = vadd.f32 %v8690_v22, %v3690_v0  ;;  %v3692_v43 = vadd.f32 %v8692_v26, %v3663_v36 }
 0xfe2   :  { %v3748_v16 = vadd.f32 %v3747_v28, %v3719_v27  ;;  %v3721_v46 = vadd.f32 %v8702_v53, %v3692_v43 }
 0xfe7   :  { %v3790_v38 = vpop.f32.mrf.mxu2  ;;  %v3763_v23 = vpop.f32.mrf.mxu0 }
 0xfe8   :  { %v3791_v10 = vadd.f32 %v3790_v38, %v3762_v52  ;;  %v3764_v39 = vadd.f32 %v3763_v23, %v3735_v37  ;;  %v3749_v52 = vpop.f32.mrf.mxu3 }
 0xfe9   :  { %v3750_v22 = vadd.f32 %v3749_v52, %v3721_v46 }
 0xfea   :  { %4615 = vmatmul.msk.f32.vlgmr.msrb.gmra.mxu3 %vm3862_vm0, %v3791_v10 }
 0xfef   :  { %v3792_v62 = vpop.f32.mrf.mxu2  ;;  %v3766_v17 = vpop.f32.mrf.mxu0 }
 0xff0   :  { %v3793_v50 = vadd.f32 %v3792_v62, %v3764_v39  ;;  %v3767_v21 = vadd.f32 %v3766_v17, %v3738_v29  ;;  %v3850_v39 = vpop.permute.xlu1 %3849 }
 0xff2   :  { %4616 = vmatmul.msk.f32.gmra.mxu3 %vm3862_vm0, %v3793_v50  ;;  %v3855_v50 = vpop.permute.xlu0 %3854 }
 0xff7   :  { %v3795_v12 = vpop.f32.mrf.mxu2  ;;  %v3768_v30 = vpop.f32.mrf.mxu0 }
 0xff8   :  { %v3796_v32 = vadd.f32 %v3795_v12, %v3767_v21  ;;  %v3769_v13 = vadd.f32 %v3768_v30, %v3740_v15  ;;  %v3845_v1 = vpop.permute.xlu1 %3844 }
 0xffa   :  { %4617 = vmatmul.msk.f32.gmra.mxu3 %vm3862_vm0, %v3796_v32  ;;  %v3835_v32 = vpop.permute.xlu2 %3834  ;;  %v3830_v2 = vpop.permute.xlu0 %3829 }
 0xfff   :  { %v3797_v51 = vpop.f32.mrf.mxu2  ;;  %v3771_v8 = vpop.f32.mrf.mxu0 }
0x1000   :  { %v3798_v34 = vadd.f32 %v3797_v51, %v3769_v13  ;;  %v3772_v48 = vadd.f32 %v3771_v8, %v3743_v60  ;;  %v3825_v42 = vpop.permute.xlu1 %3824 }
0x1002   :  { %4618 = vmatmul.msk.f32.gmra.mxu3 %vm3862_vm0, %v3798_v34 }
0x1007   :  { %v3800_v59 = vpop.f32.mrf.mxu2  ;;  %v3773_v6 = vpop.f32.mrf.mxu0 }
0x1008   :  { %v3801_v47 = vadd.f32 %v3800_v59, %v3772_v48  ;;  %v3774_v35 = vadd.f32 %v3773_v6, %v3745_v44 }
0x100a   :  { %4619 = vmatmul.msk.f32.gmra.mxu3 %vm3862_vm0, %v3801_v47 }
0x100f   :  { %v3802_v11 = vpop.f32.mrf.mxu2  ;;  %v3776_v41 = vpop.f32.mrf.mxu0 }
0x1010   :  { %v3803_v61 = vadd.f32 %v3802_v11, %v3774_v35  ;;  %v3777_v56 = vadd.f32 %v3776_v41, %v3748_v16 }
0x1012   :  { %4620 = vmatmul.msk.f32.gmra.mxu3 %vm3862_vm0, %v3803_v61 }
0x1017   :  { %v3805_v9 = vpop.f32.mrf.mxu2  ;;  %v3778_v24 = vpop.f32.mrf.mxu0 }
0x1018   :  { %v3806_v40 = vadd.f32 %v3805_v9, %v3777_v56  ;;  %v3779_v38 = vadd.f32 %v3778_v24, %v3750_v22 }
0x101a   :  { %4621 = vmatmul.msk.f32.gmra.mxu3 %vm3862_vm0, %v3806_v40 }
0x101f   :  { %v3807_v58 = vpop.f32.mrf.mxu2 }
0x1020   :  { %v3808_v10 = vadd.f32 %v3807_v58, %v3779_v38 }
0x1022   :  { %4622 = vmatmul.msk.f32.gmra.mxu3 %vm3862_vm0, %v3808_v10 }
0x102b   :  { %v3944_v60 = vpop.permute.xlu2 %3943 }
0x106d   :  { %v3907_v3 = vpop.f32.mrf.mxu3 }
0x106e   :  { %v3908_v31 = vadd.f32 %v3907_v3, %v3825_v42 }
0x1070   :  { %v3931_v55 = vmax.f32 %v3908_v31, 0.0 }
0x1075   :  { %v3910_v26 = vpop.f32.mrf.mxu3 }
0x1076   :  { %v3911_v13 = vadd.f32 %v3910_v26, %v3830_v2 }
0x1078   :  { %v3932_v8 = vmax.f32 %v3911_v13, 0.0 }
0x107d   :  { %v3913_v23 = vpop.f32.mrf.mxu3 }
0x107e   :  { %v3914_v14 = vadd.f32 %v3913_v23, %v3835_v32 }
0x1080   :  { %v3933_v34 = vmax.f32 %v3914_v14, 0.0 }
0x1085   :  { %v3916_v53 = vpop.f32.mrf.mxu3 }
0x1086   :  { %v3917_v30 = vadd.f32 %v3916_v53, %v3840_v57 }
0x1088   :  { %v3934_v51 = vmax.f32 %v3917_v30, 0.0 }
0x108d   :  { %v3919_v33 = vpop.f32.mrf.mxu3 }
0x108e   :  { %v3920_v12 = vadd.f32 %v3919_v33, %v3845_v1 }
0x1090   :  { %v3935_v15 = vmax.f32 %v3920_v12, 0.0 }
0x1095   :  { %v3922_v37 = vpop.f32.mrf.mxu3 }
0x1096   :  { %v3923_v25 = vadd.f32 %v3922_v37, %v3850_v39 }
0x1098   :  { %v3936_v19 = vmax.f32 %v3923_v25, 0.0 }
0x109d   :  { %v3925_v62 = vpop.f32.mrf.mxu3 }
0x109e   :  { %v3926_v63 = vadd.f32 %v3925_v62, %v3855_v50 }
0x10a0   :  { %v3937_v7 = vmax.f32 %v3926_v63, 0.0 }
0x10a5   :  { %v3928_v17 = vpop.f32.mrf.mxu3 }
0x10a6   :  { %v3929_v29 = vadd.f32 %v3928_v17, %v3860_v4 }
0x10a8   :  { %v3938_v21 = vmax.f32 %v3929_v29, 0.0 }
0x10aa   :  { %3957 = vmatpush.msra.mxu3 %v3938_v21 }
0x10ac   :  { %3958 = vmatpush.msra.mxu3 %v3937_v7 }
0x10ae   :  { %3959 = vmatpush.msra.mxu3 %v3936_v19 }
0x10b0   :  { %3960 = vmatpush.msra.mxu3 %v3935_v15 }
0x10b2   :  { %3961 = vmatpush.msra.mxu3 %v3934_v51 }
0x10b4   :  { %3962 = vmatpush.msra.mxu3 %v3933_v34 }
0x10b6   :  { %3963 = vmatpush.msra.mxu3 %v3932_v8 }
0x10b8   :  { %3964 = vmatpush.msra.mxu3 %v3931_v55 }
0x10b9   :  { %4623 = vmatmul.msk.f32.vlgmr.msra.gmra.mxu3 %vm2222_vm15, %v3939_v54 }
0x113c   :  { %v3966_v5 = vpop.f32.mrf.mxu3 }
0x113d   :  { %v3967_v20 = vadd.f32 %v3966_v5, %v3944_v60 }
0x113f   :  { %3970 = vst.msk [vmem:[%s8779_s26] sm:$0x1f] %vm3969_vm1, %v3967_v20 }
0x1140   :  { %3975 = vsyncmov [#allocation5] }
0x1143   :  { %s3976_s4 = vpop.sfrf %3975 }
0x1144   :  { %p4624_p0 = scmp.ne.s32.totalorder %s3976_s4, 0 }
0x1146   :  { %3980 = shalt.err (%p4624_p0)  }
0x1147   :  { %3982 = vsyncmov [#allocation5 + $0x1] }
0x114a   :  { %s3983_s17 = vpop.sfrf %3982 }
0x114b   :  { %p4625_p1 = scmp.ne.s32.totalorder %s3983_s17, 0 }
0x114d   :  { %3987 = shalt.err (%p4625_p1)  }
0x114e   :  { %3989 = vsyncmov [#allocation5 + $0x2] }
0x1151   :  { %s3990_s21 = vpop.sfrf %3989 }
0x1152   :  { %p4626_p2 = scmp.ne.s32.totalorder %s3990_s21, 0 }
0x1154   :  { %3994 = shalt.err (%p4626_p2)  }

</bundles_post_ra>
